<compile_context>
chip_gen: v5e
topology: v5e:2x2
jax: 0.10.0
libtpu: 0.0.40
codegen_flags: <defaults>
</compile_context>

<pallas_src>
import functools

import jax
import jax.numpy as jnp
from jax.experimental import pallas as pl
from jax.experimental.pallas import tpu as pltpu

EPS = 1e-5                       # PyTorch BatchNorm2d default eps
LATENT_CLASS_DIM = 28            # Generator.latent_class_dim


# ---------------------------------------------------------------------------
# Chip-aware VMEM budgeting
# ---------------------------------------------------------------------------
@functools.lru_cache(maxsize=None)
def _vmem_limit_bytes():
    cap = None
    try:
        cap = int(getattr(pltpu.get_tpu_info(), "vmem_capacity_bytes", 0)) or None
    except Exception:
        cap = None
    if cap is None:
        cap = 64 * 1024 * 1024            # conservative default (v7x has 64 MiB)
    # leave headroom for compiler-internal scratch; cap at 96 MiB on 128 MiB chips
    return min(int(cap * 3 // 4), 96 * 1024 * 1024)


# ---------------------------------------------------------------------------
# Pallas kernels
# ---------------------------------------------------------------------------
def _linear_kernel(x_ref, w_ref, b_ref, o_ref):
    # y = x @ W + b  (f32 accumulation on the MXU, bias kept in f32)
    o_ref[...] = (
        jnp.dot(x_ref[...], w_ref[...], preferred_element_type=jnp.float32)
        + b_ref[...]
    ).astype(o_ref.dtype)


def _deconv_kernel(x_ref, w_ref, out_ref, *stats_refs, nw, th, apply_tanh, emit_stats):
    """One row-block tile (all batches folded into lanes) of
    ConvTranspose2d(k=4, s=2, p=1, bias=False).

    x_ref   : [3, Cin, (th+2)*N*W]  normalized, 1-padded, column-unfolded activation;
                                    lane axis = (padded row, batch, col); copy c holds
                                    padded columns c..c+W-1.
    w_ref   : [16, Cout, Cin]       flipped weights; index = ((dy*2+dx)*2 + a)*2 + b.
    out_ref : [4, Cout, th*N*W]     per-sub-position outputs (lane-dense).
    stats   : [Cout, 2]             per-channel (sum, sum_sq) partials for the next BN
                                    (omitted on the final tanh layer).
    """
    m = th * nw
    xv = x_ref[...]
    wv = w_ref[...]

    # 9 deduplicated slabs, sliced once per grid step (static lane offsets; aligned
    # whenever N*W is a multiple of 128).
    slabs = {(r, c): xv[c, :, r * nw:r * nw + m] for r in range(3) for c in range(3)}

    s1 = None
    s2 = None
    for dy in range(2):
        for dx in range(2):
            acc = None
            for a in range(2):
                for b in range(2):
                    part = jnp.dot(wv[((dy * 2 + dx) * 2 + a) * 2 + b],
                                   slabs[(dy + a, dx + b)],
                                   preferred_element_type=jnp.float32)
                    acc = part if acc is None else acc + part
            if emit_stats:
                ps1 = jnp.sum(acc, axis=1, keepdims=True)
                ps2 = jnp.sum(acc * acc, axis=1, keepdims=True)
                s1 = ps1 if s1 is None else s1 + ps1
                s2 = ps2 if s2 is None else s2 + ps2
            if apply_tanh:
                acc = jnp.tanh(acc)
            out_ref[2 * dy + dx] = acc.astype(out_ref.dtype)
    if emit_stats:
        stats_refs[0][...] = jnp.concatenate([s1, s2], axis=1)          # f32


# ---------------------------------------------------------------------------
# Tiling helpers
# ---------------------------------------------------------------------------
def _deconv_footprint(th, w, n, cin, cout, in_isz, out_isz):
    # Per-grid-step VMEM residency: double-buffered input/output tiles + double-
    # buffered weights + in-kernel slab copies + f32 accumulators.
    m = th * n * w
    x_tile = 3 * cin * (th + 2) * n * w * in_isz
    out_tile = 4 * cout * m * out_isz
    wts = 16 * cout * cin * in_isz
    slabs = 9 * cin * m * in_isz
    accs = 2 * cout * m * 4
    stats = 2 * cout * 4
    return 2 * (x_tile + out_tile + stats) + 2 * wts + slabs + accs


def _pick_tile_h(h, w, n, cin, cout, in_isz, out_isz, budget):
    divisors = [d for d in range(1, h + 1) if h % d == 0]
    fitting = [d for d in divisors
               if _deconv_footprint(d, w, n, cin, cout, in_isz, out_isz) <= budget]
    fitting = fitting or [1]
    # Prefer a lane width (matmul N / store width) of at least 128.
    lane_full = [d for d in fitting if d * n * w >= 128] or fitting
    # Prefer >=2 grid programs so both v7x TensorCores get work (no-op on v5e/v6e).
    multi = [d for d in lane_full if h // d >= 2] or lane_full
    return max(multi)


def _pick_block_n(out_dim, cap=2048):
    if out_dim <= cap:
        return out_dim
    bn = (cap // 128) * 128
    while bn >= 128:
        if out_dim % bn == 0:
            return bn
        bn -= 128
    return out_dim


# ---------------------------------------------------------------------------
# Layer wrappers
# ---------------------------------------------------------------------------
def linear(x, w, b2d, out_dtype):
    # x: [B, In], w: [In, Out] (compute dtype), b2d: [1, Out] f32
    bsz, in_dim = x.shape
    out_dim = w.shape[1]
    bn = _pick_block_n(out_dim)
    return pl.pallas_call(
        _linear_kernel,
        out_shape=jax.ShapeDtypeStruct((bsz, out_dim), out_dtype),
        grid=(out_dim // bn,),
        in_specs=[
            pl.BlockSpec((bsz, in_dim), lambda j: (0, 0)),
            pl.BlockSpec((in_dim, bn), lambda j: (0, j)),
            pl.BlockSpec((1, bn), lambda j: (0, j)),
        ],
        out_specs=pl.BlockSpec((bsz, bn), lambda j: (0, j)),
        compiler_params=pltpu.CompilerParams(
            dimension_semantics=("parallel",),
            vmem_limit_bytes=_vmem_limit_bytes()),
    )(x.astype(w.dtype), w, b2d)


def _bn_fold(s1, s2, count, gamma, beta):
    # Fold training-mode BatchNorm (biased variance) into a per-channel affine (f32).
    # NOTE: single-pass E[x^2]-E[x]^2 in f32; clamp guards against tiny negative var.
    mean = s1 / count
    var = jnp.maximum(s2 / count - mean * mean, 0.0)
    scale = gamma * jax.lax.rsqrt(var + EPS)
    return scale, beta - mean * scale


def deconv_block(x, scale, shift, w_tap, *, relu, tanh, emit_stats, out_dtype):
    """Fused [BatchNorm affine (+ReLU)] -> ConvTranspose2d(k=4,s=2,p=1) (+Tanh).

    x: [N, Cin, H, W] raw (pre-BN) activation; w_tap: [16, Cout, Cin] prepared weights.
    Returns (y [N, Cout, 2H, 2W], per-channel sum, per-channel sum_sq) - the stats are
    None when emit_stats is False (final layer).
    """
    n, cin, h, w = x.shape
    cdt = w_tap.dtype
    cout = w_tap.shape[1]

    # BN scale/shift (+ReLU) applied before the structural zero padding; XLA fuses this
    # with the pad / column-unfold producer feeding the kernel.
    xn = x.astype(jnp.float32) * scale.reshape(1, cin, 1, 1) + shift.reshape(1, cin, 1, 1)
    if relu:
        xn = jnp.maximum(xn, 0.0)
    xpad = jnp.pad(xn, ((0, 0), (0, 0), (1, 1), (1, 1)))                # [N,Cin,H+2,W+2]

    limit = _vmem_limit_bytes()
    th = _pick_tile_h(h, w, n, cin, cout,
                      jnp.dtype(cdt).itemsize, jnp.dtype(out_dtype).itemsize,
                      budget=int(limit * 0.85))
    nb = h // th
    nw = n * w
    m = th * nw

    # 3-copy column unfold; batch folded into the lane axis as (row, batch, col).
    xu = jnp.stack([xpad[:, :, :, c:c + w] for c in range(3)], axis=0)   # [3,N,Cin,H+2,W]
    xu = xu.transpose(0, 2, 3, 1, 4)                                     # [3,Cin,H+2,N,W]
    xub = jnp.stack(
        [xu[:, :, rb * th: rb * th + th + 2] for rb in range(nb)], axis=0)
    xflat = xub.reshape(nb, 3, cin, (th + 2) * nw).astype(cdt)

    kern = functools.partial(_deconv_kernel, nw=nw, th=th,
                             apply_tanh=tanh, emit_stats=emit_stats)
    if emit_stats:
        out_shape = (jax.ShapeDtypeStruct((nb, 4, cout, m), out_dtype),
                     jax.ShapeDtypeStruct((nb, cout, 2), jnp.float32))
        out_specs = (pl.BlockSpec((None, 4, cout, m), lambda rb: (rb, 0, 0, 0)),
                     pl.BlockSpec((None, cout, 2), lambda rb: (rb, 0, 0)))
    else:
        out_shape = jax.ShapeDtypeStruct((nb, 4, cout, m), out_dtype)
        out_specs = pl.BlockSpec((None, 4, cout, m), lambda rb: (rb, 0, 0, 0))

    res = pl.pallas_call(
        kern,
        out_shape=out_shape,
        grid=(nb,),
        in_specs=[
            pl.BlockSpec((None, 3, cin, (th + 2) * nw), lambda rb: (rb, 0, 0, 0)),
            pl.BlockSpec((16, cout, cin), lambda rb: (0, 0, 0)),
        ],
        out_specs=out_specs,
        compiler_params=pltpu.CompilerParams(
            dimension_semantics=("parallel",),
            vmem_limit_bytes=limit),
    )(xflat, w_tap)

    if emit_stats:
        out, stats = res
        s1 = jnp.sum(stats[..., 0], axis=0)
        s2 = jnp.sum(stats[..., 1], axis=0)
    else:
        out = res
        s1 = s2 = None

    # Re-interleave the 4 sub-positions -> NCHW (layout plumbing left to XLA; the last
    # layer's result is the final NCHW image).
    y = out.reshape(nb, 2, 2, cout, th, n, w)
    y = y.transpose(5, 3, 0, 4, 1, 6, 2).reshape(n, cout, 2 * h, 2 * w)
    return y, s1, s2


# ---------------------------------------------------------------------------
# Parameters (PyTorch layout) + one-time kernel-layout preparation
# ---------------------------------------------------------------------------
def init_generator_params(key, ngf, n_classes, image_size, n_channels, latent_dim):
    s = image_size // 16
    ks = jax.random.split(key, 16)

    def u(k, shape, fan_in):
        bound = (1.0 / fan_in) ** 0.5
        return jax.random.uniform(k, shape, jnp.float32, -bound, bound)

    params = {}
    params["exp_w"] = u(ks[0], (n_classes, LATENT_CLASS_DIM), n_classes)
    params["exp_b"] = u(ks[1], (LATENT_CLASS_DIM,), n_classes)
    in_dim = latent_dim + LATENT_CLASS_DIM
    out_dim = ngf * 8 * s * s
    params["fc_w"] = u(ks[2], (in_dim, out_dim), in_dim)
    params["fc_b"] = u(ks[3], (out_dim,), in_dim)

    chans = [ngf * 8, ngf * 4, ngf * 2, ngf, n_channels]
    for i in range(4):  # 4 BatchNorm2d layers
        c = chans[i]
        params[f"bn{i}_g"] = (1.0 + 0.1 * jax.random.normal(ks[4 + 2 * i], (c,))).astype(jnp.float32)
        params[f"bn{i}_b"] = (0.1 * jax.random.normal(ks[5 + 2 * i], (c,))).astype(jnp.float32)
    for i in range(4):  # 4 ConvTranspose2d layers, PyTorch weight layout [Cin,Cout,4,4]
        cin, cout = chans[i], chans[i + 1]
        params[f"deconv{i}_w"] = u(ks[12 + i], (cin, cout, 4, 4), cin * 16)
    return params


def prepare_generator_params(params, compute_dtype=jnp.bfloat16):
    """One-time conversion to kernel layouts (flipped, tap-major, sub-pixel weights)."""
    prepared = {
        "exp_w": params["exp_w"].astype(compute_dtype),
        "exp_b": params["exp_b"].reshape(1, -1).astype(jnp.float32),
        "fc_w": params["fc_w"].astype(compute_dtype),
        "fc_b": params["fc_b"].reshape(1, -1).astype(jnp.float32),
    }
    for i in range(4):
        prepared[f"bn{i}_g"] = params[f"bn{i}_g"].astype(jnp.float32)
        prepared[f"bn{i}_b"] = params[f"bn{i}_b"].astype(jnp.float32)
        wt = params[f"deconv{i}_w"]                            # [Cin, Cout, 4, 4]
        cin, cout = wt.shape[0], wt.shape[1]
        # flipped kernel, taps split into (a, dy) x (b, dx); one [Cout, Cin] matrix per
        # (dy, dx, a, b) with flat index ((dy*2+dx)*2 + a)*2 + b.
        wf = jnp.flip(wt, (2, 3)).reshape(cin, cout, 2, 2, 2, 2)   # (ci,co,a,dy,b,dx)
        wtap = jnp.transpose(wf, (3, 5, 2, 4, 1, 0)).reshape(16, cout, cin)
        prepared[f"deconv{i}_w"] = wtap.astype(compute_dtype)
    return prepared


# ---------------------------------------------------------------------------
# Forward pass
# ---------------------------------------------------------------------------
def generator_forward(prepared, z, c, ngf, image_size):
    s = image_size // 16
    n = z.shape[0]
    cdt = prepared["fc_w"].dtype

    expc = linear(c, prepared["exp_w"], prepared["exp_b"], jnp.float32)
    zc = jnp.concatenate([z, expc], axis=1)
    h = linear(zc, prepared["fc_w"], prepared["fc_b"], cdt)
    x = h.reshape(n, ngf * 8, s, s)                      # PyTorch Reshape -> NCHW

    # BN0 statistics (tiny FC output; kept in f32)
    hf = x.astype(jnp.float32)
    s1 = jnp.sum(hf, axis=(0, 2, 3))
    s2 = jnp.sum(hf * hf, axis=(0, 2, 3))
    count = n * s * s

    for i in range(4):
        scale, shift = _bn_fold(s1, s2, count, prepared[f"bn{i}_g"], prepared[f"bn{i}_b"])
        last = (i == 3)
        x, s1, s2 = deconv_block(
            x, scale, shift, prepared[f"deconv{i}_w"],
            relu=(i > 0), tanh=last, emit_stats=not last,
            out_dtype=jnp.float32 if last else cdt)
        if not last:
            count = x.shape[0] * x.shape[2] * x.shape[3]
    return x                                             # NCHW, like PyTorch


# ---------------------------------------------------------------------------
# Pure-JAX (XLA) f32 reference for the correctness check
# ---------------------------------------------------------------------------
def reference_forward(params, z, c, ngf, image_size):
    s = image_size // 16
    n = z.shape[0]
    zc = jnp.concatenate([z, c @ params["exp_w"] + params["exp_b"]], axis=1)
    h = (zc @ params["fc_w"] + params["fc_b"]).reshape(n, ngf * 8, s, s)   # NCHW

    def bn(x, g, b, relu):
        mean = jnp.mean(x, axis=(0, 2, 3), keepdims=True)
        var = jnp.mean(jnp.square(x - mean), axis=(0, 2, 3), keepdims=True)
        y = (x - mean) * jax.lax.rsqrt(var + EPS) * g.reshape(1, -1, 1, 1) + b.reshape(1, -1, 1, 1)
        return jnp.maximum(y, 0.0) if relu else y

    def deconv(x, w):  # x: NCHW, w: [Cin, Cout, 4, 4]
        wf = jnp.transpose(jnp.flip(w, axis=(2, 3)), (1, 0, 2, 3))  # OIHW
        return jax.lax.conv_general_dilated(
            x, wf, window_strides=(1, 1), padding=((2, 2), (2, 2)),
            lhs_dilation=(2, 2), dimension_numbers=("NCHW", "OIHW", "NCHW"))

    h = bn(h, params["bn0_g"], params["bn0_b"], relu=False)
    h = deconv(h, params["deconv0_w"])
    h = bn(h, params["bn1_g"], params["bn1_b"], relu=True)
    h = deconv(h, params["deconv1_w"])
    h = bn(h, params["bn2_g"], params["bn2_b"], relu=True)
    h = deconv(h, params["deconv2_w"])
    h = bn(h, params["bn3_g"], params["bn3_b"], relu=True)
    return jnp.tanh(deconv(h, params["deconv3_w"]))


if __name__ == "__main__":
    # Small configuration consistent with the module (image_size must be /16).
    ngf, n_classes, image_size, n_channels, latent_dim = 8, 4, 32, 3, 16
    batch = 2

    key = jax.random.PRNGKey(0)
    kp, kz, kc = jax.random.split(key, 3)
    params = init_generator_params(kp, ngf, n_classes, image_size, n_channels, latent_dim)
    z = jax.random.normal(kz, (batch, latent_dim), jnp.float32)
    c = jax.nn.one_hot(
        jax.random.randint(kc, (batch,), 0, n_classes), n_classes, dtype=jnp.float32)

    fwd = jax.jit(functools.partial(generator_forward, ngf=ngf, image_size=image_size))
    ref = reference_forward(params, z, c, ngf, image_size)

    # f32 MXU-operand path: tight check against the pure-XLA reference.
    prep32 = prepare_generator_params(params, jnp.float32)
    out32 = jax.block_until_ready(fwd(prep32, z, c))
    assert out32.shape == (batch, n_channels, image_size, image_size), out32.shape
    err32 = float(jnp.max(jnp.abs(out32 - ref)))
    assert err32 < 5e-3, f"f32 mismatch vs reference: {err32}"

    # bf16 MXU-operand path (production config): loose sanity check (f32 accumulation,
    # f32 BN statistics; tanh output is in [-1, 1]).
    prep16 = prepare_generator_params(params, jnp.bfloat16)
    out16 = jax.block_until_ready(fwd(prep16, z, c))
    assert out16.shape == (batch, n_channels, image_size, image_size), out16.shape
    err16 = float(jnp.max(jnp.abs(out16 - ref)))
    assert err16 < 1.5e-1, f"bf16 mismatch vs reference: {err16}"

    print("KERNEL_OK")
</pallas_src>

<mosaic_0001>
module attributes {stable_mosaic.version = 11 : i64} {
  func.func @_linear_kernel(%arg0: i32, %arg1: memref<2x44xf32, #tpu.memory_space<vmem>>, %arg2: memref<44x256xf32, #tpu.memory_space<vmem>>, %arg3: memref<1x256xf32, #tpu.memory_space<vmem>>, %arg4: memref<2x256xf32, #tpu.memory_space<vmem>>) attributes {dimension_semantics = [#tpu.dimension_semantics<parallel>], iteration_bounds = array<i64: 1>, scalar_prefetch = 0 : i64, scratch_operands = 0 : i64, tpu.core_type = #tpu.core_type<tc>, window_params = [{pipeline_mode = #tpu.pipeline_mode<synchronous>, transform_indices = @transform_0, window_bounds = array<i64: 2, 44>}, {transform_indices = @transform_1, window_bounds = array<i64: 44, 256>}, {transform_indices = @transform_2, window_bounds = array<i64: 1, 256>}, {transform_indices = @transform_3, window_bounds = array<i64: 2, 256>}]} {
    %c0 = arith.constant 0 : index
    %c0_0 = arith.constant 0 : index
    %0 = vector.load %arg1[%c0, %c0_0] : memref<2x44xf32, #tpu.memory_space<vmem>>, vector<2x44xf32>
    %c0_1 = arith.constant 0 : index
    %c0_2 = arith.constant 0 : index
    %1 = vector.load %arg2[%c0_1, %c0_2] : memref<44x256xf32, #tpu.memory_space<vmem>>, vector<44x256xf32>
    %cst = arith.constant dense<0.000000e+00> : vector<2x256xf32>
    %2 = tpu.matmul %0, %1, %cst {dimension_numbers = #tpu.dot_dimension_numbers<[1], [0], [0], [1], [0, 0, 1, 1], [], []>} : vector<2x44xf32>, vector<44x256xf32>, vector<2x256xf32> -> vector<2x256xf32>
    %c0_3 = arith.constant 0 : index
    %c0_4 = arith.constant 0 : index
    %3 = vector.load %arg3[%c0_3, %c0_4] : memref<1x256xf32, #tpu.memory_space<vmem>>, vector<1x256xf32>
    %4 = vector.broadcast %3 : vector<1x256xf32> to vector<2x256xf32>
    %5 = arith.addf %2, %4 : vector<2x256xf32>
    %c0_5 = arith.constant 0 : index
    %c0_6 = arith.constant 0 : index
    %6 = vector.load %arg4[%c0_5, %c0_6] : memref<2x256xf32, #tpu.memory_space<vmem>>, vector<2x256xf32>
    tpu.vector_store %arg4[%c0_5, %c0_6], %5 {strides = array<i32>} : memref<2x256xf32, #tpu.memory_space<vmem>>, vector<2x256xf32>,
    return
  }
  func.func @transform_0(%arg0: i32) -> (i32, i32) {
    %c0_i32 = arith.constant 0 : i32
    %c0_i32_0 = arith.constant 0 : i32
    %c0_i32_1 = arith.constant 0 : i32
    return %c0_i32, %c0_i32_0 : i32, i32
  }
  func.func @transform_1(%arg0: i32) -> (i32, i32) {
    %c0_i32 = arith.constant 0 : i32
    %c0_i32_0 = arith.constant 0 : i32
    return %c0_i32, %arg0 : i32, i32
  }
  func.func @transform_2(%arg0: i32) -> (i32, i32) {
    %c0_i32 = arith.constant 0 : i32
    %c0_i32_0 = arith.constant 0 : i32
    return %c0_i32, %arg0 : i32, i32
  }
  func.func @transform_3(%arg0: i32) -> (i32, i32) {
    %c0_i32 = arith.constant 0 : i32
    %c0_i32_0 = arith.constant 0 : i32
    return %c0_i32, %arg0 : i32, i32
  }
}

module attributes {stable_mosaic.version = 11 : i64} {
  func.func @_linear_kernel(%arg0: i32, %arg1: memref<2x4xf32, #tpu.memory_space<vmem>>, %arg2: memref<4x28xf32, #tpu.memory_space<vmem>>, %arg3: memref<1x28xf32, #tpu.memory_space<vmem>>, %arg4: memref<2x28xf32, #tpu.memory_space<vmem>>) attributes {dimension_semantics = [#tpu.dimension_semantics<parallel>], iteration_bounds = array<i64: 1>, scalar_prefetch = 0 : i64, scratch_operands = 0 : i64, tpu.core_type = #tpu.core_type<tc>, window_params = [{pipeline_mode = #tpu.pipeline_mode<synchronous>, transform_indices = @transform_0, window_bounds = array<i64: 2, 4>}, {transform_indices = @transform_1, window_bounds = array<i64: 4, 28>}, {transform_indices = @transform_2, window_bounds = array<i64: 1, 28>}, {transform_indices = @transform_3, window_bounds = array<i64: 2, 28>}]} {
    %c0 = arith.constant 0 : index
    %c0_0 = arith.constant 0 : index
    %0 = vector.load %arg1[%c0, %c0_0] : memref<2x4xf32, #tpu.memory_space<vmem>>, vector<2x4xf32>
    %c0_1 = arith.constant 0 : index
    %c0_2 = arith.constant 0 : index
    %1 = vector.load %arg2[%c0_1, %c0_2] : memref<4x28xf32, #tpu.memory_space<vmem>>, vector<4x28xf32>
    %cst = arith.constant dense<0.000000e+00> : vector<2x28xf32>
    %2 = tpu.matmul %0, %1, %cst {dimension_numbers = #tpu.dot_dimension_numbers<[1], [0], [0], [1], [0, 0, 1, 1], [], []>} : vector<2x4xf32>, vector<4x28xf32>, vector<2x28xf32> -> vector<2x28xf32>
    %c0_3 = arith.constant 0 : index
    %c0_4 = arith.constant 0 : index
    %3 = vector.load %arg3[%c0_3, %c0_4] : memref<1x28xf32, #tpu.memory_space<vmem>>, vector<1x28xf32>
    %4 = vector.broadcast %3 : vector<1x28xf32> to vector<2x28xf32>
    %5 = arith.addf %2, %4 : vector<2x28xf32>
    %c0_5 = arith.constant 0 : index
    %c0_6 = arith.constant 0 : index
    %6 = vector.load %arg4[%c0_5, %c0_6] : memref<2x28xf32, #tpu.memory_space<vmem>>, vector<2x28xf32>
    tpu.vector_store %arg4[%c0_5, %c0_6], %5 {strides = array<i32>} : memref<2x28xf32, #tpu.memory_space<vmem>>, vector<2x28xf32>,
    return
  }
  func.func @transform_0(%arg0: i32) -> (i32, i32) {
    %c0_i32 = arith.constant 0 : i32
    %c0_i32_0 = arith.constant 0 : i32
    %c0_i32_1 = arith.constant 0 : i32
    return %c0_i32, %c0_i32_0 : i32, i32
  }
  func.func @transform_1(%arg0: i32) -> (i32, i32) {
    %c0_i32 = arith.constant 0 : i32
    %c0_i32_0 = arith.constant 0 : i32
    return %c0_i32, %arg0 : i32, i32
  }
  func.func @transform_2(%arg0: i32) -> (i32, i32) {
    %c0_i32 = arith.constant 0 : i32
    %c0_i32_0 = arith.constant 0 : i32
    return %c0_i32, %arg0 : i32, i32
  }
  func.func @transform_3(%arg0: i32) -> (i32, i32) {
    %c0_i32 = arith.constant 0 : i32
    %c0_i32_0 = arith.constant 0 : i32
    return %c0_i32, %arg0 : i32, i32
  }
}

module attributes {stable_mosaic.version = 11 : i64} {
  func.func @_deconv_kernel(%arg0: i32, %arg1: memref<1x3x64x12xf32, #tpu.memory_space<vmem>>, %arg2: memref<16x32x64xf32, #tpu.memory_space<vmem>>, %arg3: memref<1x4x32x4xf32, #tpu.memory_space<vmem>>, %arg4: memref<1x32x2xf32, #tpu.memory_space<vmem>>) attributes {dimension_semantics = [#tpu.dimension_semantics<parallel>], iteration_bounds = array<i64: 2>, scalar_prefetch = 0 : i64, scratch_operands = 0 : i64, tpu.core_type = #tpu.core_type<tc>, window_params = [{transform_indices = @transform_0, window_bounds = array<i64: 1, 3, 64, 12>}, {pipeline_mode = #tpu.pipeline_mode<synchronous>, transform_indices = @transform_1, window_bounds = array<i64: 16, 32, 64>}, {transform_indices = @transform_2, window_bounds = array<i64: 1, 4, 32, 4>}, {transform_indices = @transform_3, window_bounds = array<i64: 1, 32, 2>}]} {
    %c0 = arith.constant 0 : index
    %c0_0 = arith.constant 0 : index
    %c0_1 = arith.constant 0 : index
    %c0_2 = arith.constant 0 : index
    %0 = vector.load %arg1[%c0, %c0_0, %c0_1, %c0_2] : memref<1x3x64x12xf32, #tpu.memory_space<vmem>>, vector<1x3x64x12xf32>
    %1 = vector.shape_cast %0 : vector<1x3x64x12xf32> to vector<3x64x12xf32>
    %c0_3 = arith.constant 0 : index
    %c0_4 = arith.constant 0 : index
    %c0_5 = arith.constant 0 : index
    %2 = vector.load %arg2[%c0_3, %c0_4, %c0_5] : memref<16x32x64xf32, #tpu.memory_space<vmem>>, vector<16x32x64xf32>
    %3 = vector.extract_strided_slice %1 {offsets = [0, 0, 0], sizes = [1, 64, 4], strides = [1, 1, 1]} : vector<3x64x12xf32> to vector<1x64x4xf32>
    %4 = vector.shape_cast %3 : vector<1x64x4xf32> to vector<64x4xf32>
    %5 = vector.extract_strided_slice %1 {offsets = [1, 0, 0], sizes = [1, 64, 4], strides = [1, 1, 1]} : vector<3x64x12xf32> to vector<1x64x4xf32>
    %6 = vector.shape_cast %5 : vector<1x64x4xf32> to vector<64x4xf32>
    %7 = vector.extract_strided_slice %1 {offsets = [2, 0, 0], sizes = [1, 64, 4], strides = [1, 1, 1]} : vector<3x64x12xf32> to vector<1x64x4xf32>
    %8 = vector.shape_cast %7 : vector<1x64x4xf32> to vector<64x4xf32>
    %9 = vector.extract_strided_slice %1 {offsets = [0, 0, 4], sizes = [1, 64, 4], strides = [1, 1, 1]} : vector<3x64x12xf32> to vector<1x64x4xf32>
    %10 = vector.shape_cast %9 : vector<1x64x4xf32> to vector<64x4xf32>
    %11 = vector.extract_strided_slice %1 {offsets = [1, 0, 4], sizes = [1, 64, 4], strides = [1, 1, 1]} : vector<3x64x12xf32> to vector<1x64x4xf32>
    %12 = vector.shape_cast %11 : vector<1x64x4xf32> to vector<64x4xf32>
    %13 = vector.extract_strided_slice %1 {offsets = [2, 0, 4], sizes = [1, 64, 4], strides = [1, 1, 1]} : vector<3x64x12xf32> to vector<1x64x4xf32>
    %14 = vector.shape_cast %13 : vector<1x64x4xf32> to vector<64x4xf32>
    %15 = vector.extract_strided_slice %1 {offsets = [0, 0, 8], sizes = [1, 64, 4], strides = [1, 1, 1]} : vector<3x64x12xf32> to vector<1x64x4xf32>
    %16 = vector.shape_cast %15 : vector<1x64x4xf32> to vector<64x4xf32>
    %17 = vector.extract_strided_slice %1 {offsets = [1, 0, 8], sizes = [1, 64, 4], strides = [1, 1, 1]} : vector<3x64x12xf32> to vector<1x64x4xf32>
    %18 = vector.shape_cast %17 : vector<1x64x4xf32> to vector<64x4xf32>
    %19 = vector.extract_strided_slice %1 {offsets = [2, 0, 8], sizes = [1, 64, 4], strides = [1, 1, 1]} : vector<3x64x12xf32> to vector<1x64x4xf32>
    %20 = vector.shape_cast %19 : vector<1x64x4xf32> to vector<64x4xf32>
    %21 = vector.extract_strided_slice %2 {offsets = [0, 0, 0], sizes = [1, 32, 64], strides = [1, 1, 1]} : vector<16x32x64xf32> to vector<1x32x64xf32>
    %22 = vector.shape_cast %21 : vector<1x32x64xf32> to vector<32x64xf32>
    %cst = arith.constant dense<0.000000e+00> : vector<32x4xf32>
    %23 = tpu.matmul %22, %4, %cst {dimension_numbers = #tpu.dot_dimension_numbers<[1], [0], [0], [1], [0, 0, 1, 1], [], []>} : vector<32x64xf32>, vector<64x4xf32>, vector<32x4xf32> -> vector<32x4xf32>
    %24 = vector.extract_strided_slice %2 {offsets = [1, 0, 0], sizes = [1, 32, 64], strides = [1, 1, 1]} : vector<16x32x64xf32> to vector<1x32x64xf32>
    %25 = vector.shape_cast %24 : vector<1x32x64xf32> to vector<32x64xf32>
    %cst_6 = arith.constant dense<0.000000e+00> : vector<32x4xf32>
    %26 = tpu.matmul %25, %6, %cst_6 {dimension_numbers = #tpu.dot_dimension_numbers<[1], [0], [0], [1], [0, 0, 1, 1], [], []>} : vector<32x64xf32>, vector<64x4xf32>, vector<32x4xf32> -> vector<32x4xf32>
    %27 = arith.addf %23, %26 : vector<32x4xf32>
    %28 = vector.extract_strided_slice %2 {offsets = [2, 0, 0], sizes = [1, 32, 64], strides = [1, 1, 1]} : vector<16x32x64xf32> to vector<1x32x64xf32>
    %29 = vector.shape_cast %28 : vector<1x32x64xf32> to vector<32x64xf32>
    %cst_7 = arith.constant dense<0.000000e+00> : vector<32x4xf32>
    %30 = tpu.matmul %29, %10, %cst_7 {dimension_numbers = #tpu.dot_dimension_numbers<[1], [0], [0], [1], [0, 0, 1, 1], [], []>} : vector<32x64xf32>, vector<64x4xf32>, vector<32x4xf32> -> vector<32x4xf32>
    %31 = arith.addf %27, %30 : vector<32x4xf32>
    %32 = vector.extract_strided_slice %2 {offsets = [3, 0, 0], sizes = [1, 32, 64], strides = [1, 1, 1]} : vector<16x32x64xf32> to vector<1x32x64xf32>
    %33 = vector.shape_cast %32 : vector<1x32x64xf32> to vector<32x64xf32>
    %cst_8 = arith.constant dense<0.000000e+00> : vector<32x4xf32>
    %34 = tpu.matmul %33, %12, %cst_8 {dimension_numbers = #tpu.dot_dimension_numbers<[1], [0], [0], [1], [0, 0, 1, 1], [], []>} : vector<32x64xf32>, vector<64x4xf32>, vector<32x4xf32> -> vector<32x4xf32>
    %35 = arith.addf %31, %34 : vector<32x4xf32>
    %cst_9 = arith.constant dense<0.000000e+00> : vector<32xf32>
    %36 = vector.multi_reduction <add>, %35, %cst_9 [1] : vector<32x4xf32> to vector<32xf32>
    %37 = vector.shape_cast %36 : vector<32xf32> to vector<32x1xf32>
    %38 = arith.mulf %35, %35 : vector<32x4xf32>
    %cst_10 = arith.constant dense<0.000000e+00> : vector<32xf32>
    %39 = vector.multi_reduction <add>, %38, %cst_10 [1] : vector<32x4xf32> to vector<32xf32>
    %40 = vector.shape_cast %39 : vector<32xf32> to vector<32x1xf32>
    %c0_11 = arith.constant 0 : index
    %c0_12 = arith.constant 0 : index
    %c0_13 = arith.constant 0 : index
    %c0_14 = arith.constant 0 : index
    %41 = vector.load %arg3[%c0_11, %c0_12, %c0_13, %c0_14] : memref<1x4x32x4xf32, #tpu.memory_space<vmem>>, vector<1x1x32x4xf32>
    %42 = vector.shape_cast %41 : vector<1x1x32x4xf32> to vector<32x4xf32>
    %43 = vector.shape_cast %35 : vector<32x4xf32> to vector<1x1x32x4xf32>
    tpu.vector_store %arg3[%c0_11, %c0_12, %c0_13, %c0_14], %43 {strides = array<i32>} : memref<1x4x32x4xf32, #tpu.memory_space<vmem>>, vector<1x1x32x4xf32>,
    %44 = vector.extract_strided_slice %2 {offsets = [4, 0, 0], sizes = [1, 32, 64], strides = [1, 1, 1]} : vector<16x32x64xf32> to vector<1x32x64xf32>
    %45 = vector.shape_cast %44 : vector<1x32x64xf32> to vector<32x64xf32>
    %cst_15 = arith.constant dense<0.000000e+00> : vector<32x4xf32>
    %46 = tpu.matmul %45, %6, %cst_15 {dimension_numbers = #tpu.dot_dimension_numbers<[1], [0], [0], [1], [0, 0, 1, 1], [], []>} : vector<32x64xf32>, vector<64x4xf32>, vector<32x4xf32> -> vector<32x4xf32>
    %47 = vector.extract_strided_slice %2 {offsets = [5, 0, 0], sizes = [1, 32, 64], strides = [1, 1, 1]} : vector<16x32x64xf32> to vector<1x32x64xf32>
    %48 = vector.shape_cast %47 : vector<1x32x64xf32> to vector<32x64xf32>
    %cst_16 = arith.constant dense<0.000000e+00> : vector<32x4xf32>
    %49 = tpu.matmul %48, %8, %cst_16 {dimension_numbers = #tpu.dot_dimension_numbers<[1], [0], [0], [1], [0, 0, 1, 1], [], []>} : vector<32x64xf32>, vector<64x4xf32>, vector<32x4xf32> -> vector<32x4xf32>
    %50 = arith.addf %46, %49 : vector<32x4xf32>
    %51 = vector.extract_strided_slice %2 {offsets = [6, 0, 0], sizes = [1, 32, 64], strides = [1, 1, 1]} : vector<16x32x64xf32> to vector<1x32x64xf32>
    %52 = vector.shape_cast %51 : vector<1x32x64xf32> to vector<32x64xf32>
    %cst_17 = arith.constant dense<0.000000e+00> : vector<32x4xf32>
    %53 = tpu.matmul %52, %12, %cst_17 {dimension_numbers = #tpu.dot_dimension_numbers<[1], [0], [0], [1], [0, 0, 1, 1], [], []>} : vector<32x64xf32>, vector<64x4xf32>, vector<32x4xf32> -> vector<32x4xf32>
    %54 = arith.addf %50, %53 : vector<32x4xf32>
    %55 = vector.extract_strided_slice %2 {offsets = [7, 0, 0], sizes = [1, 32, 64], strides = [1, 1, 1]} : vector<16x32x64xf32> to vector<1x32x64xf32>
    %56 = vector.shape_cast %55 : vector<1x32x64xf32> to vector<32x64xf32>
    %cst_18 = arith.constant dense<0.000000e+00> : vector<32x4xf32>
    %57 = tpu.matmul %56, %14, %cst_18 {dimension_numbers = #tpu.dot_dimension_numbers<[1], [0], [0], [1], [0, 0, 1, 1], [], []>} : vector<32x64xf32>, vector<64x4xf32>, vector<32x4xf32> -> vector<32x4xf32>
    %58 = arith.addf %54, %57 : vector<32x4xf32>
    %cst_19 = arith.constant dense<0.000000e+00> : vector<32xf32>
    %59 = vector.multi_reduction <add>, %58, %cst_19 [1] : vector<32x4xf32> to vector<32xf32>
    %60 = vector.shape_cast %59 : vector<32xf32> to vector<32x1xf32>
    %61 = arith.mulf %58, %58 : vector<32x4xf32>
    %cst_20 = arith.constant dense<0.000000e+00> : vector<32xf32>
    %62 = vector.multi_reduction <add>, %61, %cst_20 [1] : vector<32x4xf32> to vector<32xf32>
    %63 = vector.shape_cast %62 : vector<32xf32> to vector<32x1xf32>
    %64 = arith.addf %37, %60 : vector<32x1xf32>
    %65 = arith.addf %40, %63 : vector<32x1xf32>
    %c0_21 = arith.constant 0 : index
    %c1 = arith.constant 1 : index
    %c0_22 = arith.constant 0 : index
    %c0_23 = arith.constant 0 : index
    %66 = vector.load %arg3[%c0_21, %c1, %c0_22, %c0_23] : memref<1x4x32x4xf32, #tpu.memory_space<vmem>>, vector<1x1x32x4xf32>
    %67 = vector.shape_cast %66 : vector<1x1x32x4xf32> to vector<32x4xf32>
    %68 = vector.shape_cast %58 : vector<32x4xf32> to vector<1x1x32x4xf32>
    tpu.vector_store %arg3[%c0_21, %c1, %c0_22, %c0_23], %68 {strides = array<i32>} : memref<1x4x32x4xf32, #tpu.memory_space<vmem>>, vector<1x1x32x4xf32>,
    %69 = vector.extract_strided_slice %2 {offsets = [8, 0, 0], sizes = [1, 32, 64], strides = [1, 1, 1]} : vector<16x32x64xf32> to vector<1x32x64xf32>
    %70 = vector.shape_cast %69 : vector<1x32x64xf32> to vector<32x64xf32>
    %cst_24 = arith.constant dense<0.000000e+00> : vector<32x4xf32>
    %71 = tpu.matmul %70, %10, %cst_24 {dimension_numbers = #tpu.dot_dimension_numbers<[1], [0], [0], [1], [0, 0, 1, 1], [], []>} : vector<32x64xf32>, vector<64x4xf32>, vector<32x4xf32> -> vector<32x4xf32>
    %72 = vector.extract_strided_slice %2 {offsets = [9, 0, 0], sizes = [1, 32, 64], strides = [1, 1, 1]} : vector<16x32x64xf32> to vector<1x32x64xf32>
    %73 = vector.shape_cast %72 : vector<1x32x64xf32> to vector<32x64xf32>
    %cst_25 = arith.constant dense<0.000000e+00> : vector<32x4xf32>
    %74 = tpu.matmul %73, %12, %cst_25 {dimension_numbers = #tpu.dot_dimension_numbers<[1], [0], [0], [1], [0, 0, 1, 1], [], []>} : vector<32x64xf32>, vector<64x4xf32>, vector<32x4xf32> -> vector<32x4xf32>
    %75 = arith.addf %71, %74 : vector<32x4xf32>
    %76 = vector.extract_strided_slice %2 {offsets = [10, 0, 0], sizes = [1, 32, 64], strides = [1, 1, 1]} : vector<16x32x64xf32> to vector<1x32x64xf32>
    %77 = vector.shape_cast %76 : vector<1x32x64xf32> to vector<32x64xf32>
    %cst_26 = arith.constant dense<0.000000e+00> : vector<32x4xf32>
    %78 = tpu.matmul %77, %16, %cst_26 {dimension_numbers = #tpu.dot_dimension_numbers<[1], [0], [0], [1], [0, 0, 1, 1], [], []>} : vector<32x64xf32>, vector<64x4xf32>, vector<32x4xf32> -> vector<32x4xf32>
    %79 = arith.addf %75, %78 : vector<32x4xf32>
    %80 = vector.extract_strided_slice %2 {offsets = [11, 0, 0], sizes = [1, 32, 64], strides = [1, 1, 1]} : vector<16x32x64xf32> to vector<1x32x64xf32>
    %81 = vector.shape_cast %80 : vector<1x32x64xf32> to vector<32x64xf32>
    %cst_27 = arith.constant dense<0.000000e+00> : vector<32x4xf32>
    %82 = tpu.matmul %81, %18, %cst_27 {dimension_numbers = #tpu.dot_dimension_numbers<[1], [0], [0], [1], [0, 0, 1, 1], [], []>} : vector<32x64xf32>, vector<64x4xf32>, vector<32x4xf32> -> vector<32x4xf32>
    %83 = arith.addf %79, %82 : vector<32x4xf32>
    %cst_28 = arith.constant dense<0.000000e+00> : vector<32xf32>
    %84 = vector.multi_reduction <add>, %83, %cst_28 [1] : vector<32x4xf32> to vector<32xf32>
    %85 = vector.shape_cast %84 : vector<32xf32> to vector<32x1xf32>
    %86 = arith.mulf %83, %83 : vector<32x4xf32>
    %cst_29 = arith.constant dense<0.000000e+00> : vector<32xf32>
    %87 = vector.multi_reduction <add>, %86, %cst_29 [1] : vector<32x4xf32> to vector<32xf32>
    %88 = vector.shape_cast %87 : vector<32xf32> to vector<32x1xf32>
    %89 = arith.addf %64, %85 : vector<32x1xf32>
    %90 = arith.addf %65, %88 : vector<32x1xf32>
    %c0_30 = arith.constant 0 : index
    %c2 = arith.constant 2 : index
    %c0_31 = arith.constant 0 : index
    %c0_32 = arith.constant 0 : index
    %91 = vector.load %arg3[%c0_30, %c2, %c0_31, %c0_32] : memref<1x4x32x4xf32, #tpu.memory_space<vmem>>, vector<1x1x32x4xf32>
    %92 = vector.shape_cast %91 : vector<1x1x32x4xf32> to vector<32x4xf32>
    %93 = vector.shape_cast %83 : vector<32x4xf32> to vector<1x1x32x4xf32>
    tpu.vector_store %arg3[%c0_30, %c2, %c0_31, %c0_32], %93 {strides = array<i32>} : memref<1x4x32x4xf32, #tpu.memory_space<vmem>>, vector<1x1x32x4xf32>,
    %94 = vector.extract_strided_slice %2 {offsets = [12, 0, 0], sizes = [1, 32, 64], strides = [1, 1, 1]} : vector<16x32x64xf32> to vector<1x32x64xf32>
    %95 = vector.shape_cast %94 : vector<1x32x64xf32> to vector<32x64xf32>
    %cst_33 = arith.constant dense<0.000000e+00> : vector<32x4xf32>
    %96 = tpu.matmul %95, %12, %cst_33 {dimension_numbers = #tpu.dot_dimension_numbers<[1], [0], [0], [1], [0, 0, 1, 1], [], []>} : vector<32x64xf32>, vector<64x4xf32>, vector<32x4xf32> -> vector<32x4xf32>
    %97 = vector.extract_strided_slice %2 {offsets = [13, 0, 0], sizes = [1, 32, 64], strides = [1, 1, 1]} : vector<16x32x64xf32> to vector<1x32x64xf32>
    %98 = vector.shape_cast %97 : vector<1x32x64xf32> to vector<32x64xf32>
    %cst_34 = arith.constant dense<0.000000e+00> : vector<32x4xf32>
    %99 = tpu.matmul %98, %14, %cst_34 {dimension_numbers = #tpu.dot_dimension_numbers<[1], [0], [0], [1], [0, 0, 1, 1], [], []>} : vector<32x64xf32>, vector<64x4xf32>, vector<32x4xf32> -> vector<32x4xf32>
    %100 = arith.addf %96, %99 : vector<32x4xf32>
    %101 = vector.extract_strided_slice %2 {offsets = [14, 0, 0], sizes = [1, 32, 64], strides = [1, 1, 1]} : vector<16x32x64xf32> to vector<1x32x64xf32>
    %102 = vector.shape_cast %101 : vector<1x32x64xf32> to vector<32x64xf32>
    %cst_35 = arith.constant dense<0.000000e+00> : vector<32x4xf32>
    %103 = tpu.matmul %102, %18, %cst_35 {dimension_numbers = #tpu.dot_dimension_numbers<[1], [0], [0], [1], [0, 0, 1, 1], [], []>} : vector<32x64xf32>, vector<64x4xf32>, vector<32x4xf32> -> vector<32x4xf32>
    %104 = arith.addf %100, %103 : vector<32x4xf32>
    %105 = vector.extract_strided_slice %2 {offsets = [15, 0, 0], sizes = [1, 32, 64], strides = [1, 1, 1]} : vector<16x32x64xf32> to vector<1x32x64xf32>
    %106 = vector.shape_cast %105 : vector<1x32x64xf32> to vector<32x64xf32>
    %cst_36 = arith.constant dense<0.000000e+00> : vector<32x4xf32>
    %107 = tpu.matmul %106, %20, %cst_36 {dimension_numbers = #tpu.dot_dimension_numbers<[1], [0], [0], [1], [0, 0, 1, 1], [], []>} : vector<32x64xf32>, vector<64x4xf32>, vector<32x4xf32> -> vector<32x4xf32>
    %108 = arith.addf %104, %107 : vector<32x4xf32>
    %cst_37 = arith.constant dense<0.000000e+00> : vector<32xf32>
    %109 = vector.multi_reduction <add>, %108, %cst_37 [1] : vector<32x4xf32> to vector<32xf32>
    %110 = vector.shape_cast %109 : vector<32xf32> to vector<32x1xf32>
    %111 = arith.mulf %108, %108 : vector<32x4xf32>
    %cst_38 = arith.constant dense<0.000000e+00> : vector<32xf32>
    %112 = vector.multi_reduction <add>, %111, %cst_38 [1] : vector<32x4xf32> to vector<32xf32>
    %113 = vector.shape_cast %112 : vector<32xf32> to vector<32x1xf32>
    %114 = arith.addf %89, %110 : vector<32x1xf32>
    %115 = arith.addf %90, %113 : vector<32x1xf32>
    %c0_39 = arith.constant 0 : index
    %c3 = arith.constant 3 : index
    %c0_40 = arith.constant 0 : index
    %c0_41 = arith.constant 0 : index
    %116 = vector.load %arg3[%c0_39, %c3, %c0_40, %c0_41] : memref<1x4x32x4xf32, #tpu.memory_space<vmem>>, vector<1x1x32x4xf32>
    %117 = vector.shape_cast %116 : vector<1x1x32x4xf32> to vector<32x4xf32>
    %118 = vector.shape_cast %108 : vector<32x4xf32> to vector<1x1x32x4xf32>
    tpu.vector_store %arg3[%c0_39, %c3, %c0_40, %c0_41], %118 {strides = array<i32>} : memref<1x4x32x4xf32, #tpu.memory_space<vmem>>, vector<1x1x32x4xf32>,
    %119 = tpu.concatenate %114, %115 in 1 : vector<32x1xf32>, vector<32x1xf32> -> vector<32x2xf32>
    %c0_42 = arith.constant 0 : index
    %c0_43 = arith.constant 0 : index
    %c0_44 = arith.constant 0 : index
    %120 = vector.load %arg4[%c0_42, %c0_43, %c0_44] : memref<1x32x2xf32, #tpu.memory_space<vmem>>, vector<1x32x2xf32>
    %121 = vector.shape_cast %120 : vector<1x32x2xf32> to vector<32x2xf32>
    %122 = vector.shape_cast %119 : vector<32x2xf32> to vector<1x32x2xf32>
    tpu.vector_store %arg4[%c0_42, %c0_43, %c0_44], %122 {strides = array<i32>} : memref<1x32x2xf32, #tpu.memory_space<vmem>>, vector<1x32x2xf32>,
    return
  }
  func.func @transform_0(%arg0: i32) -> (i32, i32, i32, i32) {
    %c0_i32 = arith.constant 0 : i32
    %c0_i32_0 = arith.constant 0 : i32
    %c0_i32_1 = arith.constant 0 : i32
    %c0_i32_2 = arith.constant 0 : i32
    return %arg0, %c0_i32, %c0_i32_0, %c0_i32_1 : i32, i32, i32, i32
  }
  func.func @transform_1(%arg0: i32) -> (i32, i32, i32) {
    %c0_i32 = arith.constant 0 : i32
    %c0_i32_0 = arith.constant 0 : i32
    %c0_i32_1 = arith.constant 0 : i32
    %c0_i32_2 = arith.constant 0 : i32
    return %c0_i32, %c0_i32_0, %c0_i32_1 : i32, i32, i32
  }
  func.func @transform_2(%arg0: i32) -> (i32, i32, i32, i32) {
    %c0_i32 = arith.constant 0 : i32
    %c0_i32_0 = arith.constant 0 : i32
    %c0_i32_1 = arith.constant 0 : i32
    %c0_i32_2 = arith.constant 0 : i32
    return %arg0, %c0_i32, %c0_i32_0, %c0_i32_1 : i32, i32, i32, i32
  }
  func.func @transform_3(%arg0: i32) -> (i32, i32, i32) {
    %c0_i32 = arith.constant 0 : i32
    %c0_i32_0 = arith.constant 0 : i32
    %c0_i32_1 = arith.constant 0 : i32
    return %arg0, %c0_i32, %c0_i32_0 : i32, i32, i32
  }
}

module attributes {stable_mosaic.version = 11 : i64} {
  func.func @_deconv_kernel(%arg0: i32, %arg1: memref<1x3x32x32xf32, #tpu.memory_space<vmem>>, %arg2: memref<16x16x32xf32, #tpu.memory_space<vmem>>, %arg3: memref<1x4x16x16xf32, #tpu.memory_space<vmem>>, %arg4: memref<1x16x2xf32, #tpu.memory_space<vmem>>) attributes {dimension_semantics = [#tpu.dimension_semantics<parallel>], iteration_bounds = array<i64: 2>, scalar_prefetch = 0 : i64, scratch_operands = 0 : i64, tpu.core_type = #tpu.core_type<tc>, window_params = [{transform_indices = @transform_0, window_bounds = array<i64: 1, 3, 32, 32>}, {pipeline_mode = #tpu.pipeline_mode<synchronous>, transform_indices = @transform_1, window_bounds = array<i64: 16, 16, 32>}, {transform_indices = @transform_2, window_bounds = array<i64: 1, 4, 16, 16>}, {transform_indices = @transform_3, window_bounds = array<i64: 1, 16, 2>}]} {
    %c0 = arith.constant 0 : index
    %c0_0 = arith.constant 0 : index
    %c0_1 = arith.constant 0 : index
    %c0_2 = arith.constant 0 : index
    %0 = vector.load %arg1[%c0, %c0_0, %c0_1, %c0_2] : memref<1x3x32x32xf32, #tpu.memory_space<vmem>>, vector<1x3x32x32xf32>
    %1 = vector.shape_cast %0 : vector<1x3x32x32xf32> to vector<3x32x32xf32>
    %c0_3 = arith.constant 0 : index
    %c0_4 = arith.constant 0 : index
    %c0_5 = arith.constant 0 : index
    %2 = vector.load %arg2[%c0_3, %c0_4, %c0_5] : memref<16x16x32xf32, #tpu.memory_space<vmem>>, vector<16x16x32xf32>
    %3 = vector.extract_strided_slice %1 {offsets = [0, 0, 0], sizes = [1, 32, 16], strides = [1, 1, 1]} : vector<3x32x32xf32> to vector<1x32x16xf32>
    %4 = vector.shape_cast %3 : vector<1x32x16xf32> to vector<32x16xf32>
    %5 = vector.extract_strided_slice %1 {offsets = [1, 0, 0], sizes = [1, 32, 16], strides = [1, 1, 1]} : vector<3x32x32xf32> to vector<1x32x16xf32>
    %6 = vector.shape_cast %5 : vector<1x32x16xf32> to vector<32x16xf32>
    %7 = vector.extract_strided_slice %1 {offsets = [2, 0, 0], sizes = [1, 32, 16], strides = [1, 1, 1]} : vector<3x32x32xf32> to vector<1x32x16xf32>
    %8 = vector.shape_cast %7 : vector<1x32x16xf32> to vector<32x16xf32>
    %9 = vector.extract_strided_slice %1 {offsets = [0, 0, 8], sizes = [1, 32, 16], strides = [1, 1, 1]} : vector<3x32x32xf32> to vector<1x32x16xf32>
    %10 = vector.shape_cast %9 : vector<1x32x16xf32> to vector<32x16xf32>
    %11 = vector.extract_strided_slice %1 {offsets = [1, 0, 8], sizes = [1, 32, 16], strides = [1, 1, 1]} : vector<3x32x32xf32> to vector<1x32x16xf32>
    %12 = vector.shape_cast %11 : vector<1x32x16xf32> to vector<32x16xf32>
    %13 = vector.extract_strided_slice %1 {offsets = [2, 0, 8], sizes = [1, 32, 16], strides = [1, 1, 1]} : vector<3x32x32xf32> to vector<1x32x16xf32>
    %14 = vector.shape_cast %13 : vector<1x32x16xf32> to vector<32x16xf32>
    %15 = vector.extract_strided_slice %1 {offsets = [0, 0, 16], sizes = [1, 32, 16], strides = [1, 1, 1]} : vector<3x32x32xf32> to vector<1x32x16xf32>
    %16 = vector.shape_cast %15 : vector<1x32x16xf32> to vector<32x16xf32>
    %17 = vector.extract_strided_slice %1 {offsets = [1, 0, 16], sizes = [1, 32, 16], strides = [1, 1, 1]} : vector<3x32x32xf32> to vector<1x32x16xf32>
    %18 = vector.shape_cast %17 : vector<1x32x16xf32> to vector<32x16xf32>
    %19 = vector.extract_strided_slice %1 {offsets = [2, 0, 16], sizes = [1, 32, 16], strides = [1, 1, 1]} : vector<3x32x32xf32> to vector<1x32x16xf32>
    %20 = vector.shape_cast %19 : vector<1x32x16xf32> to vector<32x16xf32>
    %21 = vector.extract_strided_slice %2 {offsets = [0, 0, 0], sizes = [1, 16, 32], strides = [1, 1, 1]} : vector<16x16x32xf32> to vector<1x16x32xf32>
    %22 = vector.shape_cast %21 : vector<1x16x32xf32> to vector<16x32xf32>
    %cst = arith.constant dense<0.000000e+00> : vector<16x16xf32>
    %23 = tpu.matmul %22, %4, %cst {dimension_numbers = #tpu.dot_dimension_numbers<[1], [0], [0], [1], [0, 0, 1, 1], [], []>} : vector<16x32xf32>, vector<32x16xf32>, vector<16x16xf32> -> vector<16x16xf32>
    %24 = vector.extract_strided_slice %2 {offsets = [1, 0, 0], sizes = [1, 16, 32], strides = [1, 1, 1]} : vector<16x16x32xf32> to vector<1x16x32xf32>
    %25 = vector.shape_cast %24 : vector<1x16x32xf32> to vector<16x32xf32>
    %cst_6 = arith.constant dense<0.000000e+00> : vector<16x16xf32>
    %26 = tpu.matmul %25, %6, %cst_6 {dimension_numbers = #tpu.dot_dimension_numbers<[1], [0], [0], [1], [0, 0, 1, 1], [], []>} : vector<16x32xf32>, vector<32x16xf32>, vector<16x16xf32> -> vector<16x16xf32>
    %27 = arith.addf %23, %26 : vector<16x16xf32>
    %28 = vector.extract_strided_slice %2 {offsets = [2, 0, 0], sizes = [1, 16, 32], strides = [1, 1, 1]} : vector<16x16x32xf32> to vector<1x16x32xf32>
    %29 = vector.shape_cast %28 : vector<1x16x32xf32> to vector<16x32xf32>
    %cst_7 = arith.constant dense<0.000000e+00> : vector<16x16xf32>
    %30 = tpu.matmul %29, %10, %cst_7 {dimension_numbers = #tpu.dot_dimension_numbers<[1], [0], [0], [1], [0, 0, 1, 1], [], []>} : vector<16x32xf32>, vector<32x16xf32>, vector<16x16xf32> -> vector<16x16xf32>
    %31 = arith.addf %27, %30 : vector<16x16xf32>
    %32 = vector.extract_strided_slice %2 {offsets = [3, 0, 0], sizes = [1, 16, 32], strides = [1, 1, 1]} : vector<16x16x32xf32> to vector<1x16x32xf32>
    %33 = vector.shape_cast %32 : vector<1x16x32xf32> to vector<16x32xf32>
    %cst_8 = arith.constant dense<0.000000e+00> : vector<16x16xf32>
    %34 = tpu.matmul %33, %12, %cst_8 {dimension_numbers = #tpu.dot_dimension_numbers<[1], [0], [0], [1], [0, 0, 1, 1], [], []>} : vector<16x32xf32>, vector<32x16xf32>, vector<16x16xf32> -> vector<16x16xf32>
    %35 = arith.addf %31, %34 : vector<16x16xf32>
    %cst_9 = arith.constant dense<0.000000e+00> : vector<16xf32>
    %36 = vector.multi_reduction <add>, %35, %cst_9 [1] : vector<16x16xf32> to vector<16xf32>
    %37 = vector.shape_cast %36 : vector<16xf32> to vector<16x1xf32>
    %38 = arith.mulf %35, %35 : vector<16x16xf32>
    %cst_10 = arith.constant dense<0.000000e+00> : vector<16xf32>
    %39 = vector.multi_reduction <add>, %38, %cst_10 [1] : vector<16x16xf32> to vector<16xf32>
    %40 = vector.shape_cast %39 : vector<16xf32> to vector<16x1xf32>
    %c0_11 = arith.constant 0 : index
    %c0_12 = arith.constant 0 : index
    %c0_13 = arith.constant 0 : index
    %c0_14 = arith.constant 0 : index
    %41 = vector.load %arg3[%c0_11, %c0_12, %c0_13, %c0_14] : memref<1x4x16x16xf32, #tpu.memory_space<vmem>>, vector<1x1x16x16xf32>
    %42 = vector.shape_cast %41 : vector<1x1x16x16xf32> to vector<16x16xf32>
    %43 = vector.shape_cast %35 : vector<16x16xf32> to vector<1x1x16x16xf32>
    tpu.vector_store %arg3[%c0_11, %c0_12, %c0_13, %c0_14], %43 {strides = array<i32>} : memref<1x4x16x16xf32, #tpu.memory_space<vmem>>, vector<1x1x16x16xf32>,
    %44 = vector.extract_strided_slice %2 {offsets = [4, 0, 0], sizes = [1, 16, 32], strides = [1, 1, 1]} : vector<16x16x32xf32> to vector<1x16x32xf32>
    %45 = vector.shape_cast %44 : vector<1x16x32xf32> to vector<16x32xf32>
    %cst_15 = arith.constant dense<0.000000e+00> : vector<16x16xf32>
    %46 = tpu.matmul %45, %6, %cst_15 {dimension_numbers = #tpu.dot_dimension_numbers<[1], [0], [0], [1], [0, 0, 1, 1], [], []>} : vector<16x32xf32>, vector<32x16xf32>, vector<16x16xf32> -> vector<16x16xf32>
    %47 = vector.extract_strided_slice %2 {offsets = [5, 0, 0], sizes = [1, 16, 32], strides = [1, 1, 1]} : vector<16x16x32xf32> to vector<1x16x32xf32>
    %48 = vector.shape_cast %47 : vector<1x16x32xf32> to vector<16x32xf32>
    %cst_16 = arith.constant dense<0.000000e+00> : vector<16x16xf32>
    %49 = tpu.matmul %48, %8, %cst_16 {dimension_numbers = #tpu.dot_dimension_numbers<[1], [0], [0], [1], [0, 0, 1, 1], [], []>} : vector<16x32xf32>, vector<32x16xf32>, vector<16x16xf32> -> vector<16x16xf32>
    %50 = arith.addf %46, %49 : vector<16x16xf32>
    %51 = vector.extract_strided_slice %2 {offsets = [6, 0, 0], sizes = [1, 16, 32], strides = [1, 1, 1]} : vector<16x16x32xf32> to vector<1x16x32xf32>
    %52 = vector.shape_cast %51 : vector<1x16x32xf32> to vector<16x32xf32>
    %cst_17 = arith.constant dense<0.000000e+00> : vector<16x16xf32>
    %53 = tpu.matmul %52, %12, %cst_17 {dimension_numbers = #tpu.dot_dimension_numbers<[1], [0], [0], [1], [0, 0, 1, 1], [], []>} : vector<16x32xf32>, vector<32x16xf32>, vector<16x16xf32> -> vector<16x16xf32>
    %54 = arith.addf %50, %53 : vector<16x16xf32>
    %55 = vector.extract_strided_slice %2 {offsets = [7, 0, 0], sizes = [1, 16, 32], strides = [1, 1, 1]} : vector<16x16x32xf32> to vector<1x16x32xf32>
    %56 = vector.shape_cast %55 : vector<1x16x32xf32> to vector<16x32xf32>
    %cst_18 = arith.constant dense<0.000000e+00> : vector<16x16xf32>
    %57 = tpu.matmul %56, %14, %cst_18 {dimension_numbers = #tpu.dot_dimension_numbers<[1], [0], [0], [1], [0, 0, 1, 1], [], []>} : vector<16x32xf32>, vector<32x16xf32>, vector<16x16xf32> -> vector<16x16xf32>
    %58 = arith.addf %54, %57 : vector<16x16xf32>
    %cst_19 = arith.constant dense<0.000000e+00> : vector<16xf32>
    %59 = vector.multi_reduction <add>, %58, %cst_19 [1] : vector<16x16xf32> to vector<16xf32>
    %60 = vector.shape_cast %59 : vector<16xf32> to vector<16x1xf32>
    %61 = arith.mulf %58, %58 : vector<16x16xf32>
    %cst_20 = arith.constant dense<0.000000e+00> : vector<16xf32>
    %62 = vector.multi_reduction <add>, %61, %cst_20 [1] : vector<16x16xf32> to vector<16xf32>
    %63 = vector.shape_cast %62 : vector<16xf32> to vector<16x1xf32>
    %64 = arith.addf %37, %60 : vector<16x1xf32>
    %65 = arith.addf %40, %63 : vector<16x1xf32>
    %c0_21 = arith.constant 0 : index
    %c1 = arith.constant 1 : index
    %c0_22 = arith.constant 0 : index
    %c0_23 = arith.constant 0 : index
    %66 = vector.load %arg3[%c0_21, %c1, %c0_22, %c0_23] : memref<1x4x16x16xf32, #tpu.memory_space<vmem>>, vector<1x1x16x16xf32>
    %67 = vector.shape_cast %66 : vector<1x1x16x16xf32> to vector<16x16xf32>
    %68 = vector.shape_cast %58 : vector<16x16xf32> to vector<1x1x16x16xf32>
    tpu.vector_store %arg3[%c0_21, %c1, %c0_22, %c0_23], %68 {strides = array<i32>} : memref<1x4x16x16xf32, #tpu.memory_space<vmem>>, vector<1x1x16x16xf32>,
    %69 = vector.extract_strided_slice %2 {offsets = [8, 0, 0], sizes = [1, 16, 32], strides = [1, 1, 1]} : vector<16x16x32xf32> to vector<1x16x32xf32>
    %70 = vector.shape_cast %69 : vector<1x16x32xf32> to vector<16x32xf32>
    %cst_24 = arith.constant dense<0.000000e+00> : vector<16x16xf32>
    %71 = tpu.matmul %70, %10, %cst_24 {dimension_numbers = #tpu.dot_dimension_numbers<[1], [0], [0], [1], [0, 0, 1, 1], [], []>} : vector<16x32xf32>, vector<32x16xf32>, vector<16x16xf32> -> vector<16x16xf32>
    %72 = vector.extract_strided_slice %2 {offsets = [9, 0, 0], sizes = [1, 16, 32], strides = [1, 1, 1]} : vector<16x16x32xf32> to vector<1x16x32xf32>
    %73 = vector.shape_cast %72 : vector<1x16x32xf32> to vector<16x32xf32>
    %cst_25 = arith.constant dense<0.000000e+00> : vector<16x16xf32>
    %74 = tpu.matmul %73, %12, %cst_25 {dimension_numbers = #tpu.dot_dimension_numbers<[1], [0], [0], [1], [0, 0, 1, 1], [], []>} : vector<16x32xf32>, vector<32x16xf32>, vector<16x16xf32> -> vector<16x16xf32>
    %75 = arith.addf %71, %74 : vector<16x16xf32>
    %76 = vector.extract_strided_slice %2 {offsets = [10, 0, 0], sizes = [1, 16, 32], strides = [1, 1, 1]} : vector<16x16x32xf32> to vector<1x16x32xf32>
    %77 = vector.shape_cast %76 : vector<1x16x32xf32> to vector<16x32xf32>
    %cst_26 = arith.constant dense<0.000000e+00> : vector<16x16xf32>
    %78 = tpu.matmul %77, %16, %cst_26 {dimension_numbers = #tpu.dot_dimension_numbers<[1], [0], [0], [1], [0, 0, 1, 1], [], []>} : vector<16x32xf32>, vector<32x16xf32>, vector<16x16xf32> -> vector<16x16xf32>
    %79 = arith.addf %75, %78 : vector<16x16xf32>
    %80 = vector.extract_strided_slice %2 {offsets = [11, 0, 0], sizes = [1, 16, 32], strides = [1, 1, 1]} : vector<16x16x32xf32> to vector<1x16x32xf32>
    %81 = vector.shape_cast %80 : vector<1x16x32xf32> to vector<16x32xf32>
    %cst_27 = arith.constant dense<0.000000e+00> : vector<16x16xf32>
    %82 = tpu.matmul %81, %18, %cst_27 {dimension_numbers = #tpu.dot_dimension_numbers<[1], [0], [0], [1], [0, 0, 1, 1], [], []>} : vector<16x32xf32>, vector<32x16xf32>, vector<16x16xf32> -> vector<16x16xf32>
    %83 = arith.addf %79, %82 : vector<16x16xf32>
    %cst_28 = arith.constant dense<0.000000e+00> : vector<16xf32>
    %84 = vector.multi_reduction <add>, %83, %cst_28 [1] : vector<16x16xf32> to vector<16xf32>
    %85 = vector.shape_cast %84 : vector<16xf32> to vector<16x1xf32>
    %86 = arith.mulf %83, %83 : vector<16x16xf32>
    %cst_29 = arith.constant dense<0.000000e+00> : vector<16xf32>
    %87 = vector.multi_reduction <add>, %86, %cst_29 [1] : vector<16x16xf32> to vector<16xf32>
    %88 = vector.shape_cast %87 : vector<16xf32> to vector<16x1xf32>
    %89 = arith.addf %64, %85 : vector<16x1xf32>
    %90 = arith.addf %65, %88 : vector<16x1xf32>
    %c0_30 = arith.constant 0 : index
    %c2 = arith.constant 2 : index
    %c0_31 = arith.constant 0 : index
    %c0_32 = arith.constant 0 : index
    %91 = vector.load %arg3[%c0_30, %c2, %c0_31, %c0_32] : memref<1x4x16x16xf32, #tpu.memory_space<vmem>>, vector<1x1x16x16xf32>
    %92 = vector.shape_cast %91 : vector<1x1x16x16xf32> to vector<16x16xf32>
    %93 = vector.shape_cast %83 : vector<16x16xf32> to vector<1x1x16x16xf32>
    tpu.vector_store %arg3[%c0_30, %c2, %c0_31, %c0_32], %93 {strides = array<i32>} : memref<1x4x16x16xf32, #tpu.memory_space<vmem>>, vector<1x1x16x16xf32>,
    %94 = vector.extract_strided_slice %2 {offsets = [12, 0, 0], sizes = [1, 16, 32], strides = [1, 1, 1]} : vector<16x16x32xf32> to vector<1x16x32xf32>
    %95 = vector.shape_cast %94 : vector<1x16x32xf32> to vector<16x32xf32>
    %cst_33 = arith.constant dense<0.000000e+00> : vector<16x16xf32>
    %96 = tpu.matmul %95, %12, %cst_33 {dimension_numbers = #tpu.dot_dimension_numbers<[1], [0], [0], [1], [0, 0, 1, 1], [], []>} : vector<16x32xf32>, vector<32x16xf32>, vector<16x16xf32> -> vector<16x16xf32>
    %97 = vector.extract_strided_slice %2 {offsets = [13, 0, 0], sizes = [1, 16, 32], strides = [1, 1, 1]} : vector<16x16x32xf32> to vector<1x16x32xf32>
    %98 = vector.shape_cast %97 : vector<1x16x32xf32> to vector<16x32xf32>
    %cst_34 = arith.constant dense<0.000000e+00> : vector<16x16xf32>
    %99 = tpu.matmul %98, %14, %cst_34 {dimension_numbers = #tpu.dot_dimension_numbers<[1], [0], [0], [1], [0, 0, 1, 1], [], []>} : vector<16x32xf32>, vector<32x16xf32>, vector<16x16xf32> -> vector<16x16xf32>
    %100 = arith.addf %96, %99 : vector<16x16xf32>
    %101 = vector.extract_strided_slice %2 {offsets = [14, 0, 0], sizes = [1, 16, 32], strides = [1, 1, 1]} : vector<16x16x32xf32> to vector<1x16x32xf32>
    %102 = vector.shape_cast %101 : vector<1x16x32xf32> to vector<16x32xf32>
    %cst_35 = arith.constant dense<0.000000e+00> : vector<16x16xf32>
    %103 = tpu.matmul %102, %18, %cst_35 {dimension_numbers = #tpu.dot_dimension_numbers<[1], [0], [0], [1], [0, 0, 1, 1], [], []>} : vector<16x32xf32>, vector<32x16xf32>, vector<16x16xf32> -> vector<16x16xf32>
    %104 = arith.addf %100, %103 : vector<16x16xf32>
    %105 = vector.extract_strided_slice %2 {offsets = [15, 0, 0], sizes = [1, 16, 32], strides = [1, 1, 1]} : vector<16x16x32xf32> to vector<1x16x32xf32>
    %106 = vector.shape_cast %105 : vector<1x16x32xf32> to vector<16x32xf32>
    %cst_36 = arith.constant dense<0.000000e+00> : vector<16x16xf32>
    %107 = tpu.matmul %106, %20, %cst_36 {dimension_numbers = #tpu.dot_dimension_numbers<[1], [0], [0], [1], [0, 0, 1, 1], [], []>} : vector<16x32xf32>, vector<32x16xf32>, vector<16x16xf32> -> vector<16x16xf32>
    %108 = arith.addf %104, %107 : vector<16x16xf32>
    %cst_37 = arith.constant dense<0.000000e+00> : vector<16xf32>
    %109 = vector.multi_reduction <add>, %108, %cst_37 [1] : vector<16x16xf32> to vector<16xf32>
    %110 = vector.shape_cast %109 : vector<16xf32> to vector<16x1xf32>
    %111 = arith.mulf %108, %108 : vector<16x16xf32>
    %cst_38 = arith.constant dense<0.000000e+00> : vector<16xf32>
    %112 = vector.multi_reduction <add>, %111, %cst_38 [1] : vector<16x16xf32> to vector<16xf32>
    %113 = vector.shape_cast %112 : vector<16xf32> to vector<16x1xf32>
    %114 = arith.addf %89, %110 : vector<16x1xf32>
    %115 = arith.addf %90, %113 : vector<16x1xf32>
    %c0_39 = arith.constant 0 : index
    %c3 = arith.constant 3 : index
    %c0_40 = arith.constant 0 : index
    %c0_41 = arith.constant 0 : index
    %116 = vector.load %arg3[%c0_39, %c3, %c0_40, %c0_41] : memref<1x4x16x16xf32, #tpu.memory_space<vmem>>, vector<1x1x16x16xf32>
    %117 = vector.shape_cast %116 : vector<1x1x16x16xf32> to vector<16x16xf32>
    %118 = vector.shape_cast %108 : vector<16x16xf32> to vector<1x1x16x16xf32>
    tpu.vector_store %arg3[%c0_39, %c3, %c0_40, %c0_41], %118 {strides = array<i32>} : memref<1x4x16x16xf32, #tpu.memory_space<vmem>>, vector<1x1x16x16xf32>,
    %119 = tpu.concatenate %114, %115 in 1 : vector<16x1xf32>, vector<16x1xf32> -> vector<16x2xf32>
    %c0_42 = arith.constant 0 : index
    %c0_43 = arith.constant 0 : index
    %c0_44 = arith.constant 0 : index
    %120 = vector.load %arg4[%c0_42, %c0_43, %c0_44] : memref<1x16x2xf32, #tpu.memory_space<vmem>>, vector<1x16x2xf32>
    %121 = vector.shape_cast %120 : vector<1x16x2xf32> to vector<16x2xf32>
    %122 = vector.shape_cast %119 : vector<16x2xf32> to vector<1x16x2xf32>
    tpu.vector_store %arg4[%c0_42, %c0_43, %c0_44], %122 {strides = array<i32>} : memref<1x16x2xf32, #tpu.memory_space<vmem>>, vector<1x16x2xf32>,
    return
  }
  func.func @transform_0(%arg0: i32) -> (i32, i32, i32, i32) {
    %c0_i32 = arith.constant 0 : i32
    %c0_i32_0 = arith.constant 0 : i32
    %c0_i32_1 = arith.constant 0 : i32
    %c0_i32_2 = arith.constant 0 : i32
    return %arg0, %c0_i32, %c0_i32_0, %c0_i32_1 : i32, i32, i32, i32
  }
  func.func @transform_1(%arg0: i32) -> (i32, i32, i32) {
    %c0_i32 = arith.constant 0 : i32
    %c0_i32_0 = arith.constant 0 : i32
    %c0_i32_1 = arith.constant 0 : i32
    %c0_i32_2 = arith.constant 0 : i32
    return %c0_i32, %c0_i32_0, %c0_i32_1 : i32, i32, i32
  }
  func.func @transform_2(%arg0: i32) -> (i32, i32, i32, i32) {
    %c0_i32 = arith.constant 0 : i32
    %c0_i32_0 = arith.constant 0 : i32
    %c0_i32_1 = arith.constant 0 : i32
    %c0_i32_2 = arith.constant 0 : i32
    return %arg0, %c0_i32, %c0_i32_0, %c0_i32_1 : i32, i32, i32, i32
  }
  func.func @transform_3(%arg0: i32) -> (i32, i32, i32) {
    %c0_i32 = arith.constant 0 : i32
    %c0_i32_0 = arith.constant 0 : i32
    %c0_i32_1 = arith.constant 0 : i32
    return %arg0, %c0_i32, %c0_i32_0 : i32, i32, i32
  }
}

module attributes {stable_mosaic.version = 11 : i64} {
  func.func @_deconv_kernel(%arg0: i32, %arg1: memref<1x3x16x160xf32, #tpu.memory_space<vmem>>, %arg2: memref<16x8x16xf32, #tpu.memory_space<vmem>>, %arg3: memref<1x4x8x128xf32, #tpu.memory_space<vmem>>, %arg4: memref<1x8x2xf32, #tpu.memory_space<vmem>>) attributes {dimension_semantics = [#tpu.dimension_semantics<parallel>], iteration_bounds = array<i64: 1>, scalar_prefetch = 0 : i64, scratch_operands = 0 : i64, tpu.core_type = #tpu.core_type<tc>, window_params = [{transform_indices = @transform_0, window_bounds = array<i64: 1, 3, 16, 160>}, {pipeline_mode = #tpu.pipeline_mode<synchronous>, transform_indices = @transform_1, window_bounds = array<i64: 16, 8, 16>}, {transform_indices = @transform_2, window_bounds = array<i64: 1, 4, 8, 128>}, {transform_indices = @transform_3, window_bounds = array<i64: 1, 8, 2>}]} {
    %c0 = arith.constant 0 : index
    %c0_0 = arith.constant 0 : index
    %c0_1 = arith.constant 0 : index
    %c0_2 = arith.constant 0 : index
    %0 = vector.load %arg1[%c0, %c0_0, %c0_1, %c0_2] : memref<1x3x16x160xf32, #tpu.memory_space<vmem>>, vector<1x3x16x160xf32>
    %1 = vector.shape_cast %0 : vector<1x3x16x160xf32> to vector<3x16x160xf32>
    %c0_3 = arith.constant 0 : index
    %c0_4 = arith.constant 0 : index
    %c0_5 = arith.constant 0 : index
    %2 = vector.load %arg2[%c0_3, %c0_4, %c0_5] : memref<16x8x16xf32, #tpu.memory_space<vmem>>, vector<16x8x16xf32>
    %3 = vector.extract_strided_slice %1 {offsets = [0, 0, 0], sizes = [1, 16, 128], strides = [1, 1, 1]} : vector<3x16x160xf32> to vector<1x16x128xf32>
    %4 = vector.shape_cast %3 : vector<1x16x128xf32> to vector<16x128xf32>
    %5 = vector.extract_strided_slice %1 {offsets = [1, 0, 0], sizes = [1, 16, 128], strides = [1, 1, 1]} : vector<3x16x160xf32> to vector<1x16x128xf32>
    %6 = vector.shape_cast %5 : vector<1x16x128xf32> to vector<16x128xf32>
    %7 = vector.extract_strided_slice %1 {offsets = [2, 0, 0], sizes = [1, 16, 128], strides = [1, 1, 1]} : vector<3x16x160xf32> to vector<1x16x128xf32>
    %8 = vector.shape_cast %7 : vector<1x16x128xf32> to vector<16x128xf32>
    %9 = vector.extract_strided_slice %1 {offsets = [0, 0, 16], sizes = [1, 16, 128], strides = [1, 1, 1]} : vector<3x16x160xf32> to vector<1x16x128xf32>
    %10 = vector.shape_cast %9 : vector<1x16x128xf32> to vector<16x128xf32>
    %11 = vector.extract_strided_slice %1 {offsets = [1, 0, 16], sizes = [1, 16, 128], strides = [1, 1, 1]} : vector<3x16x160xf32> to vector<1x16x128xf32>
    %12 = vector.shape_cast %11 : vector<1x16x128xf32> to vector<16x128xf32>
    %13 = vector.extract_strided_slice %1 {offsets = [2, 0, 16], sizes = [1, 16, 128], strides = [1, 1, 1]} : vector<3x16x160xf32> to vector<1x16x128xf32>
    %14 = vector.shape_cast %13 : vector<1x16x128xf32> to vector<16x128xf32>
    %15 = vector.extract_strided_slice %1 {offsets = [0, 0, 32], sizes = [1, 16, 128], strides = [1, 1, 1]} : vector<3x16x160xf32> to vector<1x16x128xf32>
    %16 = vector.shape_cast %15 : vector<1x16x128xf32> to vector<16x128xf32>
    %17 = vector.extract_strided_slice %1 {offsets = [1, 0, 32], sizes = [1, 16, 128], strides = [1, 1, 1]} : vector<3x16x160xf32> to vector<1x16x128xf32>
    %18 = vector.shape_cast %17 : vector<1x16x128xf32> to vector<16x128xf32>
    %19 = vector.extract_strided_slice %1 {offsets = [2, 0, 32], sizes = [1, 16, 128], strides = [1, 1, 1]} : vector<3x16x160xf32> to vector<1x16x128xf32>
    %20 = vector.shape_cast %19 : vector<1x16x128xf32> to vector<16x128xf32>
    %21 = vector.extract_strided_slice %2 {offsets = [0, 0, 0], sizes = [1, 8, 16], strides = [1, 1, 1]} : vector<16x8x16xf32> to vector<1x8x16xf32>
    %22 = vector.shape_cast %21 : vector<1x8x16xf32> to vector<8x16xf32>
    %cst = arith.constant dense<0.000000e+00> : vector<8x128xf32>
    %23 = tpu.matmul %22, %4, %cst {dimension_numbers = #tpu.dot_dimension_numbers<[1], [0], [0], [1], [0, 0, 1, 1], [], []>} : vector<8x16xf32>, vector<16x128xf32>, vector<8x128xf32> -> vector<8x128xf32>
    %24 = vector.extract_strided_slice %2 {offsets = [1, 0, 0], sizes = [1, 8, 16], strides = [1, 1, 1]} : vector<16x8x16xf32> to vector<1x8x16xf32>
    %25 = vector.shape_cast %24 : vector<1x8x16xf32> to vector<8x16xf32>
    %cst_6 = arith.constant dense<0.000000e+00> : vector<8x128xf32>
    %26 = tpu.matmul %25, %6, %cst_6 {dimension_numbers = #tpu.dot_dimension_numbers<[1], [0], [0], [1], [0, 0, 1, 1], [], []>} : vector<8x16xf32>, vector<16x128xf32>, vector<8x128xf32> -> vector<8x128xf32>
    %27 = arith.addf %23, %26 : vector<8x128xf32>
    %28 = vector.extract_strided_slice %2 {offsets = [2, 0, 0], sizes = [1, 8, 16], strides = [1, 1, 1]} : vector<16x8x16xf32> to vector<1x8x16xf32>
    %29 = vector.shape_cast %28 : vector<1x8x16xf32> to vector<8x16xf32>
    %cst_7 = arith.constant dense<0.000000e+00> : vector<8x128xf32>
    %30 = tpu.matmul %29, %10, %cst_7 {dimension_numbers = #tpu.dot_dimension_numbers<[1], [0], [0], [1], [0, 0, 1, 1], [], []>} : vector<8x16xf32>, vector<16x128xf32>, vector<8x128xf32> -> vector<8x128xf32>
    %31 = arith.addf %27, %30 : vector<8x128xf32>
    %32 = vector.extract_strided_slice %2 {offsets = [3, 0, 0], sizes = [1, 8, 16], strides = [1, 1, 1]} : vector<16x8x16xf32> to vector<1x8x16xf32>
    %33 = vector.shape_cast %32 : vector<1x8x16xf32> to vector<8x16xf32>
    %cst_8 = arith.constant dense<0.000000e+00> : vector<8x128xf32>
    %34 = tpu.matmul %33, %12, %cst_8 {dimension_numbers = #tpu.dot_dimension_numbers<[1], [0], [0], [1], [0, 0, 1, 1], [], []>} : vector<8x16xf32>, vector<16x128xf32>, vector<8x128xf32> -> vector<8x128xf32>
    %35 = arith.addf %31, %34 : vector<8x128xf32>
    %cst_9 = arith.constant dense<0.000000e+00> : vector<8xf32>
    %36 = vector.multi_reduction <add>, %35, %cst_9 [1] : vector<8x128xf32> to vector<8xf32>
    %37 = vector.shape_cast %36 : vector<8xf32> to vector<8x1xf32>
    %38 = arith.mulf %35, %35 : vector<8x128xf32>
    %cst_10 = arith.constant dense<0.000000e+00> : vector<8xf32>
    %39 = vector.multi_reduction <add>, %38, %cst_10 [1] : vector<8x128xf32> to vector<8xf32>
    %40 = vector.shape_cast %39 : vector<8xf32> to vector<8x1xf32>
    %c0_11 = arith.constant 0 : index
    %c0_12 = arith.constant 0 : index
    %c0_13 = arith.constant 0 : index
    %c0_14 = arith.constant 0 : index
    %41 = vector.load %arg3[%c0_11, %c0_12, %c0_13, %c0_14] : memref<1x4x8x128xf32, #tpu.memory_space<vmem>>, vector<1x1x8x128xf32>
    %42 = vector.shape_cast %41 : vector<1x1x8x128xf32> to vector<8x128xf32>
    %43 = vector.shape_cast %35 : vector<8x128xf32> to vector<1x1x8x128xf32>
    tpu.vector_store %arg3[%c0_11, %c0_12, %c0_13, %c0_14], %43 {strides = array<i32>} : memref<1x4x8x128xf32, #tpu.memory_space<vmem>>, vector<1x1x8x128xf32>,
    %44 = vector.extract_strided_slice %2 {offsets = [4, 0, 0], sizes = [1, 8, 16], strides = [1, 1, 1]} : vector<16x8x16xf32> to vector<1x8x16xf32>
    %45 = vector.shape_cast %44 : vector<1x8x16xf32> to vector<8x16xf32>
    %cst_15 = arith.constant dense<0.000000e+00> : vector<8x128xf32>
    %46 = tpu.matmul %45, %6, %cst_15 {dimension_numbers = #tpu.dot_dimension_numbers<[1], [0], [0], [1], [0, 0, 1, 1], [], []>} : vector<8x16xf32>, vector<16x128xf32>, vector<8x128xf32> -> vector<8x128xf32>
    %47 = vector.extract_strided_slice %2 {offsets = [5, 0, 0], sizes = [1, 8, 16], strides = [1, 1, 1]} : vector<16x8x16xf32> to vector<1x8x16xf32>
    %48 = vector.shape_cast %47 : vector<1x8x16xf32> to vector<8x16xf32>
    %cst_16 = arith.constant dense<0.000000e+00> : vector<8x128xf32>
    %49 = tpu.matmul %48, %8, %cst_16 {dimension_numbers = #tpu.dot_dimension_numbers<[1], [0], [0], [1], [0, 0, 1, 1], [], []>} : vector<8x16xf32>, vector<16x128xf32>, vector<8x128xf32> -> vector<8x128xf32>
    %50 = arith.addf %46, %49 : vector<8x128xf32>
    %51 = vector.extract_strided_slice %2 {offsets = [6, 0, 0], sizes = [1, 8, 16], strides = [1, 1, 1]} : vector<16x8x16xf32> to vector<1x8x16xf32>
    %52 = vector.shape_cast %51 : vector<1x8x16xf32> to vector<8x16xf32>
    %cst_17 = arith.constant dense<0.000000e+00> : vector<8x128xf32>
    %53 = tpu.matmul %52, %12, %cst_17 {dimension_numbers = #tpu.dot_dimension_numbers<[1], [0], [0], [1], [0, 0, 1, 1], [], []>} : vector<8x16xf32>, vector<16x128xf32>, vector<8x128xf32> -> vector<8x128xf32>
    %54 = arith.addf %50, %53 : vector<8x128xf32>
    %55 = vector.extract_strided_slice %2 {offsets = [7, 0, 0], sizes = [1, 8, 16], strides = [1, 1, 1]} : vector<16x8x16xf32> to vector<1x8x16xf32>
    %56 = vector.shape_cast %55 : vector<1x8x16xf32> to vector<8x16xf32>
    %cst_18 = arith.constant dense<0.000000e+00> : vector<8x128xf32>
    %57 = tpu.matmul %56, %14, %cst_18 {dimension_numbers = #tpu.dot_dimension_numbers<[1], [0], [0], [1], [0, 0, 1, 1], [], []>} : vector<8x16xf32>, vector<16x128xf32>, vector<8x128xf32> -> vector<8x128xf32>
    %58 = arith.addf %54, %57 : vector<8x128xf32>
    %cst_19 = arith.constant dense<0.000000e+00> : vector<8xf32>
    %59 = vector.multi_reduction <add>, %58, %cst_19 [1] : vector<8x128xf32> to vector<8xf32>
    %60 = vector.shape_cast %59 : vector<8xf32> to vector<8x1xf32>
    %61 = arith.mulf %58, %58 : vector<8x128xf32>
    %cst_20 = arith.constant dense<0.000000e+00> : vector<8xf32>
    %62 = vector.multi_reduction <add>, %61, %cst_20 [1] : vector<8x128xf32> to vector<8xf32>
    %63 = vector.shape_cast %62 : vector<8xf32> to vector<8x1xf32>
    %64 = arith.addf %37, %60 : vector<8x1xf32>
    %65 = arith.addf %40, %63 : vector<8x1xf32>
    %c0_21 = arith.constant 0 : index
    %c1 = arith.constant 1 : index
    %c0_22 = arith.constant 0 : index
    %c0_23 = arith.constant 0 : index
    %66 = vector.load %arg3[%c0_21, %c1, %c0_22, %c0_23] : memref<1x4x8x128xf32, #tpu.memory_space<vmem>>, vector<1x1x8x128xf32>
    %67 = vector.shape_cast %66 : vector<1x1x8x128xf32> to vector<8x128xf32>
    %68 = vector.shape_cast %58 : vector<8x128xf32> to vector<1x1x8x128xf32>
    tpu.vector_store %arg3[%c0_21, %c1, %c0_22, %c0_23], %68 {strides = array<i32>} : memref<1x4x8x128xf32, #tpu.memory_space<vmem>>, vector<1x1x8x128xf32>,
    %69 = vector.extract_strided_slice %2 {offsets = [8, 0, 0], sizes = [1, 8, 16], strides = [1, 1, 1]} : vector<16x8x16xf32> to vector<1x8x16xf32>
    %70 = vector.shape_cast %69 : vector<1x8x16xf32> to vector<8x16xf32>
    %cst_24 = arith.constant dense<0.000000e+00> : vector<8x128xf32>
    %71 = tpu.matmul %70, %10, %cst_24 {dimension_numbers = #tpu.dot_dimension_numbers<[1], [0], [0], [1], [0, 0, 1, 1], [], []>} : vector<8x16xf32>, vector<16x128xf32>, vector<8x128xf32> -> vector<8x128xf32>
    %72 = vector.extract_strided_slice %2 {offsets = [9, 0, 0], sizes = [1, 8, 16], strides = [1, 1, 1]} : vector<16x8x16xf32> to vector<1x8x16xf32>
    %73 = vector.shape_cast %72 : vector<1x8x16xf32> to vector<8x16xf32>
    %cst_25 = arith.constant dense<0.000000e+00> : vector<8x128xf32>
    %74 = tpu.matmul %73, %12, %cst_25 {dimension_numbers = #tpu.dot_dimension_numbers<[1], [0], [0], [1], [0, 0, 1, 1], [], []>} : vector<8x16xf32>, vector<16x128xf32>, vector<8x128xf32> -> vector<8x128xf32>
    %75 = arith.addf %71, %74 : vector<8x128xf32>
    %76 = vector.extract_strided_slice %2 {offsets = [10, 0, 0], sizes = [1, 8, 16], strides = [1, 1, 1]} : vector<16x8x16xf32> to vector<1x8x16xf32>
    %77 = vector.shape_cast %76 : vector<1x8x16xf32> to vector<8x16xf32>
    %cst_26 = arith.constant dense<0.000000e+00> : vector<8x128xf32>
    %78 = tpu.matmul %77, %16, %cst_26 {dimension_numbers = #tpu.dot_dimension_numbers<[1], [0], [0], [1], [0, 0, 1, 1], [], []>} : vector<8x16xf32>, vector<16x128xf32>, vector<8x128xf32> -> vector<8x128xf32>
    %79 = arith.addf %75, %78 : vector<8x128xf32>
    %80 = vector.extract_strided_slice %2 {offsets = [11, 0, 0], sizes = [1, 8, 16], strides = [1, 1, 1]} : vector<16x8x16xf32> to vector<1x8x16xf32>
    %81 = vector.shape_cast %80 : vector<1x8x16xf32> to vector<8x16xf32>
    %cst_27 = arith.constant dense<0.000000e+00> : vector<8x128xf32>
    %82 = tpu.matmul %81, %18, %cst_27 {dimension_numbers = #tpu.dot_dimension_numbers<[1], [0], [0], [1], [0, 0, 1, 1], [], []>} : vector<8x16xf32>, vector<16x128xf32>, vector<8x128xf32> -> vector<8x128xf32>
    %83 = arith.addf %79, %82 : vector<8x128xf32>
    %cst_28 = arith.constant dense<0.000000e+00> : vector<8xf32>
    %84 = vector.multi_reduction <add>, %83, %cst_28 [1] : vector<8x128xf32> to vector<8xf32>
    %85 = vector.shape_cast %84 : vector<8xf32> to vector<8x1xf32>
    %86 = arith.mulf %83, %83 : vector<8x128xf32>
    %cst_29 = arith.constant dense<0.000000e+00> : vector<8xf32>
    %87 = vector.multi_reduction <add>, %86, %cst_29 [1] : vector<8x128xf32> to vector<8xf32>
    %88 = vector.shape_cast %87 : vector<8xf32> to vector<8x1xf32>
    %89 = arith.addf %64, %85 : vector<8x1xf32>
    %90 = arith.addf %65, %88 : vector<8x1xf32>
    %c0_30 = arith.constant 0 : index
    %c2 = arith.constant 2 : index
    %c0_31 = arith.constant 0 : index
    %c0_32 = arith.constant 0 : index
    %91 = vector.load %arg3[%c0_30, %c2, %c0_31, %c0_32] : memref<1x4x8x128xf32, #tpu.memory_space<vmem>>, vector<1x1x8x128xf32>
    %92 = vector.shape_cast %91 : vector<1x1x8x128xf32> to vector<8x128xf32>
    %93 = vector.shape_cast %83 : vector<8x128xf32> to vector<1x1x8x128xf32>
    tpu.vector_store %arg3[%c0_30, %c2, %c0_31, %c0_32], %93 {strides = array<i32>} : memref<1x4x8x128xf32, #tpu.memory_space<vmem>>, vector<1x1x8x128xf32>,
    %94 = vector.extract_strided_slice %2 {offsets = [12, 0, 0], sizes = [1, 8, 16], strides = [1, 1, 1]} : vector<16x8x16xf32> to vector<1x8x16xf32>
    %95 = vector.shape_cast %94 : vector<1x8x16xf32> to vector<8x16xf32>
    %cst_33 = arith.constant dense<0.000000e+00> : vector<8x128xf32>
    %96 = tpu.matmul %95, %12, %cst_33 {dimension_numbers = #tpu.dot_dimension_numbers<[1], [0], [0], [1], [0, 0, 1, 1], [], []>} : vector<8x16xf32>, vector<16x128xf32>, vector<8x128xf32> -> vector<8x128xf32>
    %97 = vector.extract_strided_slice %2 {offsets = [13, 0, 0], sizes = [1, 8, 16], strides = [1, 1, 1]} : vector<16x8x16xf32> to vector<1x8x16xf32>
    %98 = vector.shape_cast %97 : vector<1x8x16xf32> to vector<8x16xf32>
    %cst_34 = arith.constant dense<0.000000e+00> : vector<8x128xf32>
    %99 = tpu.matmul %98, %14, %cst_34 {dimension_numbers = #tpu.dot_dimension_numbers<[1], [0], [0], [1], [0, 0, 1, 1], [], []>} : vector<8x16xf32>, vector<16x128xf32>, vector<8x128xf32> -> vector<8x128xf32>
    %100 = arith.addf %96, %99 : vector<8x128xf32>
    %101 = vector.extract_strided_slice %2 {offsets = [14, 0, 0], sizes = [1, 8, 16], strides = [1, 1, 1]} : vector<16x8x16xf32> to vector<1x8x16xf32>
    %102 = vector.shape_cast %101 : vector<1x8x16xf32> to vector<8x16xf32>
    %cst_35 = arith.constant dense<0.000000e+00> : vector<8x128xf32>
    %103 = tpu.matmul %102, %18, %cst_35 {dimension_numbers = #tpu.dot_dimension_numbers<[1], [0], [0], [1], [0, 0, 1, 1], [], []>} : vector<8x16xf32>, vector<16x128xf32>, vector<8x128xf32> -> vector<8x128xf32>
    %104 = arith.addf %100, %103 : vector<8x128xf32>
    %105 = vector.extract_strided_slice %2 {offsets = [15, 0, 0], sizes = [1, 8, 16], strides = [1, 1, 1]} : vector<16x8x16xf32> to vector<1x8x16xf32>
    %106 = vector.shape_cast %105 : vector<1x8x16xf32> to vector<8x16xf32>
    %cst_36 = arith.constant dense<0.000000e+00> : vector<8x128xf32>
    %107 = tpu.matmul %106, %20, %cst_36 {dimension_numbers = #tpu.dot_dimension_numbers<[1], [0], [0], [1], [0, 0, 1, 1], [], []>} : vector<8x16xf32>, vector<16x128xf32>, vector<8x128xf32> -> vector<8x128xf32>
    %108 = arith.addf %104, %107 : vector<8x128xf32>
    %cst_37 = arith.constant dense<0.000000e+00> : vector<8xf32>
    %109 = vector.multi_reduction <add>, %108, %cst_37 [1] : vector<8x128xf32> to vector<8xf32>
    %110 = vector.shape_cast %109 : vector<8xf32> to vector<8x1xf32>
    %111 = arith.mulf %108, %108 : vector<8x128xf32>
    %cst_38 = arith.constant dense<0.000000e+00> : vector<8xf32>
    %112 = vector.multi_reduction <add>, %111, %cst_38 [1] : vector<8x128xf32> to vector<8xf32>
    %113 = vector.shape_cast %112 : vector<8xf32> to vector<8x1xf32>
    %114 = arith.addf %89, %110 : vector<8x1xf32>
    %115 = arith.addf %90, %113 : vector<8x1xf32>
    %c0_39 = arith.constant 0 : index
    %c3 = arith.constant 3 : index
    %c0_40 = arith.constant 0 : index
    %c0_41 = arith.constant 0 : index
    %116 = vector.load %arg3[%c0_39, %c3, %c0_40, %c0_41] : memref<1x4x8x128xf32, #tpu.memory_space<vmem>>, vector<1x1x8x128xf32>
    %117 = vector.shape_cast %116 : vector<1x1x8x128xf32> to vector<8x128xf32>
    %118 = vector.shape_cast %108 : vector<8x128xf32> to vector<1x1x8x128xf32>
    tpu.vector_store %arg3[%c0_39, %c3, %c0_40, %c0_41], %118 {strides = array<i32>} : memref<1x4x8x128xf32, #tpu.memory_space<vmem>>, vector<1x1x8x128xf32>,
    %119 = tpu.concatenate %114, %115 in 1 : vector<8x1xf32>, vector<8x1xf32> -> vector<8x2xf32>
    %c0_42 = arith.constant 0 : index
    %c0_43 = arith.constant 0 : index
    %c0_44 = arith.constant 0 : index
    %120 = vector.load %arg4[%c0_42, %c0_43, %c0_44] : memref<1x8x2xf32, #tpu.memory_space<vmem>>, vector<1x8x2xf32>
    %121 = vector.shape_cast %120 : vector<1x8x2xf32> to vector<8x2xf32>
    %122 = vector.shape_cast %119 : vector<8x2xf32> to vector<1x8x2xf32>
    tpu.vector_store %arg4[%c0_42, %c0_43, %c0_44], %122 {strides = array<i32>} : memref<1x8x2xf32, #tpu.memory_space<vmem>>, vector<1x8x2xf32>,
    return
  }
  func.func @transform_0(%arg0: i32) -> (i32, i32, i32, i32) {
    %c0_i32 = arith.constant 0 : i32
    %c0_i32_0 = arith.constant 0 : i32
    %c0_i32_1 = arith.constant 0 : i32
    %c0_i32_2 = arith.constant 0 : i32
    return %arg0, %c0_i32, %c0_i32_0, %c0_i32_1 : i32, i32, i32, i32
  }
  func.func @transform_1(%arg0: i32) -> (i32, i32, i32) {
    %c0_i32 = arith.constant 0 : i32
    %c0_i32_0 = arith.constant 0 : i32
    %c0_i32_1 = arith.constant 0 : i32
    %c0_i32_2 = arith.constant 0 : i32
    return %c0_i32, %c0_i32_0, %c0_i32_1 : i32, i32, i32
  }
  func.func @transform_2(%arg0: i32) -> (i32, i32, i32, i32) {
    %c0_i32 = arith.constant 0 : i32
    %c0_i32_0 = arith.constant 0 : i32
    %c0_i32_1 = arith.constant 0 : i32
    %c0_i32_2 = arith.constant 0 : i32
    return %arg0, %c0_i32, %c0_i32_0, %c0_i32_1 : i32, i32, i32, i32
  }
  func.func @transform_3(%arg0: i32) -> (i32, i32, i32) {
    %c0_i32 = arith.constant 0 : i32
    %c0_i32_0 = arith.constant 0 : i32
    %c0_i32_1 = arith.constant 0 : i32
    return %arg0, %c0_i32, %c0_i32_0 : i32, i32, i32
  }
}

module attributes {stable_mosaic.version = 11 : i64} {
  func.func @_deconv_kernel(%arg0: i32, %arg1: memref<1x3x8x320xf32, #tpu.memory_space<vmem>>, %arg2: memref<16x3x8xf32, #tpu.memory_space<vmem>>, %arg3: memref<1x4x3x256xf32, #tpu.memory_space<vmem>>) attributes {dimension_semantics = [#tpu.dimension_semantics<parallel>], iteration_bounds = array<i64: 2>, scalar_prefetch = 0 : i64, scratch_operands = 0 : i64, tpu.core_type = #tpu.core_type<tc>, window_params = [{transform_indices = @transform_0, window_bounds = array<i64: 1, 3, 8, 320>}, {pipeline_mode = #tpu.pipeline_mode<synchronous>, transform_indices = @transform_1, window_bounds = array<i64: 16, 3, 8>}, {transform_indices = @transform_2, window_bounds = array<i64: 1, 4, 3, 256>}]} {
    %c0 = arith.constant 0 : index
    %c0_0 = arith.constant 0 : index
    %c0_1 = arith.constant 0 : index
    %c0_2 = arith.constant 0 : index
    %0 = vector.load %arg1[%c0, %c0_0, %c0_1, %c0_2] : memref<1x3x8x320xf32, #tpu.memory_space<vmem>>, vector<1x3x8x320xf32>
    %1 = vector.shape_cast %0 : vector<1x3x8x320xf32> to vector<3x8x320xf32>
    %c0_3 = arith.constant 0 : index
    %c0_4 = arith.constant 0 : index
    %c0_5 = arith.constant 0 : index
    %2 = vector.load %arg2[%c0_3, %c0_4, %c0_5] : memref<16x3x8xf32, #tpu.memory_space<vmem>>, vector<16x3x8xf32>
    %3 = vector.extract_strided_slice %1 {offsets = [0, 0, 0], sizes = [1, 8, 256], strides = [1, 1, 1]} : vector<3x8x320xf32> to vector<1x8x256xf32>
    %4 = vector.shape_cast %3 : vector<1x8x256xf32> to vector<8x256xf32>
    %5 = vector.extract_strided_slice %1 {offsets = [1, 0, 0], sizes = [1, 8, 256], strides = [1, 1, 1]} : vector<3x8x320xf32> to vector<1x8x256xf32>
    %6 = vector.shape_cast %5 : vector<1x8x256xf32> to vector<8x256xf32>
    %7 = vector.extract_strided_slice %1 {offsets = [2, 0, 0], sizes = [1, 8, 256], strides = [1, 1, 1]} : vector<3x8x320xf32> to vector<1x8x256xf32>
    %8 = vector.shape_cast %7 : vector<1x8x256xf32> to vector<8x256xf32>
    %9 = vector.extract_strided_slice %1 {offsets = [0, 0, 32], sizes = [1, 8, 256], strides = [1, 1, 1]} : vector<3x8x320xf32> to vector<1x8x256xf32>
    %10 = vector.shape_cast %9 : vector<1x8x256xf32> to vector<8x256xf32>
    %11 = vector.extract_strided_slice %1 {offsets = [1, 0, 32], sizes = [1, 8, 256], strides = [1, 1, 1]} : vector<3x8x320xf32> to vector<1x8x256xf32>
    %12 = vector.shape_cast %11 : vector<1x8x256xf32> to vector<8x256xf32>
    %13 = vector.extract_strided_slice %1 {offsets = [2, 0, 32], sizes = [1, 8, 256], strides = [1, 1, 1]} : vector<3x8x320xf32> to vector<1x8x256xf32>
    %14 = vector.shape_cast %13 : vector<1x8x256xf32> to vector<8x256xf32>
    %15 = vector.extract_strided_slice %1 {offsets = [0, 0, 64], sizes = [1, 8, 256], strides = [1, 1, 1]} : vector<3x8x320xf32> to vector<1x8x256xf32>
    %16 = vector.shape_cast %15 : vector<1x8x256xf32> to vector<8x256xf32>
    %17 = vector.extract_strided_slice %1 {offsets = [1, 0, 64], sizes = [1, 8, 256], strides = [1, 1, 1]} : vector<3x8x320xf32> to vector<1x8x256xf32>
    %18 = vector.shape_cast %17 : vector<1x8x256xf32> to vector<8x256xf32>
    %19 = vector.extract_strided_slice %1 {offsets = [2, 0, 64], sizes = [1, 8, 256], strides = [1, 1, 1]} : vector<3x8x320xf32> to vector<1x8x256xf32>
    %20 = vector.shape_cast %19 : vector<1x8x256xf32> to vector<8x256xf32>
    %21 = vector.extract_strided_slice %2 {offsets = [0, 0, 0], sizes = [1, 3, 8], strides = [1, 1, 1]} : vector<16x3x8xf32> to vector<1x3x8xf32>
    %22 = vector.shape_cast %21 : vector<1x3x8xf32> to vector<3x8xf32>
    %cst = arith.constant dense<0.000000e+00> : vector<3x256xf32>
    %23 = tpu.matmul %22, %4, %cst {dimension_numbers = #tpu.dot_dimension_numbers<[1], [0], [0], [1], [0, 0, 1, 1], [], []>} : vector<3x8xf32>, vector<8x256xf32>, vector<3x256xf32> -> vector<3x256xf32>
    %24 = vector.extract_strided_slice %2 {offsets = [1, 0, 0], sizes = [1, 3, 8], strides = [1, 1, 1]} : vector<16x3x8xf32> to vector<1x3x8xf32>
    %25 = vector.shape_cast %24 : vector<1x3x8xf32> to vector<3x8xf32>
    %cst_6 = arith.constant dense<0.000000e+00> : vector<3x256xf32>
    %26 = tpu.matmul %25, %6, %cst_6 {dimension_numbers = #tpu.dot_dimension_numbers<[1], [0], [0], [1], [0, 0, 1, 1], [], []>} : vector<3x8xf32>, vector<8x256xf32>, vector<3x256xf32> -> vector<3x256xf32>
    %27 = arith.addf %23, %26 : vector<3x256xf32>
    %28 = vector.extract_strided_slice %2 {offsets = [2, 0, 0], sizes = [1, 3, 8], strides = [1, 1, 1]} : vector<16x3x8xf32> to vector<1x3x8xf32>
    %29 = vector.shape_cast %28 : vector<1x3x8xf32> to vector<3x8xf32>
    %cst_7 = arith.constant dense<0.000000e+00> : vector<3x256xf32>
    %30 = tpu.matmul %29, %10, %cst_7 {dimension_numbers = #tpu.dot_dimension_numbers<[1], [0], [0], [1], [0, 0, 1, 1], [], []>} : vector<3x8xf32>, vector<8x256xf32>, vector<3x256xf32> -> vector<3x256xf32>
    %31 = arith.addf %27, %30 : vector<3x256xf32>
    %32 = vector.extract_strided_slice %2 {offsets = [3, 0, 0], sizes = [1, 3, 8], strides = [1, 1, 1]} : vector<16x3x8xf32> to vector<1x3x8xf32>
    %33 = vector.shape_cast %32 : vector<1x3x8xf32> to vector<3x8xf32>
    %cst_8 = arith.constant dense<0.000000e+00> : vector<3x256xf32>
    %34 = tpu.matmul %33, %12, %cst_8 {dimension_numbers = #tpu.dot_dimension_numbers<[1], [0], [0], [1], [0, 0, 1, 1], [], []>} : vector<3x8xf32>, vector<8x256xf32>, vector<3x256xf32> -> vector<3x256xf32>
    %35 = arith.addf %31, %34 : vector<3x256xf32>
    %36 = math.tanh %35 : vector<3x256xf32>
    %c0_9 = arith.constant 0 : index
    %c0_10 = arith.constant 0 : index
    %c0_11 = arith.constant 0 : index
    %c0_12 = arith.constant 0 : index
    %37 = vector.load %arg3[%c0_9, %c0_10, %c0_11, %c0_12] : memref<1x4x3x256xf32, #tpu.memory_space<vmem>>, vector<1x1x3x256xf32>
    %38 = vector.shape_cast %37 : vector<1x1x3x256xf32> to vector<3x256xf32>
    %39 = vector.shape_cast %36 : vector<3x256xf32> to vector<1x1x3x256xf32>
    tpu.vector_store %arg3[%c0_9, %c0_10, %c0_11, %c0_12], %39 {strides = array<i32>} : memref<1x4x3x256xf32, #tpu.memory_space<vmem>>, vector<1x1x3x256xf32>,
    %40 = vector.extract_strided_slice %2 {offsets = [4, 0, 0], sizes = [1, 3, 8], strides = [1, 1, 1]} : vector<16x3x8xf32> to vector<1x3x8xf32>
    %41 = vector.shape_cast %40 : vector<1x3x8xf32> to vector<3x8xf32>
    %cst_13 = arith.constant dense<0.000000e+00> : vector<3x256xf32>
    %42 = tpu.matmul %41, %6, %cst_13 {dimension_numbers = #tpu.dot_dimension_numbers<[1], [0], [0], [1], [0, 0, 1, 1], [], []>} : vector<3x8xf32>, vector<8x256xf32>, vector<3x256xf32> -> vector<3x256xf32>
    %43 = vector.extract_strided_slice %2 {offsets = [5, 0, 0], sizes = [1, 3, 8], strides = [1, 1, 1]} : vector<16x3x8xf32> to vector<1x3x8xf32>
    %44 = vector.shape_cast %43 : vector<1x3x8xf32> to vector<3x8xf32>
    %cst_14 = arith.constant dense<0.000000e+00> : vector<3x256xf32>
    %45 = tpu.matmul %44, %8, %cst_14 {dimension_numbers = #tpu.dot_dimension_numbers<[1], [0], [0], [1], [0, 0, 1, 1], [], []>} : vector<3x8xf32>, vector<8x256xf32>, vector<3x256xf32> -> vector<3x256xf32>
    %46 = arith.addf %42, %45 : vector<3x256xf32>
    %47 = vector.extract_strided_slice %2 {offsets = [6, 0, 0], sizes = [1, 3, 8], strides = [1, 1, 1]} : vector<16x3x8xf32> to vector<1x3x8xf32>
    %48 = vector.shape_cast %47 : vector<1x3x8xf32> to vector<3x8xf32>
    %cst_15 = arith.constant dense<0.000000e+00> : vector<3x256xf32>
    %49 = tpu.matmul %48, %12, %cst_15 {dimension_numbers = #tpu.dot_dimension_numbers<[1], [0], [0], [1], [0, 0, 1, 1], [], []>} : vector<3x8xf32>, vector<8x256xf32>, vector<3x256xf32> -> vector<3x256xf32>
    %50 = arith.addf %46, %49 : vector<3x256xf32>
    %51 = vector.extract_strided_slice %2 {offsets = [7, 0, 0], sizes = [1, 3, 8], strides = [1, 1, 1]} : vector<16x3x8xf32> to vector<1x3x8xf32>
    %52 = vector.shape_cast %51 : vector<1x3x8xf32> to vector<3x8xf32>
    %cst_16 = arith.constant dense<0.000000e+00> : vector<3x256xf32>
    %53 = tpu.matmul %52, %14, %cst_16 {dimension_numbers = #tpu.dot_dimension_numbers<[1], [0], [0], [1], [0, 0, 1, 1], [], []>} : vector<3x8xf32>, vector<8x256xf32>, vector<3x256xf32> -> vector<3x256xf32>
    %54 = arith.addf %50, %53 : vector<3x256xf32>
    %55 = math.tanh %54 : vector<3x256xf32>
    %c0_17 = arith.constant 0 : index
    %c1 = arith.constant 1 : index
    %c0_18 = arith.constant 0 : index
    %c0_19 = arith.constant 0 : index
    %56 = vector.load %arg3[%c0_17, %c1, %c0_18, %c0_19] : memref<1x4x3x256xf32, #tpu.memory_space<vmem>>, vector<1x1x3x256xf32>
    %57 = vector.shape_cast %56 : vector<1x1x3x256xf32> to vector<3x256xf32>
    %58 = vector.shape_cast %55 : vector<3x256xf32> to vector<1x1x3x256xf32>
    tpu.vector_store %arg3[%c0_17, %c1, %c0_18, %c0_19], %58 {strides = array<i32>} : memref<1x4x3x256xf32, #tpu.memory_space<vmem>>, vector<1x1x3x256xf32>,
    %59 = vector.extract_strided_slice %2 {offsets = [8, 0, 0], sizes = [1, 3, 8], strides = [1, 1, 1]} : vector<16x3x8xf32> to vector<1x3x8xf32>
    %60 = vector.shape_cast %59 : vector<1x3x8xf32> to vector<3x8xf32>
    %cst_20 = arith.constant dense<0.000000e+00> : vector<3x256xf32>
    %61 = tpu.matmul %60, %10, %cst_20 {dimension_numbers = #tpu.dot_dimension_numbers<[1], [0], [0], [1], [0, 0, 1, 1], [], []>} : vector<3x8xf32>, vector<8x256xf32>, vector<3x256xf32> -> vector<3x256xf32>
    %62 = vector.extract_strided_slice %2 {offsets = [9, 0, 0], sizes = [1, 3, 8], strides = [1, 1, 1]} : vector<16x3x8xf32> to vector<1x3x8xf32>
    %63 = vector.shape_cast %62 : vector<1x3x8xf32> to vector<3x8xf32>
    %cst_21 = arith.constant dense<0.000000e+00> : vector<3x256xf32>
    %64 = tpu.matmul %63, %12, %cst_21 {dimension_numbers = #tpu.dot_dimension_numbers<[1], [0], [0], [1], [0, 0, 1, 1], [], []>} : vector<3x8xf32>, vector<8x256xf32>, vector<3x256xf32> -> vector<3x256xf32>
    %65 = arith.addf %61, %64 : vector<3x256xf32>
    %66 = vector.extract_strided_slice %2 {offsets = [10, 0, 0], sizes = [1, 3, 8], strides = [1, 1, 1]} : vector<16x3x8xf32> to vector<1x3x8xf32>
    %67 = vector.shape_cast %66 : vector<1x3x8xf32> to vector<3x8xf32>
    %cst_22 = arith.constant dense<0.000000e+00> : vector<3x256xf32>
    %68 = tpu.matmul %67, %16, %cst_22 {dimension_numbers = #tpu.dot_dimension_numbers<[1], [0], [0], [1], [0, 0, 1, 1], [], []>} : vector<3x8xf32>, vector<8x256xf32>, vector<3x256xf32> -> vector<3x256xf32>
    %69 = arith.addf %65, %68 : vector<3x256xf32>
    %70 = vector.extract_strided_slice %2 {offsets = [11, 0, 0], sizes = [1, 3, 8], strides = [1, 1, 1]} : vector<16x3x8xf32> to vector<1x3x8xf32>
    %71 = vector.shape_cast %70 : vector<1x3x8xf32> to vector<3x8xf32>
    %cst_23 = arith.constant dense<0.000000e+00> : vector<3x256xf32>
    %72 = tpu.matmul %71, %18, %cst_23 {dimension_numbers = #tpu.dot_dimension_numbers<[1], [0], [0], [1], [0, 0, 1, 1], [], []>} : vector<3x8xf32>, vector<8x256xf32>, vector<3x256xf32> -> vector<3x256xf32>
    %73 = arith.addf %69, %72 : vector<3x256xf32>
    %74 = math.tanh %73 : vector<3x256xf32>
    %c0_24 = arith.constant 0 : index
    %c2 = arith.constant 2 : index
    %c0_25 = arith.constant 0 : index
    %c0_26 = arith.constant 0 : index
    %75 = vector.load %arg3[%c0_24, %c2, %c0_25, %c0_26] : memref<1x4x3x256xf32, #tpu.memory_space<vmem>>, vector<1x1x3x256xf32>
    %76 = vector.shape_cast %75 : vector<1x1x3x256xf32> to vector<3x256xf32>
    %77 = vector.shape_cast %74 : vector<3x256xf32> to vector<1x1x3x256xf32>
    tpu.vector_store %arg3[%c0_24, %c2, %c0_25, %c0_26], %77 {strides = array<i32>} : memref<1x4x3x256xf32, #tpu.memory_space<vmem>>, vector<1x1x3x256xf32>,
    %78 = vector.extract_strided_slice %2 {offsets = [12, 0, 0], sizes = [1, 3, 8], strides = [1, 1, 1]} : vector<16x3x8xf32> to vector<1x3x8xf32>
    %79 = vector.shape_cast %78 : vector<1x3x8xf32> to vector<3x8xf32>
    %cst_27 = arith.constant dense<0.000000e+00> : vector<3x256xf32>
    %80 = tpu.matmul %79, %12, %cst_27 {dimension_numbers = #tpu.dot_dimension_numbers<[1], [0], [0], [1], [0, 0, 1, 1], [], []>} : vector<3x8xf32>, vector<8x256xf32>, vector<3x256xf32> -> vector<3x256xf32>
    %81 = vector.extract_strided_slice %2 {offsets = [13, 0, 0], sizes = [1, 3, 8], strides = [1, 1, 1]} : vector<16x3x8xf32> to vector<1x3x8xf32>
    %82 = vector.shape_cast %81 : vector<1x3x8xf32> to vector<3x8xf32>
    %cst_28 = arith.constant dense<0.000000e+00> : vector<3x256xf32>
    %83 = tpu.matmul %82, %14, %cst_28 {dimension_numbers = #tpu.dot_dimension_numbers<[1], [0], [0], [1], [0, 0, 1, 1], [], []>} : vector<3x8xf32>, vector<8x256xf32>, vector<3x256xf32> -> vector<3x256xf32>
    %84 = arith.addf %80, %83 : vector<3x256xf32>
    %85 = vector.extract_strided_slice %2 {offsets = [14, 0, 0], sizes = [1, 3, 8], strides = [1, 1, 1]} : vector<16x3x8xf32> to vector<1x3x8xf32>
    %86 = vector.shape_cast %85 : vector<1x3x8xf32> to vector<3x8xf32>
    %cst_29 = arith.constant dense<0.000000e+00> : vector<3x256xf32>
    %87 = tpu.matmul %86, %18, %cst_29 {dimension_numbers = #tpu.dot_dimension_numbers<[1], [0], [0], [1], [0, 0, 1, 1], [], []>} : vector<3x8xf32>, vector<8x256xf32>, vector<3x256xf32> -> vector<3x256xf32>
    %88 = arith.addf %84, %87 : vector<3x256xf32>
    %89 = vector.extract_strided_slice %2 {offsets = [15, 0, 0], sizes = [1, 3, 8], strides = [1, 1, 1]} : vector<16x3x8xf32> to vector<1x3x8xf32>
    %90 = vector.shape_cast %89 : vector<1x3x8xf32> to vector<3x8xf32>
    %cst_30 = arith.constant dense<0.000000e+00> : vector<3x256xf32>
    %91 = tpu.matmul %90, %20, %cst_30 {dimension_numbers = #tpu.dot_dimension_numbers<[1], [0], [0], [1], [0, 0, 1, 1], [], []>} : vector<3x8xf32>, vector<8x256xf32>, vector<3x256xf32> -> vector<3x256xf32>
    %92 = arith.addf %88, %91 : vector<3x256xf32>
    %93 = math.tanh %92 : vector<3x256xf32>
    %c0_31 = arith.constant 0 : index
    %c3 = arith.constant 3 : index
    %c0_32 = arith.constant 0 : index
    %c0_33 = arith.constant 0 : index
    %94 = vector.load %arg3[%c0_31, %c3, %c0_32, %c0_33] : memref<1x4x3x256xf32, #tpu.memory_space<vmem>>, vector<1x1x3x256xf32>
    %95 = vector.shape_cast %94 : vector<1x1x3x256xf32> to vector<3x256xf32>
    %96 = vector.shape_cast %93 : vector<3x256xf32> to vector<1x1x3x256xf32>
    tpu.vector_store %arg3[%c0_31, %c3, %c0_32, %c0_33], %96 {strides = array<i32>} : memref<1x4x3x256xf32, #tpu.memory_space<vmem>>, vector<1x1x3x256xf32>,
    return
  }
  func.func @transform_0(%arg0: i32) -> (i32, i32, i32, i32) {
    %c0_i32 = arith.constant 0 : i32
    %c0_i32_0 = arith.constant 0 : i32
    %c0_i32_1 = arith.constant 0 : i32
    %c0_i32_2 = arith.constant 0 : i32
    return %arg0, %c0_i32, %c0_i32_0, %c0_i32_1 : i32, i32, i32, i32
  }
  func.func @transform_1(%arg0: i32) -> (i32, i32, i32) {
    %c0_i32 = arith.constant 0 : i32
    %c0_i32_0 = arith.constant 0 : i32
    %c0_i32_1 = arith.constant 0 : i32
    %c0_i32_2 = arith.constant 0 : i32
    return %c0_i32, %c0_i32_0, %c0_i32_1 : i32, i32, i32
  }
  func.func @transform_2(%arg0: i32) -> (i32, i32, i32, i32) {
    %c0_i32 = arith.constant 0 : i32
    %c0_i32_0 = arith.constant 0 : i32
    %c0_i32_1 = arith.constant 0 : i32
    %c0_i32_2 = arith.constant 0 : i32
    return %arg0, %c0_i32, %c0_i32_0, %c0_i32_1 : i32, i32, i32, i32
  }
}

</mosaic_0001>

<bundles_post_ra>
// kernel: generator_forward.6
= control target key start
LH: loop header
LB: loop body
LE: loop exit
PB: predicated region body
PF: predicated region fallthrough
CT: control target
= control target key end

     0   :  { %8 = vsyncpa [#allocation3], 0  ;;  %s214_s0 = inlined_call_operand.hbm [shape: f32[2,4], index: 0, kind: input, shape index: {}]   ;;  %s215_s1 = inlined_call_operand.hbm [shape: f32[4,28], index: 1, kind: input, shape index: {}]   ;;  %s216_s2 = inlined_call_operand.hbm [shape: f32[1,28], index: 2, kind: input, shape index: {}]   ;;  %s217_s3 = inlined_call_operand.vmem [shape: f32[2,28], index: 3, kind: output, shape index: {}]  }
   0x1   :  { %9 = vsyncpa [#allocation5], 0  ;;  %s26_s14 = sshll.u32 %s215_s1, 4  ;;  %s179_s15 = smov [#allocation4]   ;;  %s27_s14 = int_to_ptr.hbm [resolvable:$true] %s26_s14 }
   0x2   :  { %s28_s16 = sshll.u32 %s179_s15, 4  ;;  %s15_s19 = sshll.u32 %s214_s0, 4  ;;  %s29_s16 = int_to_ptr.vmem [resolvable:$true] %s28_s16  ;;  %s16_s19 = int_to_ptr.hbm [resolvable:$true] %s15_s19 }
   0x3   :  { %31 = dma.hbm_to_vmem [thread:$0]  %s27_s14, 64, %s29_s16, [#allocation5]  }
   0x4   :  { %s180_s20 = smov [#allocation2]   ;;  %s37_s24 = sshll.u32 %s216_s2, 4  ;;  %s38_s24 = int_to_ptr.hbm [resolvable:$true] %s37_s24 }
   0x5   :  { %s17_s21 = sshll.u32 %s180_s20, 4  ;;  %s181_s1 = smov [#allocation6]   ;;  %s18_s21 = int_to_ptr.vmem [resolvable:$true] %s17_s21 }
   0x6   :  { %20 = dma.hbm_to_vmem [thread:$0]  %s16_s19, 32, %s18_s21, [#allocation3]  }
   0x7   :  { %s39_s25 = sshll.u32 %s181_s1, 4  ;;  %s40_s25 = int_to_ptr.vmem [resolvable:$true] %s39_s25 }
   0x8   :  { %42 = dma.hbm_to_vmem [thread:$0]  %s38_s24, 16, %s40_s25, [#allocation5]  }
   0x9   :  { %175 = dma.done.wait [#allocation3], 32  }
   0xa   :  { %176 = vsyncadd [#allocation3], 4294967264 }
   0xb   :  { %177 = dma.done.wait [#allocation5], 80  }
   0xc   :  { %178 = vsyncadd [#allocation5], 4294967216  ;;  %vm65_vm0 = vcmask 1043456   ;;  %vm61_vm1 = vcmask 31744   ;;  %v56_v0 = vld [vmem:[#allocation4] sm:$0xf] }
   0xd   :  { %v55_v1 = vld [vmem:[#allocation2] sm:$0x3]  ;;  %97 = vmatpush.msk.msra.mxu0 %vm65_vm0, %v56_v0  ;;  %v102_v2 = vld [vmem:[#allocation6] ss:$0 sm:$0xff]  ;;  %vm89_vm2 = vcmask 222208  }
   0xe   :  { %98 = vmatmul.msk.f32.vlgmr.msra.gmra.mxu0 %vm61_vm1, %v55_v1 }
  0x8b   :  { %v86_v3 = vpop.f32.mrf.mxu0 }
  0x8c   :  { %v87_v4 = vadd.f32 %v102_v2, %v86_v3 }
  0x8e   :  { %90 = vst.msk [vmem:[%s217_s3] sm:$0x3] %vm89_vm2, %v87_v4 }
  0x8f   :  { %95 = vsyncpa [#allocation3], 1 }
  0x90   :  { %96 = vsyncpa [#allocation5], 1 }

// kernel: generator_forward.7
= control target key start
LH: loop header
LB: loop body
LE: loop exit
PB: predicated region body
PF: predicated region fallthrough
CT: control target
= control target key end

     0   :  { %8 = vsyncpa [#allocation3], 0  ;;  %s223_s0 = inlined_call_operand.vmem [shape: f32[2,44], index: 0, kind: input, shape index: {}]   ;;  %s224_s1 = inlined_call_operand.hbm [shape: f32[44,256], index: 1, kind: input, shape index: {}]   ;;  %s225_s2 = inlined_call_operand.hbm [shape: f32[1,256], index: 2, kind: input, shape index: {}]   ;;  %s226_s3 = inlined_call_operand.vmem [shape: f32[2,256], index: 3, kind: output, shape index: {}]  }
   0x1   :  { %s16_s14 = sshll.u32 %s224_s1, 4  ;;  %s17_s14 = int_to_ptr.hbm [resolvable:$true] %s16_s14 }
   0x2   :  { %9 = vsyncpa [#allocation5], 0  ;;  %s187_s15 = smov [#allocation2]   ;;  %s30_s19 = sshll.u32 %s225_s2, 4  ;;  %s31_s19 = int_to_ptr.hbm [resolvable:$true] %s30_s19 }
   0x3   :  { %s18_s16 = sshll.u32 %s187_s15, 4  ;;  %s188_s20 = smov 256   ;;  %s19_s16 = int_to_ptr.vmem [resolvable:$true] %s18_s16 }
   0x4   :  { %s189_s21 = smov 16   ;;  %s190_s22 = smov [#allocation4]  }
   0x5   :  { %24 = dma.hbm_to_vmem [thread:$0]  %s17_s14, 1536, %s19_s16, [#allocation3], %s188_s20, %s188_s20, %s189_s21  }
   0x6   :  { %s32_s23 = sshll.u32 %s190_s22, 4  ;;  %s33_s23 = int_to_ptr.vmem [resolvable:$true] %s32_s23 }
   0x7   :  { %35 = dma.hbm_to_vmem [thread:$0]  %s31_s19, 32, %s33_s23, [#allocation5]  }
   0x8   :  { %183 = dma.done.wait [#allocation3], 1536  }
   0x9   :  { %184 = vsyncadd [#allocation3], 4294965760 }
   0xa   :  { %185 = dma.done.wait [#allocation5], 32  }
   0xb   :  { %186 = vsyncadd [#allocation5], 4294967264  ;;  %vm67_vm0 = vcmask 1043456   ;;  %v56_v0 = vld [vmem:[#allocation2 + $0x58] sm:$0xf]  ;;  %v54_v2 = vld [vmem:[#allocation2 + $0x48] sm:$0xff] }
   0xc   :  { %v55_v1 = vld [vmem:[#allocation2 + $0x50] sm:$0xf]  ;;  %129 = vmatpush.msk.msra.mxu1 %vm67_vm0, %v56_v0  ;;  %v53_v3 = vld [vmem:[#allocation2 + $0x40] sm:$0xff]  ;;  %v52_v4 = vld [vmem:[#allocation2 + $0x38] sm:$0xff]  ;;  %vm63_vm1 = vcmask 359424   ;;  %vm117_vm2 = vcmask 1041408  }
   0xd   :  { %127 = vmatpush.msk.msra.mxu0 %vm67_vm0, %v55_v1  ;;  %v51_v5 = vld [vmem:[#allocation2 + $0x30] sm:$0xff]  ;;  %v50_v6 = vld [vmem:[#allocation2 + $0x28] sm:$0xff]  ;;  %v49_v7 = vld [vmem:[#allocation2 + $0x20] sm:$0xff] }
   0xe   :  { %105 = vmatpush.msra.mxu1 %v54_v2  ;;  %v48_v8 = vld [vmem:[#allocation2 + $0x18] sm:$0xff]  ;;  %v47_v9 = vld [vmem:[#allocation2 + $0x10] sm:$0xff]  ;;  %v46_v10 = vld [vmem:[#allocation2 + $0x8] sm:$0xff] }
   0xf   :  { %85 = vmatpush.msra.mxu0 %v53_v3  ;;  %v45_v11 = vld [vmem:[#allocation2] sm:$0xff] }
  0x10   :  { %106 = vmatpush.msra.mxu1 %v52_v4  ;;  %v44_v12 = vld [vmem:[%s223_s0] sm:$0x3] }
  0x11   :  { %86 = vmatpush.msra.mxu0 %v51_v5  ;;  %v57_v13 = vld [vmem:[#allocation4] sm:$0x3] }
  0x12   :  { %107 = vmatpush.msra.mxu1 %v50_v6  ;;  %v60_v14 = vperm.slane %v57_v13, 1  ;;  %v59_v15 = vperm.slane %v57_v13, 0 }
  0x13   :  { %87 = vmatpush.msra.mxu0 %v49_v7 }
  0x14   :  { %108 = vmatpush.msra.mxu1 %v48_v8 }
  0x15   :  { %88 = vmatpush.msra.mxu0 %v47_v9 }
  0x16   :  { %109 = vmatpush.msra.mxu1 %v46_v10 }
  0x17   :  { %89 = vmatpush.msra.mxu0 %v45_v11  ;;  %130 = vmatmul.msk.f32.vlgmr.msra.gmra.mxu1 %vm63_vm1, %v44_v12 }
  0x18   :  { %128 = vmatmul.msk.f32.vlgmr.msra.gmra.mxu0 %vm63_vm1, %v44_v12 }
  0x94   :  { %v111_v16 = vpop.f32.mrf.mxu1 }
  0x95   :  { %v91_v17 = vpop.f32.mrf.mxu0  ;;  %v112_v18 = vadd.f32 %v111_v16, %v60_v14 }
  0x96   :  { %v92_v19 = vadd.f32 %v91_v17, %v59_v15 }
  0x97   :  { %v116_v20 = vrot.slane %v112_v18, 6 }
  0x99   :  { %v118_v21 = vsel %vm117_vm2, %v92_v19, %v116_v20 }
  0x9a   :  { %120 = vst [vmem:[%s226_s3] sm:$0xf] %v118_v21 }
  0x9b   :  { %125 = vsyncpa [#allocation3], 1 }
  0x9c   :  { %126 = vsyncpa [#allocation5], 1 }

// kernel: generator_forward.8
= control target key start
LH: loop header
LB: loop body
LE: loop exit
PB: predicated region body
PF: predicated region fallthrough
CT: control target
= control target key end

     0   :  { %s1634_s12 = smov 0   ;;  %s2069_s0 = inlined_call_operand.vmem [shape: f32[2,3,64,12], index: 0, kind: input, shape index: {}]   ;;  %s2070_s1 = inlined_call_operand.vmem [shape: f32[16,32,64], index: 1, kind: input, shape index: {}]   ;;  %s2071_s2 = inlined_call_operand.vmem [shape: f32[2,4,32,4], index: 2, kind: output, shape index: {0}]   ;;  %s2072_s3 = inlined_call_operand.vmem [shape: f32[2,32,2], index: 3, kind: output, shape index: {1}]  }
   0x1 LB: > { %s1383_s13 = sadd.s32 4294967295, %s1610_s12   ;;  %p1387_p0 = scmp.ge.s32.totalorder %s1610_s12, 1  ;;  %s1610_s12 = sphi %s1634_s12, %s14_s12  }
   0x2   : > { %p140_p1 = scmp.lt.s32.totalorder %s1610_s12, 3 }
   0x4   : > { %p141_p2 = pnand %p1387_p0, %p140_p1 }
   0x5   : > { %p169_p3 = scmp.lt.s32.totalorder (!%p141_p2), %s1383_s13, 1  ;;  %s1612_s18 = smov (!%p141_p2), 124  }
   0x6   : > { %144 = sbr.rel (%p141_p2) target bundleno = 542 (0x21e), region = 28  ;;  %s1613_s25 = smov (!%p141_p2), 120  }
   0xb   : > { %s2074_s13 = smov (!%p169_p3, %s1383_s13), 1  ;;  %v208_v36 = vld [vmem:[%s2070_s1] sm:$0xff]  ;;  %vm272_vm0 = vcmask 523264   ;;  %v209_v38 = vld [vmem:[%s2070_s1 + $0x8] sm:$0xff]  ;;  %v210_v40 = vld [vmem:[%s2070_s1 + $0x10] sm:$0xff]  ;;  %vm509_vm1 = vcmask 31744  }
   0xc   : > { %s1473_s14 = smul.u32 192, %s2074_s13  ;;  %v212_v37 = vld [vmem:[%s2070_s1 + $0x20] sm:$0xff]  ;;  %v213_v39 = vld [vmem:[%s2070_s1 + $0x28] sm:$0xff]  ;;  %v214_v41 = vld [vmem:[%s2070_s1 + $0x30] sm:$0xff]  ;;  %s1471_s23 = sshll.u32 %s2074_s13, 7  ;;  %vm1285_vm2 = vcmask 7168  }
   0xd   : > { %v211_v42 = vld [vmem:[%s2070_s1 + $0x18] sm:$0xff]  ;;  %v224_v44 = vld [vmem:[%s2070_s1 + $0x80] sm:$0xff]  ;;  %s1982_s26 = scalar_lea.vmem %s2071_s2, %s1471_s23  ;;  %s1472_s27 = sshll.u32 %s2074_s13, 5  ;;  %vm1290_vm3 = vcmask 15360  }
   0xe   : > { %s1648_s17 = scalar_lea.vmem %s2069_s0, %s1473_s14  ;;  %v215_v43 = vld [vmem:[%s2070_s1 + $0x38] sm:$0xff]  ;;  %v228_v45 = vld [vmem:[%s2070_s1 + $0xa0] sm:$0xff]  ;;  %s2052_s30 = scalar_lea.vmem %s2072_s3, %s1472_s27 }
   0xf   : > { %v190_v0 = vld [vmem:[%s1648_s17 + $0x30] sm:$0xff]  ;;  %v191_v1 = vld [vmem:[%s1648_s17 + $0x38] sm:$0xff]  ;;  %v188_v2 = vld [vmem:[%s1648_s17 + $0x20] sm:$0xff] }
  0x10   : > { %v1653_v3 = vpack.i.bf16 %v190_v0, %v191_v1  ;;  %v198_v4 = vld [vmem:[%s1648_s17 + $0x70] sm:$0xff]  ;;  %v199_v5 = vld [vmem:[%s1648_s17 + $0x78] sm:$0xff]  ;;  %334 = vmatpush.msra.mxu1 %v191_v1  ;;  %v189_v7 = vld [vmem:[%s1648_s17 + $0x28] sm:$0xff] }
  0x11   : > { %v1657_v6 = vpack.i.bf16 %v188_v2, %v198_v4  ;;  %293 = vmatpush.msra.mxu0 %v199_v5  ;;  %v186_v8 = vld [vmem:[%s1648_s17 + $0x10] sm:$0xff]  ;;  %v187_v9 = vld [vmem:[%s1648_s17 + $0x18] sm:$0xff]  ;;  %v197_v10 = vld [vmem:[%s1648_s17 + $0x68] sm:$0xff]  ;;  %v1670_v13 = vpack.i.bf16 %v189_v7, %v199_v5 }
  0x12   : > { %1485 = vrot.lane.b32.xlu0 %v1653_v3, %s1612_s18  ;;  %335 = vmatpush.msra.mxu1 %v190_v0  ;;  %v196_v11 = vld [vmem:[%s1648_s17 + $0x60] sm:$0xff]  ;;  %v1672_v14 = vpack.i.bf16 %v187_v9, %v197_v10  ;;  %v185_v15 = vld [vmem:[%s1648_s17 + $0x8] sm:$0xff]  ;;  %v195_v16 = vld [vmem:[%s1648_s17 + $0x58] sm:$0xff] }
  0x13   : > { %1495 = vrot.lane.b32.xlu1 %v1657_v6, %s1612_s18  ;;  %294 = vmatpush.msra.mxu0 %v198_v4  ;;  %v1668_v12 = vpack.i.bf16 %v186_v8, %v196_v11  ;;  %v194_v17 = vld [vmem:[%s1648_s17 + $0x50] sm:$0xff]  ;;  %v184_v18 = vld [vmem:[%s1648_s17] sm:$0xff]  ;;  %v1509_v19 = vpack.i.bf16 %v185_v15, %v195_v16  ;;  %v193_v21 = vld [vmem:[%s1648_s17 + $0x48] sm:$0xff] }
  0x14   : > { %336 = vmatpush.msra.mxu1 %v189_v7  ;;  %v192_v20 = vld [vmem:[%s1648_s17 + $0x40] sm:$0xff]  ;;  %v1514_v22 = vpack.i.bf16 %v184_v18, %v194_v17  ;;  %v206_v24 = vld [vmem:[%s1648_s17 + $0xb0] sm:$0xff]  ;;  %v207_v25 = vld [vmem:[%s1648_s17 + $0xb8] sm:$0xff] }
  0x15   : > { %295 = vmatpush.msra.mxu0 %v197_v10  ;;  %1505 = vrot.lane.b32.xlu2 %v1668_v12, %s1612_s18  ;;  %v1519_v23 = vpack.i.bf16 %v192_v20, %v193_v21  ;;  %v204_v26 = vld [vmem:[%s1648_s17 + $0xa0] sm:$0xff]  ;;  %v205_v27 = vld [vmem:[%s1648_s17 + $0xa8] sm:$0xff]  ;;  %v1524_v28 = vpack.i.bf16 %v206_v24, %v207_v25  ;;  %v202_v29 = vld [vmem:[%s1648_s17 + $0x90] sm:$0xff] }
  0x16   : > { %337 = vmatpush.msra.mxu1 %v188_v2  ;;  %v203_v30 = vld [vmem:[%s1648_s17 + $0x98] sm:$0xff]  ;;  %v1529_v31 = vpack.i.bf16 %v204_v26, %v205_v27  ;;  %v200_v33 = vld [vmem:[%s1648_s17 + $0x80] sm:$0xff]  ;;  %v201_v34 = vld [vmem:[%s1648_s17 + $0x88] sm:$0xff] }
  0x17   : > { %296 = vmatpush.msra.mxu0 %v196_v11  ;;  %v1534_v32 = vpack.i.bf16 %v202_v29, %v203_v30  ;;  %v1539_v35 = vpack.i.bf16 %v200_v33, %v201_v34 }
  0x18   : > { %338 = vmatpush.msra.mxu1 %v187_v9 }
  0x19   : > { %297 = vmatpush.msra.mxu0 %v195_v16 }
  0x1a   : > { %1490 = vrot.lane.b32.xlu0 %v1670_v13, %s1612_s18  ;;  %339 = vmatpush.msra.mxu1 %v186_v8  ;;  %v220_v8 = vld [vmem:[%s2070_s1 + $0x60] sm:$0xff] }
  0x1b   : > { %1500 = vrot.lane.b32.xlu1 %v1672_v14, %s1612_s18  ;;  %298 = vmatpush.msra.mxu0 %v194_v17 }
  0x1c   : > { %340 = vmatpush.msra.mxu1 %v185_v15  ;;  %v217_v15 = vld [vmem:[%s2070_s1 + $0x48] sm:$0xff] }
  0x1d   : > { %299 = vmatpush.msra.mxu0 %v193_v21  ;;  %1510 = vrot.lane.b32.xlu2 %v1509_v19, %s1612_s18 }
  0x1e   : > { %341 = vmatpush.msra.mxu1 %v184_v18 }
  0x1f   : > { %300 = vmatpush.msra.mxu0 %v192_v20  ;;  %1397 = vmatmul.msk.f32.vlgmr.msra.gmra.mxu1 %vm272_vm0, %v208_v36 }
  0x20   : > { %603 = vmatpush.msrb.mxu1 %v199_v5  ;;  %1393 = vmatmul.msk.f32.vlgmr.msra.gmra.mxu0 %vm272_vm0, %v212_v37  ;;  %v225_v37 = vld [vmem:[%s2070_s1 + $0x88] sm:$0xff] }
  0x21   : > { %562 = vmatpush.msrb.mxu0 %v207_v25  ;;  %v218_v25 = vld [vmem:[%s2070_s1 + $0x50] sm:$0xff] }
  0x22   : > { %604 = vmatpush.msrb.mxu1 %v198_v4  ;;  %1515 = vrot.lane.b32.xlu0 %v1514_v22, %s1612_s18 }
  0x23   : > { %1520 = vrot.lane.b32.xlu1 %v1519_v23, %s1612_s18  ;;  %563 = vmatpush.msrb.mxu0 %v206_v24 }
  0x24   : > { %605 = vmatpush.msrb.mxu1 %v197_v10 }
  0x25   : > { %564 = vmatpush.msrb.mxu0 %v205_v27  ;;  %1525 = vrot.lane.b32.xlu2 %v1524_v28, %s1612_s18 }
  0x26   : > { %606 = vmatpush.msrb.mxu1 %v196_v11 }
  0x27   : > { %565 = vmatpush.msrb.mxu0 %v204_v26  ;;  %1398 = vmatmul.msk.f32.gmra.mxu1 %vm272_vm0, %v209_v38 }
  0x28   : > { %607 = vmatpush.msrb.mxu1 %v195_v16  ;;  %1394 = vmatmul.msk.f32.gmra.mxu0 %vm272_vm0, %v213_v39  ;;  %v221_v16 = vld [vmem:[%s2070_s1 + $0x68] sm:$0xff] }
  0x29   : > { %566 = vmatpush.msrb.mxu0 %v203_v30 }
  0x2a   : > { %608 = vmatpush.msrb.mxu1 %v194_v17  ;;  %1530 = vrot.lane.b32.xlu0 %v1529_v31, %s1612_s18 }
  0x2b   : > { %1535 = vrot.lane.b32.xlu1 %v1534_v32, %s1612_s18  ;;  %567 = vmatpush.msrb.mxu0 %v202_v29 }
  0x2c   : > { %609 = vmatpush.msrb.mxu1 %v193_v21 }
  0x2d   : > { %1540 = vrot.lane.b32.xlu2 %v1539_v35, %s1612_s18  ;;  %568 = vmatpush.msrb.mxu0 %v201_v34 }
  0x2e   : > { %610 = vmatpush.msrb.mxu1 %v192_v20 }
  0x2f   : > { %569 = vmatpush.msrb.mxu0 %v200_v33  ;;  %1399 = vmatmul.msk.f32.gmra.mxu1 %vm272_vm0, %v210_v40  ;;  %v219_v40 = vld [vmem:[%s2070_s1 + $0x58] sm:$0xff] }
  0x30   : > { %1395 = vmatmul.msk.f32.gmra.mxu0 %vm272_vm0, %v214_v41 }
  0x32   : > { %1545 = vrot.lane.b32.xlu0 %v1653_v3, %s1613_s25 }
  0x33   : > { %1550 = vrot.lane.b32.xlu1 %v1670_v13, %s1613_s25 }
  0x35   : > { %1555 = vrot.lane.b32.xlu2 %v1657_v6, %s1613_s25  ;;  %v216_v6 = vld [vmem:[%s2070_s1 + $0x40] sm:$0xff] }
  0x37   : > { %1400 = vmatmul.msk.f32.gmra.mxu1 %vm272_vm0, %v211_v42 }
  0x38   : > { %1396 = vmatmul.msk.f32.gmra.mxu0 %vm272_vm0, %v215_v43  ;;  %v223_v43 = vld [vmem:[%s2070_s1 + $0x78] sm:$0xff] }
  0x3a   : > { %1560 = vrot.lane.b32.xlu0 %v1672_v14, %s1613_s25 }
  0x3b   : > { %1565 = vrot.lane.b32.xlu1 %v1668_v12, %s1613_s25 }
  0x3d   : > { %1570 = vrot.lane.b32.xlu2 %v1509_v19, %s1613_s25 }
  0x3f   : > { %1413 = vmatmul.msk.f32.vlgmr.msrb.gmra.mxu1 %vm272_vm0, %v224_v44 }
  0x40   : > { %1409 = vmatmul.msk.f32.vlgmr.msrb.gmra.mxu0 %vm272_vm0, %v228_v45 }
  0x42   : > { %1575 = vrot.lane.b32.xlu0 %v1514_v22, %s1613_s25 }
  0x43   : > { %1580 = vrot.lane.b32.xlu1 %v1519_v23, %s1613_s25 }
  0x45   : > { %1585 = vrot.lane.b32.xlu2 %v1524_v28, %s1613_s25  ;;  %v222_v28 = vld [vmem:[%s2070_s1 + $0x70] sm:$0xff] }
  0x47   : > { %1414 = vmatmul.msk.f32.gmra.mxu1 %vm272_vm0, %v225_v37 }
  0x4a   : > { %1590 = vrot.lane.b32.xlu0 %v1529_v31, %s1613_s25 }
  0x4b   : > { %1595 = vrot.lane.b32.xlu1 %v1534_v32, %s1613_s25 }
  0x4d   : > { %1600 = vrot.lane.b32.xlu2 %v1539_v35, %s1613_s25  ;;  %v229_v35 = vld [vmem:[%s2070_s1 + $0xa8] sm:$0xff] }
  0x4e   : > { %1410 = vmatmul.msk.f32.gmra.mxu0 %vm272_vm0, %v229_v35  ;;  %v268_v35 = vld [vmem:[%s2070_s1 + $0x1e0] sm:$0xff] }
  0x6f   : > { %v1506_v46 = vpop.permute.xlu2 %1505 }
  0x70   : > { %v1507_v60 = vunpack.i.l.bf16 %v1506_v46  ;;  %v1508_v62 = vunpack.i.h.bf16 %v1506_v46 }
  0x77   : > { %v1511_v55 = vpop.permute.xlu2 %1510 }
  0x78   : > { %v1512_v61 = vunpack.i.l.bf16 %v1511_v55  ;;  %v1513_v63 = vunpack.i.h.bf16 %v1511_v55  ;;  %v236_v55 = vld [vmem:[%s2070_s1 + $0xe0] sm:$0xff] }
  0x7f   : > { %v1526_v4 = vpop.permute.xlu2 %1525 }
  0x80   : > { %v1527_v9 = vunpack.i.l.bf16 %v1526_v4  ;;  %v1528_v13 = vunpack.i.h.bf16 %v1526_v4  ;;  %v240_v4 = vld [vmem:[%s2070_s1 + $0x100] sm:$0xff] }
  0x84   : > { %v1486_v47 = vpop.permute.xlu0 %1485 }
  0x85   : > { %v1487_v48 = vunpack.i.l.bf16 %v1486_v47  ;;  %v1496_v49 = vpop.permute.xlu1 %1495  ;;  %v1488_v50 = vunpack.i.h.bf16 %v1486_v47 }
  0x86   : > { %v1497_v56 = vunpack.i.l.bf16 %v1496_v49  ;;  %v1498_v58 = vunpack.i.h.bf16 %v1496_v49 }
  0x87   : > { %407 = vmatpush.msra.mxu2 %v1487_v48  ;;  %848 = vmatpush.msra.mxu1 %v1487_v48  ;;  %v1753_v12 = vpop.permute.xlu2 %1540 }
  0x88   : > { %v1542_v26 = vunpack.i.l.bf16 %v1753_v12  ;;  %v1543_v30 = vunpack.i.h.bf16 %v1753_v12 }
  0x89   : > { %408 = vmatpush.msra.mxu2 %v1488_v50  ;;  %849 = vmatpush.msra.mxu1 %v1488_v50  ;;  %v230_v50 = vld [vmem:[%s2070_s1 + $0xb0] sm:$0xff] }
  0x8a   : > { %1411 = vmatmul.msk.f32.gmra.mxu0 %vm272_vm0, %v230_v50 }
  0x8c   : > { %v1491_v51 = vpop.permute.xlu0 %1490 }
  0x8d   : > { %v1492_v52 = vunpack.i.l.bf16 %v1491_v51  ;;  %v1493_v53 = vunpack.i.h.bf16 %v1491_v51  ;;  %v1501_v54 = vpop.permute.xlu1 %1500  ;;  %v226_v51 = vld [vmem:[%s2070_s1 + $0x90] sm:$0xff] }
  0x8e   : > { %v1502_v57 = vunpack.i.l.bf16 %v1501_v54  ;;  %v1503_v59 = vunpack.i.h.bf16 %v1501_v54  ;;  %1415 = vmatmul.msk.f32.gmra.mxu1 %vm272_vm0, %v226_v51 }
  0x8f   : > { %409 = vmatpush.msra.mxu2 %v1493_v53  ;;  %484 = vmatpush.msra.mxu3 %v1492_v52  ;;  %v1766_v21 = vpop.permute.xlu2 %1555 }
  0x90   : > { %807 = vmatpush.msra.mxu0 %v1492_v52  ;;  %850 = vmatpush.msra.mxu1 %v1493_v53  ;;  %v1558_v32 = vunpack.i.h.bf16 %v1766_v21  ;;  %v1557_v33 = vunpack.i.l.bf16 %v1766_v21  ;;  %v243_v21 = vld [vmem:[%s2070_s1 + $0x118] sm:$0xff] }
  0x91   : > { %410 = vmatpush.msra.mxu2 %v1498_v58  ;;  %485 = vmatpush.msra.mxu3 %v1497_v56 }
  0x92   : > { %808 = vmatpush.msra.mxu0 %v1497_v56  ;;  %851 = vmatpush.msra.mxu1 %v1498_v58 }
  0x93   : > { %411 = vmatpush.msra.mxu2 %v1503_v59  ;;  %486 = vmatpush.msra.mxu3 %v1502_v57 }
  0x94   : > { %809 = vmatpush.msra.mxu0 %v1502_v57  ;;  %852 = vmatpush.msra.mxu1 %v1503_v59  ;;  %v1516_v0 = vpop.permute.xlu0 %1515  ;;  %v231_v59 = vld [vmem:[%s2070_s1 + $0xb8] sm:$0xff] }
  0x95   : > { %412 = vmatpush.msra.mxu2 %v1508_v62  ;;  %487 = vmatpush.msra.mxu3 %v1507_v60  ;;  %v1517_v1 = vunpack.i.l.bf16 %v1516_v0  ;;  %v1521_v2 = vpop.permute.xlu1 %1520  ;;  %v1518_v3 = vunpack.i.h.bf16 %v1516_v0  ;;  %v237_v0 = vld [vmem:[%s2070_s1 + $0xe8] sm:$0xff] }
  0x96   : > { %810 = vmatpush.msra.mxu0 %v1507_v60  ;;  %853 = vmatpush.msra.mxu1 %v1508_v62  ;;  %v1522_v5 = vunpack.i.l.bf16 %v1521_v2  ;;  %v1523_v7 = vunpack.i.h.bf16 %v1521_v2  ;;  %v233_v62 = vld [vmem:[%s2070_s1 + $0xc8] sm:$0xff] }
  0x97   : > { %413 = vmatpush.msra.mxu2 %v1513_v63  ;;  %488 = vmatpush.msra.mxu3 %v1512_v61  ;;  %v1571_v39 = vpop.permute.xlu2 %1570 }
  0x98   : > { %811 = vmatpush.msra.mxu0 %v1512_v61  ;;  %854 = vmatpush.msra.mxu1 %v1513_v63  ;;  %v1573_v44 = vunpack.i.h.bf16 %v1571_v39  ;;  %v1572_v46 = vunpack.i.l.bf16 %v1571_v39  ;;  %v259_v39 = vld [vmem:[%s2070_s1 + $0x198] sm:$0xff] }
  0x99   : > { %414 = vmatpush.msra.mxu2 %v1518_v3  ;;  %489 = vmatpush.msra.mxu3 %v1517_v1 }
  0x9a   : > { %812 = vmatpush.msra.mxu0 %v1517_v1  ;;  %855 = vmatpush.msra.mxu1 %v1518_v3  ;;  %v244_v3 = vld [vmem:[%s2070_s1 + $0x120] sm:$0xff] }
  0x9b   : > { %644 = vmatpush.msrb.mxu2 %v1492_v52  ;;  %490 = vmatpush.msra.mxu3 %v1522_v5 }
  0x9c   : > { %1109 = vmatpush.msrb.mxu1 %v1492_v52  ;;  %813 = vmatpush.msra.mxu0 %v1522_v5  ;;  %v1531_v10 = vpop.permute.xlu0 %1530  ;;  %v232_v52 = vld [vmem:[%s2070_s1 + $0xc0] sm:$0xff]  ;;  %v343_v37 = vpop.f32.mrf.mxu1 }
  0x9d   : > { %1401 = vmatmul.msk.f32.vlgmr.msra.gmra.mxu2 %vm272_vm0, %v216_v6  ;;  %v1536_v11 = vpop.permute.xlu1 %1535  ;;  %491 = vmatpush.msra.mxu3 %v1523_v7  ;;  %v1532_v14 = vunpack.i.l.bf16 %v1531_v10  ;;  %v1533_v17 = vunpack.i.h.bf16 %v1531_v10  ;;  %v241_v10 = vld [vmem:[%s2070_s1 + $0x108] sm:$0xff] }
  0x9e   : > { %1110 = vmatpush.msrb.mxu1 %v1497_v56  ;;  %645 = vmatpush.msrb.mxu2 %v1497_v56  ;;  %v1537_v20 = vunpack.i.l.bf16 %v1536_v11  ;;  %v1538_v23 = vunpack.i.h.bf16 %v1536_v11  ;;  %v235_v11 = vld [vmem:[%s2070_s1 + $0xd8] sm:$0xff] }
  0x9f   : > { %814 = vmatpush.msra.mxu0 %v1523_v7  ;;  %1405 = vmatmul.msk.f32.vlgmr.msra.gmra.mxu3 %vm272_vm0, %v220_v8  ;;  %v1586_v54 = vpop.permute.xlu2 %1585  ;;  %v238_v8 = vld [vmem:[%s2070_s1 + $0xf0] sm:$0xff] }
  0xa0   : > { %646 = vmatpush.msrb.mxu2 %v1502_v57  ;;  %721 = vmatpush.msrb.mxu3 %v1527_v9 }
  0xa1   : > { %1068 = vmatpush.msrb.mxu0 %v1527_v9  ;;  %1111 = vmatpush.msrb.mxu1 %v1502_v57  ;;  %v1587_v57 = vunpack.i.l.bf16 %v1586_v54  ;;  %v245_v9 = vld [vmem:[%s2070_s1 + $0x128] sm:$0xff] }
  0xa2   : > { %647 = vmatpush.msrb.mxu2 %v1507_v60  ;;  %722 = vmatpush.msrb.mxu3 %v1528_v13 }
  0xa3   : > { %1069 = vmatpush.msrb.mxu0 %v1528_v13  ;;  %1112 = vmatpush.msrb.mxu1 %v1507_v60  ;;  %v227_v60 = vld [vmem:[%s2070_s1 + $0x98] sm:$0xff] }
  0xa4   : > { %648 = vmatpush.msrb.mxu2 %v1512_v61  ;;  %723 = vmatpush.msrb.mxu3 %v1532_v14  ;;  %v1546_v18 = vpop.permute.xlu0 %1545 }
  0xa5   : > { %1113 = vmatpush.msrb.mxu1 %v1512_v61  ;;  %1402 = vmatmul.msk.f32.gmra.mxu2 %vm272_vm0, %v217_v15  ;;  %v1763_v19 = vpop.permute.xlu1 %1550  ;;  %v1547_v22 = vunpack.i.l.bf16 %v1546_v18  ;;  %v1548_v24 = vunpack.i.h.bf16 %v1546_v18  ;;  %v1588_v61 = vunpack.i.h.bf16 %v1586_v54  ;;  %v248_v18 = vld [vmem:[%s2070_s1 + $0x140] sm:$0xff] }
  0xa6   : > { %649 = vmatpush.msrb.mxu2 %v1517_v1  ;;  %1070 = vmatpush.msrb.mxu0 %v1532_v14  ;;  %v1553_v27 = vunpack.i.h.bf16 %v1763_v19  ;;  %v1552_v31 = vunpack.i.l.bf16 %v1763_v19  ;;  %v239_v14 = vld [vmem:[%s2070_s1 + $0xf8] sm:$0xff]  ;;  %v252_v19 = vld [vmem:[%s2070_s1 + $0x160] sm:$0xff] }
  0xa7   : > { %1114 = vmatpush.msrb.mxu1 %v1517_v1  ;;  %1406 = vmatmul.msk.f32.gmra.mxu3 %vm272_vm0, %v221_v16  ;;  %v1601_v12 = vpop.permute.xlu2 %1600  ;;  %v246_v16 = vld [vmem:[%s2070_s1 + $0x130] sm:$0xff] }
  0xa8   : > { %650 = vmatpush.msrb.mxu2 %v1522_v5  ;;  %724 = vmatpush.msrb.mxu3 %v1533_v17  ;;  %v1602_v13 = vunpack.i.l.bf16 %v1601_v12  ;;  %v1603_v15 = vunpack.i.h.bf16 %v1601_v12 }
  0xa9   : > { %1071 = vmatpush.msrb.mxu0 %v1533_v17  ;;  %1115 = vmatpush.msrb.mxu1 %v1522_v5  ;;  %v242_v17 = vld [vmem:[%s2070_s1 + $0x110] sm:$0xff] }
  0xaa   : > { %651 = vmatpush.msrb.mxu2 %v1523_v7  ;;  %725 = vmatpush.msrb.mxu3 %v1537_v20 }
  0xab   : > { %1116 = vmatpush.msrb.mxu1 %v1523_v7  ;;  %1072 = vmatpush.msrb.mxu0 %v1537_v20  ;;  %v234_v7 = vld [vmem:[%s2070_s1 + $0xd0] sm:$0xff]  ;;  %v247_v20 = vld [vmem:[%s2070_s1 + $0x138] sm:$0xff] }
  0xac   : > { %726 = vmatpush.msrb.mxu3 %v1538_v23  ;;  %913 = vmatpush.msra.mxu2 %v1547_v22  ;;  %v1776_v29 = vpop.permute.xlu0 %1560  ;;  %v249_v22 = vld [vmem:[%s2070_s1 + $0x148] sm:$0xff] }
  0xad   : > { %1403 = vmatmul.msk.f32.gmra.mxu2 %vm272_vm0, %v218_v25  ;;  %1073 = vmatpush.msrb.mxu0 %v1538_v23  ;;  %v1566_v34 = vpop.permute.xlu1 %1565  ;;  %v1563_v36 = vunpack.i.h.bf16 %v1776_v29  ;;  %v1562_v38 = vunpack.i.l.bf16 %v1776_v29  ;;  %v253_v23 = vld [vmem:[%s2070_s1 + $0x168] sm:$0xff]  ;;  %v256_v25 = vld [vmem:[%s2070_s1 + $0x180] sm:$0xff] }
  0xae   : > { %914 = vmatpush.msra.mxu2 %v1548_v24  ;;  %727 = vmatpush.msrb.mxu3 %v1542_v26  ;;  %v1568_v41 = vunpack.i.h.bf16 %v1566_v34  ;;  %v1567_v42 = vunpack.i.l.bf16 %v1566_v34  ;;  %v260_v24 = vld [vmem:[%s2070_s1 + $0x1a0] sm:$0xff]  ;;  %v257_v29 = vld [vmem:[%s2070_s1 + $0x188] sm:$0xff] }
  0xaf   : > { %1407 = vmatmul.msk.f32.gmra.mxu3 %vm272_vm0, %v222_v28  ;;  %1074 = vmatpush.msrb.mxu0 %v1542_v26  ;;  %v250_v26 = vld [vmem:[%s2070_s1 + $0x150] sm:$0xff]  ;;  %v261_v28 = vld [vmem:[%s2070_s1 + $0x1a8] sm:$0xff]  ;;  %v264_v34 = vld [vmem:[%s2070_s1 + $0x1c0] sm:$0xff] }
  0xb0   : > { %915 = vmatpush.msra.mxu2 %v1553_v27  ;;  %728 = vmatpush.msrb.mxu3 %v1543_v30  ;;  %v254_v27 = vld [vmem:[%s2070_s1 + $0x170] sm:$0xff] }
  0xb1   : > { %1075 = vmatpush.msrb.mxu0 %v1543_v30  ;;  %1416 = vmatmul.msk.f32.gmra.mxu1 %vm272_vm0, %v227_v60  ;;  %v251_v30 = vld [vmem:[%s2070_s1 + $0x158] sm:$0xff] }
  0xb2   : > { %982 = vmatpush.msra.mxu3 %v1552_v31  ;;  %916 = vmatpush.msra.mxu2 %v1558_v32  ;;  %v262_v32 = vld [vmem:[%s2070_s1 + $0x1b0] sm:$0xff] }
  0xb3   : > { %1412 = vmatmul.msk.f32.gmra.mxu0 %vm272_vm0, %v231_v59 }
  0xb4   : > { %983 = vmatpush.msra.mxu3 %v1557_v33  ;;  %917 = vmatpush.msra.mxu2 %v1563_v36  ;;  %v1576_v45 = vpop.permute.xlu0 %1575  ;;  %v302_v36 = vpop.f32.mrf.mxu0 }
  0xb5   : > { %1404 = vmatmul.msk.f32.gmra.mxu2 %vm272_vm0, %v219_v40  ;;  %v1578_v47 = vunpack.i.h.bf16 %v1576_v45  ;;  %v1581_v48 = vpop.permute.xlu1 %1580  ;;  %v1577_v49 = vunpack.i.l.bf16 %v1576_v45  ;;  %v265_v40 = vld [vmem:[%s2070_s1 + $0x1c8] sm:$0xff]  ;;  %v270_v45 = vld [vmem:[%s2070_s1 + $0x1f0] sm:$0xff] }
  0xb6   : > { %984 = vmatpush.msra.mxu3 %v1562_v38  ;;  %918 = vmatpush.msra.mxu2 %v1568_v41  ;;  %v1582_v53 = vunpack.i.l.bf16 %v1581_v48  ;;  %v1583_v56 = vunpack.i.h.bf16 %v1581_v48  ;;  %v269_v41 = vld [vmem:[%s2070_s1 + $0x1e8] sm:$0xff] }
  0xb7   : > { %1408 = vmatmul.msk.f32.gmra.mxu3 %vm272_vm0, %v223_v43  ;;  %v346_v43 = vpop.f32.mrf.mxu1 }
  0xb8   : > { %919 = vmatpush.msra.mxu2 %v1573_v44  ;;  %985 = vmatpush.msra.mxu3 %v1567_v42  ;;  %v266_v44 = vld [vmem:[%s2070_s1 + $0x1d0] sm:$0xff] }
  0xb9   : > { %1433 = vmatmul.msk.f32.vlgmr.msra.gmra.mxu1 %vm272_vm0, %v240_v4 }
  0xba   : > { %920 = vmatpush.msra.mxu2 %v1578_v47  ;;  %986 = vmatpush.msra.mxu3 %v1572_v46  ;;  %v267_v47 = vld [vmem:[%s2070_s1 + $0x1d8] sm:$0xff] }
  0xbb   : > { %1429 = vmatmul.msk.f32.vlgmr.msra.gmra.mxu0 %vm272_vm0, %v244_v3 }
  0xbc   : > { %987 = vmatpush.msra.mxu3 %v1577_v49  ;;  %v1591_v58 = vpop.permute.xlu0 %1590 }
  0xbd   : > { %1417 = vmatmul.msk.f32.vlgmr.msrb.gmra.mxu2 %vm272_vm0, %v232_v52  ;;  %v1592_v63 = vunpack.i.l.bf16 %v1591_v58  ;;  %v1593_v1 = vunpack.i.h.bf16 %v1591_v58  ;;  %v1596_v2 = vpop.permute.xlu1 %1595  ;;  %v344_v52 = vadd.f32 %v343_v37, %v302_v36 }
  0xbe   : > { %1150 = vmatpush.msrb.mxu2 %v1552_v31  ;;  %988 = vmatpush.msra.mxu3 %v1582_v53  ;;  %v1598_v5 = vunpack.i.h.bf16 %v1596_v2  ;;  %v1597_v6 = vunpack.i.l.bf16 %v1596_v2  ;;  %v255_v31 = vld [vmem:[%s2070_s1 + $0x178] sm:$0xff] }
  0xbf   : > { %1421 = vmatmul.msk.f32.vlgmr.msrb.gmra.mxu3 %vm272_vm0, %v236_v55  ;;  %v349_v48 = vpop.f32.mrf.mxu1 }
  0xc0   : > { %1151 = vmatpush.msrb.mxu2 %v1557_v33  ;;  %989 = vmatpush.msra.mxu3 %v1583_v56  ;;  %v258_v33 = vld [vmem:[%s2070_s1 + $0x190] sm:$0xff] }
  0xc1   : > { %1434 = vmatmul.msk.f32.gmra.mxu1 %vm272_vm0, %v241_v10 }
  0xc2   : > { %1219 = vmatpush.msrb.mxu3 %v1587_v57  ;;  %1152 = vmatpush.msrb.mxu2 %v1562_v38  ;;  %v263_v38 = vld [vmem:[%s2070_s1 + $0x1b8] sm:$0xff] }
  0xc3   : > { %1430 = vmatmul.msk.f32.gmra.mxu0 %vm272_vm0, %v245_v9 }
  0xc4   : > { %1153 = vmatpush.msrb.mxu2 %v1567_v42  ;;  %1220 = vmatpush.msrb.mxu3 %v1588_v61  ;;  %v305_v42 = vpop.f32.mrf.mxu0 }
  0xc5   : > { %1418 = vmatmul.msk.f32.gmra.mxu2 %vm272_vm0, %v233_v62  ;;  %v347_v57 = vadd.f32 %v346_v43, %v305_v42 }
  0xc6   : > { %1154 = vmatpush.msrb.mxu2 %v1572_v46  ;;  %1221 = vmatpush.msrb.mxu3 %v1592_v63 }
  0xc7   : > { %1422 = vmatmul.msk.f32.gmra.mxu3 %vm272_vm0, %v237_v0  ;;  %v352_v51 = vpop.f32.mrf.mxu1 }
  0xc8   : > { %1155 = vmatpush.msrb.mxu2 %v1577_v49  ;;  %1222 = vmatpush.msrb.mxu3 %v1593_v1  ;;  %v271_v49 = vld [vmem:[%s2070_s1 + $0x1f8] sm:$0xff] }
  0xc9   : > { %1435 = vmatmul.msk.f32.gmra.mxu1 %vm272_vm0, %v242_v17 }
  0xca   : > { %1156 = vmatpush.msrb.mxu2 %v1582_v53  ;;  %1223 = vmatpush.msrb.mxu3 %v1597_v6 }
  0xcb   : > { %1431 = vmatmul.msk.f32.gmra.mxu0 %vm272_vm0, %v246_v16 }
  0xcc   : > { %1157 = vmatpush.msrb.mxu2 %v1583_v56  ;;  %1224 = vmatpush.msrb.mxu3 %v1598_v5  ;;  %v308_v46 = vpop.f32.mrf.mxu0 }
  0xcd   : > { %1419 = vmatmul.msk.f32.gmra.mxu2 %vm272_vm0, %v234_v7  ;;  %v350_v2 = vadd.f32 %v349_v48, %v308_v46 }
  0xce   : > { %1225 = vmatpush.msrb.mxu3 %v1602_v13 }
  0xcf   : > { %1423 = vmatmul.msk.f32.gmra.mxu3 %vm272_vm0, %v238_v8  ;;  %v612_v60 = vpop.f32.mrf.mxu1 }
  0xd0   : > { %1226 = vmatpush.msrb.mxu3 %v1603_v15 }
  0xd1   : > { %1436 = vmatmul.msk.f32.gmra.mxu1 %vm272_vm0, %v243_v21 }
  0xd3   : > { %1432 = vmatmul.msk.f32.gmra.mxu0 %vm272_vm0, %v247_v20 }
  0xd4   : > { %v311_v50 = vpop.f32.mrf.mxu0 }
  0xd5   : > { %1420 = vmatmul.msk.f32.gmra.mxu2 %vm272_vm0, %v235_v11  ;;  %v353_v12 = vadd.f32 %v352_v51, %v311_v50 }
  0xd7   : > { %1424 = vmatmul.msk.f32.gmra.mxu3 %vm272_vm0, %v239_v14  ;;  %v615_v7 = vpop.f32.mrf.mxu1 }
  0xd9   : > { %1453 = vmatmul.msk.f32.vlgmr.msrb.gmra.mxu1 %vm272_vm0, %v256_v25 }
  0xdb   : > { %1449 = vmatmul.msk.f32.vlgmr.msrb.gmra.mxu0 %vm272_vm0, %v260_v24 }
  0xdc   : > { %v571_v59 = vpop.f32.mrf.mxu0 }
  0xdd   : > { %1437 = vmatmul.msk.f32.vlgmr.msra.gmra.mxu2 %vm272_vm0, %v248_v18 }
  0xdf   : > { %1441 = vmatmul.msk.f32.vlgmr.msra.gmra.mxu3 %vm272_vm0, %v252_v19 }
  0xe1   : > { %1454 = vmatmul.msk.f32.gmra.mxu1 %vm272_vm0, %v257_v29 }
  0xe3   : > { %1450 = vmatmul.msk.f32.gmra.mxu0 %vm272_vm0, %v261_v28 }
  0xe4   : > { %v574_v5 = vpop.f32.mrf.mxu0 }
  0xe5   : > { %1438 = vmatmul.msk.f32.gmra.mxu2 %vm272_vm0, %v249_v22  ;;  %v613_v22 = vadd.f32 %v612_v60, %v571_v59 }
  0xe7   : > { %1442 = vmatmul.msk.f32.gmra.mxu3 %vm272_vm0, %v253_v23 }
  0xe9   : > { %1455 = vmatmul.msk.f32.gmra.mxu1 %vm272_vm0, %v258_v33 }
  0xeb   : > { %1451 = vmatmul.msk.f32.gmra.mxu0 %vm272_vm0, %v262_v32  ;;  %v616_v32 = vadd.f32 %v615_v7, %v574_v5 }
  0xed   : > { %1439 = vmatmul.msk.f32.gmra.mxu2 %vm272_vm0, %v250_v26 }
  0xef   : > { %1443 = vmatmul.msk.f32.gmra.mxu3 %vm272_vm0, %v254_v27 }
  0xf1   : > { %1456 = vmatmul.msk.f32.gmra.mxu1 %vm272_vm0, %v259_v39 }
  0xf3   : > { %1452 = vmatmul.msk.f32.gmra.mxu0 %vm272_vm0, %v263_v38 }
  0xf5   : > { %1440 = vmatmul.msk.f32.gmra.mxu2 %vm272_vm0, %v251_v30 }
  0xf7   : > { %1444 = vmatmul.msk.f32.gmra.mxu3 %vm272_vm0, %v255_v31 }
  0xfd   : > { %1457 = vmatmul.msk.f32.vlgmr.msrb.gmra.mxu2 %vm272_vm0, %v264_v34 }
  0xff   : > { %1461 = vmatmul.msk.f32.vlgmr.msrb.gmra.mxu3 %vm272_vm0, %v268_v35 }
 0x105   : > { %1458 = vmatmul.msk.f32.gmra.mxu2 %vm272_vm0, %v265_v40 }
 0x107   : > { %1462 = vmatmul.msk.f32.gmra.mxu3 %vm272_vm0, %v269_v41  ;;  %v577_v16 = vpop.f32.mrf.mxu0 }
 0x10b   : > { %v618_v19 = vpop.f32.mrf.mxu1 }
 0x10c   : > { %v619_v42 = vadd.f32 %v618_v19, %v577_v16 }
 0x10d   : > { %1459 = vmatmul.msk.f32.gmra.mxu2 %vm272_vm0, %v266_v44 }
 0x10f   : > { %1463 = vmatmul.msk.f32.gmra.mxu3 %vm272_vm0, %v270_v45 }
 0x115   : > { %1460 = vmatmul.msk.f32.gmra.mxu2 %vm272_vm0, %v267_v47 }
 0x117   : > { %1464 = vmatmul.msk.f32.gmra.mxu3 %vm272_vm0, %v271_v49 }
 0x120   : > { %v416_v53 = vpop.f32.mrf.mxu2 }
 0x121   : > { %v428_v54 = vadd.f32 %v416_v53, %v344_v52 }
 0x122   : > { %v493_v55 = vpop.f32.mrf.mxu3 }
 0x123   : > { %v505_v56 = vadd.f32 %v493_v55, %v428_v54 }
 0x125   : > { %538 = vst.msk [vmem:[%s1982_s26] sm:$0xff] %vm509_vm1, %v505_v56  ;;  %v510_v58 = vsel %vm509_vm1, %v505_v56, 0.0  ;;  %v522_v63 = vmul.f32 %v505_v56, %v505_v56 }
 0x126   : > { %511 = vadd.xlane.f32.xlu0 %v510_v58 }
 0x127   : > { %v526_v4 = vsel %vm509_vm1, %v522_v63, 0.0 }
 0x128   : > { %v419_v61 = vpop.f32.mrf.mxu2 }
 0x129   : > { %v429_v62 = vadd.f32 %v419_v61, %v347_v57 }
 0x12a   : > { %v496_v0 = vpop.f32.mrf.mxu3 }
 0x12b   : > { %v506_v1 = vadd.f32 %v496_v0, %v429_v62 }
 0x12d   : > { %539 = vst.msk [vmem:[%s1982_s26 + $0x8] sm:$0xff] %vm509_vm1, %v506_v1  ;;  %v513_v3 = vsel %vm509_vm1, %v506_v1, 0.0  ;;  %v523_v9 = vmul.f32 %v506_v1, %v506_v1 }
 0x12e   : > { %514 = vadd.xlane.f32.xlu1 %v513_v3  ;;  %527 = vadd.xlane.f32.xlu0 %v526_v4  ;;  %v621_v30 = vpop.f32.mrf.mxu1 }
 0x12f   : > { %v529_v14 = vsel %vm509_vm1, %v523_v9, 0.0 }
 0x130   : > { %v422_v6 = vpop.f32.mrf.mxu2  ;;  %v580_v28 = vpop.f32.mrf.mxu0 }
 0x131   : > { %v430_v8 = vadd.f32 %v422_v6, %v350_v2  ;;  %v622_v50 = vadd.f32 %v621_v30, %v580_v28 }
 0x132   : > { %v499_v10 = vpop.f32.mrf.mxu3 }
 0x133   : > { %v507_v11 = vadd.f32 %v499_v10, %v430_v8 }
 0x135   : > { %540 = vst.msk [vmem:[%s1982_s26 + $0x10] sm:$0xff] %vm509_vm1, %v507_v11  ;;  %v516_v13 = vsel %vm509_vm1, %v507_v11, 0.0  ;;  %v524_v18 = vmul.f32 %v507_v11, %v507_v11 }
 0x136   : > { %517 = vadd.xlane.f32.xlu2 %v516_v13  ;;  %530 = vadd.xlane.f32.xlu1 %v529_v14  ;;  %v857_v41 = vpop.f32.mrf.mxu1 }
 0x137   : > { %v532_v23 = vsel %vm509_vm1, %v524_v18, 0.0 }
 0x138   : > { %v425_v15 = vpop.f32.mrf.mxu2  ;;  %v816_v40 = vpop.f32.mrf.mxu0 }
 0x139   : > { %v431_v17 = vadd.f32 %v425_v15, %v353_v12  ;;  %v858_v61 = vadd.f32 %v857_v41, %v816_v40 }
 0x13a   : > { %v502_v20 = vpop.f32.mrf.mxu3 }
 0x13b   : > { %v508_v21 = vadd.f32 %v502_v20, %v431_v17 }
 0x13d   : > { %541 = vst.msk [vmem:[%s1982_s26 + $0x18] sm:$0xff] %vm509_vm1, %v508_v21  ;;  %v525_v24 = vmul.f32 %v508_v21, %v508_v21  ;;  %v519_v33 = vsel %vm509_vm1, %v508_v21, 0.0 }
 0x13e   : > { %533 = vadd.xlane.f32.xlu2 %v532_v23  ;;  %v860_v54 = vpop.f32.mrf.mxu1 }
 0x13f   : > { %v535_v25 = vsel %vm509_vm1, %v525_v24, 0.0 }
 0x140   : > { %v653_v26 = vpop.f32.mrf.mxu2  ;;  %536 = vadd.xlane.f32.xlu0 %v535_v25  ;;  %v819_v53 = vpop.f32.mrf.mxu0 }
 0x141   : > { %v665_v27 = vadd.f32 %v653_v26, %v613_v22  ;;  %v861_v7 = vadd.f32 %v860_v54, %v819_v53 }
 0x142   : > { %v730_v29 = vpop.f32.mrf.mxu3 }
 0x143   : > { %v742_v31 = vadd.f32 %v730_v29, %v665_v27 }
 0x145   : > { %1425 = vst.msk [vmem:[%s1982_s26 + $0x20] sm:$0xff] %vm509_vm1, %v742_v31  ;;  %v746_v34 = vsel %vm509_vm1, %v742_v31, 0.0  ;;  %v758_v37 = vmul.f32 %v742_v31, %v742_v31 }
 0x146   : > { %520 = vadd.xlane.f32.xlu2 %v519_v33  ;;  %747 = vadd.xlane.f32.xlu1 %v746_v34  ;;  %v863_v3 = vpop.f32.mrf.mxu1 }
 0x147   : > { %v762_v43 = vsel %vm509_vm1, %v758_v37, 0.0 }
 0x148   : > { %v656_v35 = vpop.f32.mrf.mxu2  ;;  %v822_v1 = vpop.f32.mrf.mxu0 }
 0x149   : > { %v666_v36 = vadd.f32 %v656_v35, %v616_v32  ;;  %v864_v17 = vadd.f32 %v863_v3, %v822_v1 }
 0x14a   : > { %v733_v38 = vpop.f32.mrf.mxu3 }
 0x14b   : > { %v743_v39 = vadd.f32 %v733_v38, %v666_v36 }
 0x14d   : > { %1426 = vst.msk [vmem:[%s1982_s26 + $0x28] sm:$0xff] %vm509_vm1, %v743_v39  ;;  %v759_v44 = vmul.f32 %v743_v39, %v743_v39  ;;  %v749_v51 = vsel %vm509_vm1, %v743_v39, 0.0 }
 0x14e   : > { %763 = vadd.xlane.f32.xlu2 %v762_v43  ;;  %v866_v15 = vpop.f32.mrf.mxu1 }
 0x14f   : > { %v765_v45 = vsel %vm509_vm1, %v759_v44, 0.0 }
 0x150   : > { %v659_v46 = vpop.f32.mrf.mxu2  ;;  %766 = vadd.xlane.f32.xlu0 %v765_v45  ;;  %v825_v13 = vpop.f32.mrf.mxu0 }
 0x151   : > { %v667_v47 = vadd.f32 %v659_v46, %v619_v42  ;;  %v867_v27 = vadd.f32 %v866_v15, %v825_v13 }
 0x152   : > { %v736_v48 = vpop.f32.mrf.mxu3 }
 0x153   : > { %v744_v49 = vadd.f32 %v736_v48, %v667_v47 }
 0x155   : > { %1427 = vst.msk [vmem:[%s1982_s26 + $0x30] sm:$0xff] %vm509_vm1, %v744_v49  ;;  %v760_v52 = vmul.f32 %v744_v49, %v744_v49  ;;  %v752_v56 = vsel %vm509_vm1, %v744_v49, 0.0 }
 0x156   : > { %750 = vadd.xlane.f32.xlu2 %v749_v51  ;;  %v1118_v26 = vpop.f32.mrf.mxu1 }
 0x157   : > { %v768_v55 = vsel %vm509_vm1, %v760_v52, 0.0 }
 0x158   : > { %v662_v57 = vpop.f32.mrf.mxu2  ;;  %769 = vadd.xlane.f32.xlu1 %v768_v55  ;;  %753 = vadd.xlane.f32.xlu0 %v752_v56  ;;  %v1077_v25 = vpop.f32.mrf.mxu0 }
 0x159   : > { %v668_v58 = vadd.f32 %v662_v57, %v622_v50  ;;  %v1119_v35 = vadd.f32 %v1118_v26, %v1077_v25 }
 0x15a   : > { %v739_v59 = vpop.f32.mrf.mxu3 }
 0x15b   : > { %v745_v60 = vadd.f32 %v739_v59, %v668_v58 }
 0x15d   : > { %1428 = vst.msk [vmem:[%s1982_s26 + $0x38] sm:$0xff] %vm509_vm1, %v745_v60  ;;  %v761_v62 = vmul.f32 %v745_v60, %v745_v60  ;;  %v755_v0 = vsel %vm509_vm1, %v745_v60, 0.0 }
 0x15e   : > { %v1121_v38 = vpop.f32.mrf.mxu1 }
 0x15f   : > { %v771_v63 = vsel %vm509_vm1, %v761_v62, 0.0 }
 0x160   : > { %v922_v2 = vpop.f32.mrf.mxu2  ;;  %772 = vadd.xlane.f32.xlu2 %v771_v63  ;;  %756 = vadd.xlane.f32.xlu1 %v755_v0  ;;  %v1080_v37 = vpop.f32.mrf.mxu0 }
 0x161   : > { %v934_v4 = vadd.f32 %v922_v2, %v858_v61  ;;  %v1122_v45 = vadd.f32 %v1121_v38, %v1080_v37 }
 0x162   : > { %v991_v5 = vpop.f32.mrf.mxu3 }
 0x163   : > { %v1003_v6 = vadd.f32 %v991_v5, %v934_v4 }
 0x165   : > { %1445 = vst.msk [vmem:[%s1982_s26 + $0x40] sm:$0xff] %vm509_vm1, %v1003_v6  ;;  %v1007_v8 = vsel %vm509_vm1, %v1003_v6, 0.0  ;;  %v1019_v9 = vmul.f32 %v1003_v6, %v1003_v6 }
 0x166   : > { %1008 = vadd.xlane.f32.xlu0 %v1007_v8  ;;  %v1124_v51 = vpop.f32.mrf.mxu1 }
 0x167   : > { %v1023_v10 = vsel %vm509_vm1, %v1019_v9, 0.0 }
 0x168   : > { %v925_v11 = vpop.f32.mrf.mxu2  ;;  %1024 = vadd.xlane.f32.xlu1 %v1023_v10  ;;  %v1083_v49 = vpop.f32.mrf.mxu0 }
 0x169   : > { %v935_v12 = vadd.f32 %v925_v11, %v861_v7  ;;  %v1125_v55 = vadd.f32 %v1124_v51, %v1083_v49 }
 0x16a   : > { %v994_v14 = vpop.f32.mrf.mxu3 }
 0x16b   : > { %v1004_v16 = vadd.f32 %v994_v14, %v935_v12 }
 0x16d   : > { %1446 = vst.msk [vmem:[%s1982_s26 + $0x48] sm:$0xff] %vm509_vm1, %v1004_v16  ;;  %v1020_v18 = vmul.f32 %v1004_v16, %v1004_v16  ;;  %v1010_v20 = vsel %vm509_vm1, %v1004_v16, 0.0 }
 0x16e   : > { %v1127_v61 = vpop.f32.mrf.mxu1 }
 0x16f   : > { %v1026_v19 = vsel %vm509_vm1, %v1020_v18, 0.0 }
 0x170   : > { %v928_v21 = vpop.f32.mrf.mxu2  ;;  %1027 = vadd.xlane.f32.xlu2 %v1026_v19  ;;  %1011 = vadd.xlane.f32.xlu1 %v1010_v20  ;;  %v1086_v59 = vpop.f32.mrf.mxu0 }
 0x171   : > { %v936_v22 = vadd.f32 %v928_v21, %v864_v17  ;;  %v1128_v63 = vadd.f32 %v1127_v61, %v1086_v59 }
 0x172   : > { %v997_v23 = vpop.f32.mrf.mxu3 }
 0x173   : > { %v1005_v24 = vadd.f32 %v997_v23, %v936_v22 }
 0x175   : > { %1447 = vst.msk [vmem:[%s1982_s26 + $0x50] sm:$0xff] %vm509_vm1, %v1005_v24  ;;  %v1021_v28 = vmul.f32 %v1005_v24, %v1005_v24  ;;  %v1013_v29 = vsel %vm509_vm1, %v1005_v24, 0.0 }
 0x177   : > { %v1029_v30 = vsel %vm509_vm1, %v1021_v28, 0.0 }
 0x178   : > { %v931_v31 = vpop.f32.mrf.mxu2  ;;  %1014 = vadd.xlane.f32.xlu2 %v1013_v29  ;;  %1030 = vadd.xlane.f32.xlu0 %v1029_v30 }
 0x179   : > { %v937_v32 = vadd.f32 %v931_v31, %v867_v27 }
 0x17a   : > { %v1000_v33 = vpop.f32.mrf.mxu3 }
 0x17b   : > { %v1006_v34 = vadd.f32 %v1000_v33, %v937_v32 }
 0x17d   : > { %1448 = vst.msk [vmem:[%s1982_s26 + $0x58] sm:$0xff] %vm509_vm1, %v1006_v34  ;;  %v1022_v36 = vmul.f32 %v1006_v34, %v1006_v34  ;;  %v1016_v40 = vsel %vm509_vm1, %v1006_v34, 0.0 }
 0x17f   : > { %v1032_v39 = vsel %vm509_vm1, %v1022_v36, 0.0 }
 0x180   : > { %v1159_v41 = vpop.f32.mrf.mxu2  ;;  %1033 = vadd.xlane.f32.xlu1 %v1032_v39  ;;  %1017 = vadd.xlane.f32.xlu0 %v1016_v40 }
 0x181   : > { %v1171_v42 = vadd.f32 %v1159_v41, %v1119_v35 }
 0x182   : > { %v1228_v43 = vpop.f32.mrf.mxu3 }
 0x183   : > { %v1240_v44 = vadd.f32 %v1228_v43, %v1171_v42 }
 0x185   : > { %1465 = vst.msk [vmem:[%s1982_s26 + $0x60] sm:$0xff] %vm509_vm1, %v1240_v44  ;;  %v1244_v46 = vsel %vm509_vm1, %v1240_v44, 0.0  ;;  %v1256_v47 = vmul.f32 %v1240_v44, %v1240_v44 }
 0x186   : > { %1245 = vadd.xlane.f32.xlu2 %v1244_v46 }
 0x187   : > { %v1260_v48 = vsel %vm509_vm1, %v1256_v47, 0.0 }
 0x188   : > { %v1162_v50 = vpop.f32.mrf.mxu2  ;;  %1261 = vadd.xlane.f32.xlu0 %v1260_v48 }
 0x189   : > { %v1172_v52 = vadd.f32 %v1162_v50, %v1122_v45 }
 0x18a   : > { %v1231_v53 = vpop.f32.mrf.mxu3 }
 0x18b   : > { %v1241_v54 = vadd.f32 %v1231_v53, %v1172_v52 }
 0x18d   : > { %1466 = vst.msk [vmem:[%s1982_s26 + $0x68] sm:$0xff] %vm509_vm1, %v1241_v54  ;;  %v1247_v56 = vsel %vm509_vm1, %v1241_v54, 0.0  ;;  %v1257_v3 = vmul.f32 %v1241_v54, %v1241_v54 }
 0x18f   : > { %v1263_v7 = vsel %vm509_vm1, %v1257_v3, 0.0 }
 0x190   : > { %v1165_v57 = vpop.f32.mrf.mxu2  ;;  %1248 = vadd.xlane.f32.xlu0 %v1247_v56 }
 0x191   : > { %v1173_v58 = vadd.f32 %v1165_v57, %v1125_v55 }
 0x192   : > { %v1234_v60 = vpop.f32.mrf.mxu3 }
 0x193   : > { %v1242_v62 = vadd.f32 %v1234_v60, %v1173_v58 }
 0x195   : > { %1467 = vst.msk [vmem:[%s1982_s26 + $0x70] sm:$0xff] %vm509_vm1, %v1242_v62  ;;  %v1250_v0 = vsel %vm509_vm1, %v1242_v62, 0.0  ;;  %v1258_v10 = vmul.f32 %v1242_v62, %v1242_v62 }
 0x196   : > { %1251 = vadd.xlane.f32.xlu1 %v1250_v0 }
 0x197   : > { %v1266_v11 = vsel %vm509_vm1, %v1258_v10, 0.0 }
 0x198   : > { %v1168_v1 = vpop.f32.mrf.mxu2 }
 0x199   : > { %v1174_v2 = vadd.f32 %v1168_v1, %v1128_v63  ;;  %v512_v13 = vpop.xlane.xlu0 %511 }
 0x19a   : > { %v1237_v4 = vpop.f32.mrf.mxu3 }
 0x19b   : > { %v1243_v5 = vadd.f32 %v1237_v4, %v1174_v2 }
 0x19d   : > { %1468 = vst.msk [vmem:[%s1982_s26 + $0x78] sm:$0xff] %vm509_vm1, %v1243_v5  ;;  %v1253_v6 = vsel %vm509_vm1, %v1243_v5, 0.0  ;;  %v1259_v8 = vmul.f32 %v1243_v5, %v1243_v5 }
 0x19e   : > { %1254 = vadd.xlane.f32.xlu2 %v1253_v6  ;;  %1264 = vadd.xlane.f32.xlu1 %v1263_v7 }
 0x19f   : > { %v1269_v9 = vsel %vm509_vm1, %v1259_v8, 0.0 }
 0x1a0   : > { %1270 = vadd.xlane.f32.xlu0 %v1269_v9 }
 0x1a1   : > { %v515_v15 = vpop.xlane.xlu1 %514  ;;  %v528_v16 = vpop.xlane.xlu0 %527 }
 0x1a6   : > { %1267 = vadd.xlane.f32.xlu2 %v1266_v11 }
 0x1a9   : > { %v518_v12 = vpop.xlane.xlu2 %517  ;;  %v531_v19 = vpop.xlane.xlu1 %530 }
 0x1b1   : > { %v534_v14 = vpop.xlane.xlu2 %533 }
 0x1b3   : > { %v537_v18 = vpop.xlane.xlu0 %536 }
 0x1b9   : > { %v521_v17 = vpop.xlane.xlu2 %520  ;;  %v748_v22 = vpop.xlane.xlu1 %747 }
 0x1ba   : > { %v774_v34 = vadd.f32 %v748_v22, %v512_v13 }
 0x1c1   : > { %v764_v20 = vpop.xlane.xlu2 %763 }
 0x1c2   : > { %v778_v35 = vadd.f32 %v764_v20, %v528_v16 }
 0x1c3   : > { %v767_v21 = vpop.xlane.xlu0 %766 }
 0x1c4   : > { %v779_v47 = vadd.f32 %v767_v21, %v531_v19 }
 0x1c9   : > { %v751_v23 = vpop.xlane.xlu2 %750 }
 0x1ca   : > { %v775_v48 = vadd.f32 %v751_v23, %v515_v15 }
 0x1cb   : > { %v770_v24 = vpop.xlane.xlu1 %769  ;;  %v754_v25 = vpop.xlane.xlu0 %753 }
 0x1cc   : > { %v780_v63 = vadd.f32 %v770_v24, %v534_v14  ;;  %v776_v0 = vadd.f32 %v754_v25, %v518_v12 }
 0x1d3   : > { %v773_v26 = vpop.xlane.xlu2 %772  ;;  %v757_v28 = vpop.xlane.xlu1 %756 }
 0x1d4   : > { %v781_v49 = vadd.f32 %v773_v26, %v537_v18  ;;  %v777_v50 = vadd.f32 %v757_v28, %v521_v17 }
 0x1d9   : > { %v1009_v27 = vpop.xlane.xlu0 %1008 }
 0x1da   : > { %v1035_v38 = vadd.f32 %v1009_v27, %v774_v34 }
 0x1db   : > { %v1025_v31 = vpop.xlane.xlu1 %1024 }
 0x1dc   : > { %v1039_v39 = vadd.f32 %v1025_v31, %v778_v35 }
 0x1e3   : > { %v1028_v29 = vpop.xlane.xlu2 %1027  ;;  %v1012_v36 = vpop.xlane.xlu1 %1011 }
 0x1e4   : > { %v1040_v51 = vadd.f32 %v1028_v29, %v779_v47  ;;  %v1036_v52 = vadd.f32 %v1012_v36, %v775_v48 }
 0x1eb   : > { %v1031_v30 = vpop.xlane.xlu0 %1030  ;;  %v1015_v32 = vpop.xlane.xlu2 %1014 }
 0x1ec   : > { %v1037_v2 = vadd.f32 %v1015_v32, %v776_v0  ;;  %v1041_v3 = vadd.f32 %v1031_v30, %v780_v63 }
 0x1f3   : > { %v1018_v33 = vpop.xlane.xlu0 %1017  ;;  %v1034_v44 = vpop.xlane.xlu1 %1033 }
 0x1f4   : > { %v1042_v55 = vadd.f32 %v1034_v44, %v781_v49  ;;  %v1038_v56 = vadd.f32 %v1018_v33, %v777_v50 }
 0x1f9   : > { %v1246_v37 = vpop.xlane.xlu2 %1245 }
 0x1fa   : > { %v1272_v41 = vadd.f32 %v1246_v37, %v1035_v38 }
 0x1fb   : > { %v1262_v40 = vpop.xlane.xlu0 %1261 }
 0x1fc   : > { %v1276_v42 = vadd.f32 %v1262_v40, %v1039_v39 }
 0x1fe   : > { %v1286_v43 = vsel %vm1285_vm2, %v1272_v41, %v1276_v42 }
 0x1ff   : > { %1291 = vst.msk [vmem:[%s2052_s30] sm:$0xff] %vm1290_vm3, %v1286_v43 }
 0x203   : > { %v1249_v46 = vpop.xlane.xlu0 %1248 }
 0x204   : > { %v1273_v57 = vadd.f32 %v1249_v46, %v1036_v52 }
 0x209   : > { %v1252_v45 = vpop.xlane.xlu1 %1251 }
 0x20a   : > { %v1274_v5 = vadd.f32 %v1252_v45, %v1037_v2 }
 0x211   : > { %v1255_v53 = vpop.xlane.xlu2 %1254  ;;  %v1265_v54 = vpop.xlane.xlu1 %1264 }
 0x212   : > { %v1277_v58 = vadd.f32 %v1265_v54, %v1040_v51  ;;  %v1275_v60 = vadd.f32 %v1255_v53, %v1038_v56 }
 0x213   : > { %v1271_v59 = vpop.xlane.xlu0 %1270 }
 0x214   : > { %v1287_v61 = vsel %vm1285_vm2, %v1273_v57, %v1277_v58  ;;  %v1279_v62 = vadd.f32 %v1271_v59, %v1042_v55 }
 0x215   : > { %1292 = vst.msk [vmem:[%s2052_s30 + $0x8] sm:$0xff] %vm1290_vm3, %v1287_v61 }
 0x216   : > { %v1289_v1 = vsel %vm1285_vm2, %v1275_v60, %v1279_v62 }
 0x217   : > { %1294 = vst.msk [vmem:[%s2052_s30 + $0x18] sm:$0xff] %vm1290_vm3, %v1289_v1 }
 0x219   : > { %v1268_v4 = vpop.xlane.xlu2 %1267 }
 0x21a   : > { %v1278_v6 = vadd.f32 %v1268_v4, %v1041_v3 }
 0x21c   : > { %v1288_v7 = vsel %vm1285_vm2, %v1274_v5, %v1278_v6 }
 0x21d   : > { %1293 = vst.msk [vmem:[%s2052_s30 + $0x10] sm:$0xff] %vm1290_vm3, %v1288_v7 }
 0x21e PF: > { %s14_s12 = sadd.s32 1, %s1610_s12  }
 0x21f   : > { %p11_p4 = scmp.ge.s32.totalorder %s14_s12, 4  }
 0x221   :  { %13 = sbr.rel (!%p11_p4) target bundleno = 1 (0x1), region = 73 }

// kernel: generator_forward.9
= control target key start
LH: loop header
LB: loop body
LE: loop exit
PB: predicated region body
PF: predicated region fallthrough
CT: control target
= control target key end

     0   :  { %s1120_s12 = smov 0   ;;  %s1309_s0 = inlined_call_operand.vmem [shape: f32[2,3,32,32], index: 0, kind: input, shape index: {}]   ;;  %s1310_s1 = inlined_call_operand.vmem [shape: f32[16,16,32], index: 1, kind: input, shape index: {}]   ;;  %s1311_s2 = inlined_call_operand.vmem [shape: f32[2,4,16,16], index: 2, kind: output, shape index: {0}]   ;;  %s1312_s3 = inlined_call_operand.vmem [shape: f32[2,16,2], index: 3, kind: output, shape index: {1}]  }
   0x1 LB: > { %s967_s13 = sadd.s32 4294967295, %s1096_s12   ;;  %p971_p0 = scmp.ge.s32.totalorder %s1096_s12, 1  ;;  %s1096_s12 = sphi %s1120_s12, %s14_s12  }
   0x2   : > { %p140_p1 = scmp.lt.s32.totalorder %s1096_s12, 3 }
   0x4   : > { %p141_p2 = pnand %p971_p0, %p140_p1 }
   0x5   : > { %p169_p3 = scmp.lt.s32.totalorder (!%p141_p2), %s967_s13, 1  ;;  %s1098_s18 = smov (!%p141_p2), 120  }
   0x6   : > { %144 = sbr.rel (%p141_p2) target bundleno = 464 (0x1d0), region = 28  ;;  %s1099_s21 = smov (!%p141_p2), 112  }
   0xb   : > { %s1314_s13 = smov (!%p169_p3, %s967_s13), 1  ;;  %v196_v13 = vld [vmem:[%s1310_s1] sm:$0xff]  ;;  %vm228_vm0 = vcmask 261120   ;;  %v198_v19 = vld [vmem:[%s1310_s1 + $0x10] sm:$0xff]  ;;  %v197_v20 = vld [vmem:[%s1310_s1 + $0x8] sm:$0xff]  ;;  %vm381_vm1 = vcmask 130048  }
   0xc   : > { %s1019_s14 = smul.u32 96, %s1314_s13  ;;  %v199_v21 = vld [vmem:[%s1310_s1 + $0x18] sm:$0xff]  ;;  %v204_v22 = vld [vmem:[%s1310_s1 + $0x40] sm:$0xff]  ;;  %v206_v23 = vld [vmem:[%s1310_s1 + $0x50] sm:$0xff]  ;;  %s1017_s7 = sshll.u32 %s1314_s13, 6  ;;  %vm873_vm2 = vcmask 7168  }
   0xd   : > { %v200_v36 = vld [vmem:[%s1310_s1 + $0x20] sm:$0xff]  ;;  %v202_v39 = vld [vmem:[%s1310_s1 + $0x30] sm:$0xff]  ;;  %v201_v47 = vld [vmem:[%s1310_s1 + $0x28] sm:$0xff]  ;;  %s1266_s10 = scalar_lea.vmem %s1311_s2, %s1017_s7  ;;  %s1018_s11 = sshll.u32 %s1314_s13, 4  ;;  %vm876_vm3 = vcmask 15360  }
   0xe   : > { %s173_s17 = scalar_lea.vmem %s1309_s0, %s1019_s14  ;;  %v203_v50 = vld [vmem:[%s1310_s1 + $0x38] sm:$0xff]  ;;  %v205_v57 = vld [vmem:[%s1310_s1 + $0x48] sm:$0xff]  ;;  %v208_v60 = vld [vmem:[%s1310_s1 + $0x60] sm:$0xff]  ;;  %s183_s16 = scalar_lea.vmem %s1312_s3, %s1018_s11 }
   0xf   : > { %v186_v0 = vld [vmem:[%s173_s17 + $0x10] sm:$0xff]  ;;  %v187_v1 = vld [vmem:[%s173_s17 + $0x18] sm:$0xff]  ;;  %v184_v2 = vld [vmem:[%s173_s17] sm:$0xff] }
  0x10   : > { %v1030_v3 = vpack.i.bf16 %v186_v0, %v187_v1  ;;  %v190_v4 = vld [vmem:[%s173_s17 + $0x30] sm:$0xff]  ;;  %v191_v5 = vld [vmem:[%s173_s17 + $0x38] sm:$0xff]  ;;  %276 = vmatpush.msra.mxu1 %v187_v1  ;;  %v185_v9 = vld [vmem:[%s173_s17 + $0x8] sm:$0xff] }
  0x11   : > { %v1040_v6 = vpack.i.bf16 %v184_v2, %v190_v4  ;;  %v194_v7 = vld [vmem:[%s173_s17 + $0x50] sm:$0xff]  ;;  %247 = vmatpush.msra.mxu0 %v191_v5  ;;  %v195_v8 = vld [vmem:[%s173_s17 + $0x58] sm:$0xff]  ;;  %v188_v11 = vld [vmem:[%s173_s17 + $0x20] sm:$0xff]  ;;  %v1035_v14 = vpack.i.bf16 %v185_v9, %v191_v5 }
  0x12   : > { %1031 = vrot.lane.b32.xlu0 %v1030_v3, %s1098_s18  ;;  %277 = vmatpush.msra.mxu1 %v186_v0  ;;  %v1050_v10 = vpack.i.bf16 %v194_v7, %v195_v8  ;;  %v189_v12 = vld [vmem:[%s173_s17 + $0x28] sm:$0xff]  ;;  %v192_v15 = vld [vmem:[%s173_s17 + $0x40] sm:$0xff]  ;;  %v207_v56 = vld [vmem:[%s1310_s1 + $0x58] sm:$0xff] }
  0x13   : > { %1041 = vrot.lane.b32.xlu1 %v1040_v6, %s1098_s18  ;;  %248 = vmatpush.msra.mxu0 %v190_v4  ;;  %v193_v16 = vld [vmem:[%s173_s17 + $0x48] sm:$0xff]  ;;  %v1045_v17 = vpack.i.bf16 %v188_v11, %v189_v12  ;;  %v210_v62 = vld [vmem:[%s1310_s1 + $0x70] sm:$0xff] }
  0x14   : > { %278 = vmatpush.msra.mxu1 %v185_v9  ;;  %1051 = vrot.lane.b32.xlu2 %v1050_v10, %s1098_s18  ;;  %v1055_v18 = vpack.i.bf16 %v192_v15, %v193_v16  ;;  %v213_v9 = vld [vmem:[%s1310_s1 + $0x88] sm:$0xff] }
  0x15   : > { %249 = vmatpush.msra.mxu0 %v189_v12 }
  0x16   : > { %279 = vmatpush.msra.mxu1 %v184_v2  ;;  %v214_v2 = vld [vmem:[%s1310_s1 + $0x90] sm:$0xff] }
  0x17   : > { %979 = vmatmul.msk.f32.vlgmr.msra.gmra.mxu1 %vm228_vm0, %v196_v13  ;;  %250 = vmatpush.msra.mxu0 %v188_v11  ;;  %v220_v13 = vld [vmem:[%s1310_s1 + $0xc0] sm:$0xff] }
  0x18   : > { %445 = vmatpush.msrb.mxu1 %v191_v5  ;;  %977 = vmatmul.msk.f32.vlgmr.msra.gmra.mxu0 %vm228_vm0, %v198_v19  ;;  %v209_v5 = vld [vmem:[%s1310_s1 + $0x68] sm:$0xff]  ;;  %v226_v19 = vld [vmem:[%s1310_s1 + $0xf0] sm:$0xff] }
  0x19   : > { %416 = vmatpush.msrb.mxu0 %v195_v8  ;;  %v215_v8 = vld [vmem:[%s1310_s1 + $0x98] sm:$0xff] }
  0x1a   : > { %446 = vmatpush.msrb.mxu1 %v190_v4  ;;  %1036 = vrot.lane.b32.xlu0 %v1035_v14, %s1098_s18 }
  0x1b   : > { %1046 = vrot.lane.b32.xlu1 %v1045_v17, %s1098_s18  ;;  %417 = vmatpush.msrb.mxu0 %v194_v7  ;;  %v211_v7 = vld [vmem:[%s1310_s1 + $0x78] sm:$0xff] }
  0x1c   : > { %447 = vmatpush.msrb.mxu1 %v189_v12  ;;  %1056 = vrot.lane.b32.xlu2 %v1055_v18, %s1098_s18  ;;  %v222_v12 = vld [vmem:[%s1310_s1 + $0xd0] sm:$0xff] }
  0x1d   : > { %418 = vmatpush.msrb.mxu0 %v193_v16  ;;  %v223_v16 = vld [vmem:[%s1310_s1 + $0xd8] sm:$0xff] }
  0x1e   : > { %448 = vmatpush.msrb.mxu1 %v188_v11  ;;  %v218_v11 = vld [vmem:[%s1310_s1 + $0xb0] sm:$0xff] }
  0x1f   : > { %419 = vmatpush.msrb.mxu0 %v192_v15  ;;  %980 = vmatmul.msk.f32.gmra.mxu1 %vm228_vm0, %v197_v20  ;;  %v219_v15 = vld [vmem:[%s1310_s1 + $0xb8] sm:$0xff]  ;;  %v225_v20 = vld [vmem:[%s1310_s1 + $0xe8] sm:$0xff] }
  0x20   : > { %978 = vmatmul.msk.f32.gmra.mxu0 %vm228_vm0, %v199_v21  ;;  %v227_v21 = vld [vmem:[%s1310_s1 + $0xf8] sm:$0xff] }
  0x22   : > { %1061 = vrot.lane.b32.xlu0 %v1030_v3, %s1099_s21  ;;  %v212_v3 = vld [vmem:[%s1310_s1 + $0x80] sm:$0xff] }
  0x23   : > { %1066 = vrot.lane.b32.xlu1 %v1035_v14, %s1099_s21  ;;  %v217_v14 = vld [vmem:[%s1310_s1 + $0xa8] sm:$0xff] }
  0x24   : > { %1071 = vrot.lane.b32.xlu2 %v1040_v6, %s1099_s21 }
  0x27   : > { %987 = vmatmul.msk.f32.vlgmr.msrb.gmra.mxu1 %vm228_vm0, %v204_v22 }
  0x28   : > { %985 = vmatmul.msk.f32.vlgmr.msrb.gmra.mxu0 %vm228_vm0, %v206_v23 }
  0x2a   : > { %1076 = vrot.lane.b32.xlu0 %v1045_v17, %s1099_s21  ;;  %v221_v17 = vld [vmem:[%s1310_s1 + $0xc8] sm:$0xff] }
  0x2b   : > { %1081 = vrot.lane.b32.xlu1 %v1050_v10, %s1099_s21  ;;  %v216_v10 = vld [vmem:[%s1310_s1 + $0xa0] sm:$0xff] }
  0x2c   : > { %1086 = vrot.lane.b32.xlu2 %v1055_v18, %s1099_s21  ;;  %v224_v18 = vld [vmem:[%s1310_s1 + $0xe0] sm:$0xff] }
  0x2f   : > { %988 = vmatmul.msk.f32.gmra.mxu1 %vm228_vm0, %v205_v57 }
  0x30   : > { %986 = vmatmul.msk.f32.gmra.mxu0 %vm228_vm0, %v207_v56 }
  0x6e   : > { %v1052_v28 = vpop.permute.xlu2 %1051 }
  0x6f   : > { %v1053_v40 = vunpack.i.l.bf16 %v1052_v28  ;;  %v1054_v42 = vunpack.i.h.bf16 %v1052_v28 }
  0x76   : > { %v1057_v37 = vpop.permute.xlu2 %1056 }
  0x77   : > { %v1058_v44 = vunpack.i.l.bf16 %v1057_v37  ;;  %v1059_v48 = vunpack.i.h.bf16 %v1057_v37 }
  0x7e   : > { %v1072_v49 = vpop.permute.xlu2 %1071 }
  0x7f   : > { %v1074_v54 = vunpack.i.h.bf16 %v1072_v49  ;;  %v1073_v55 = vunpack.i.l.bf16 %v1072_v49 }
  0x84   : > { %v1032_v24 = vpop.permute.xlu0 %1031 }
  0x85   : > { %v1033_v25 = vunpack.i.l.bf16 %v1032_v24  ;;  %v1042_v26 = vpop.permute.xlu1 %1041  ;;  %v1034_v27 = vunpack.i.h.bf16 %v1032_v24 }
  0x86   : > { %v1043_v33 = vunpack.i.l.bf16 %v1042_v26  ;;  %v1044_v34 = vunpack.i.h.bf16 %v1042_v26  ;;  %v1087_v0 = vpop.permute.xlu2 %1086 }
  0x87   : > { %321 = vmatpush.msra.mxu2 %v1033_v25  ;;  %602 = vmatpush.msra.mxu1 %v1033_v25  ;;  %v1088_v4 = vunpack.i.l.bf16 %v1087_v0  ;;  %v1089_v6 = vunpack.i.h.bf16 %v1087_v0 }
  0x89   : > { %322 = vmatpush.msra.mxu2 %v1034_v27  ;;  %603 = vmatpush.msra.mxu1 %v1034_v27 }
  0x8c   : > { %v1037_v29 = vpop.permute.xlu0 %1036 }
  0x8d   : > { %v1038_v30 = vunpack.i.l.bf16 %v1037_v29  ;;  %v1039_v31 = vunpack.i.h.bf16 %v1037_v29  ;;  %v1047_v32 = vpop.permute.xlu1 %1046 }
  0x8e   : > { %v1048_v35 = vunpack.i.l.bf16 %v1047_v32  ;;  %v1049_v38 = vunpack.i.h.bf16 %v1047_v32 }
  0x8f   : > { %323 = vmatpush.msra.mxu2 %v1039_v31  ;;  %368 = vmatpush.msra.mxu3 %v1038_v30 }
  0x90   : > { %573 = vmatpush.msra.mxu0 %v1038_v30  ;;  %604 = vmatpush.msra.mxu1 %v1039_v31 }
  0x91   : > { %324 = vmatpush.msra.mxu2 %v1044_v34  ;;  %369 = vmatpush.msra.mxu3 %v1043_v33 }
  0x92   : > { %574 = vmatpush.msra.mxu0 %v1043_v33  ;;  %605 = vmatpush.msra.mxu1 %v1044_v34 }
  0x93   : > { %474 = vmatpush.msrb.mxu2 %v1038_v30  ;;  %370 = vmatpush.msra.mxu3 %v1048_v35 }
  0x94   : > { %767 = vmatpush.msrb.mxu1 %v1038_v30  ;;  %575 = vmatpush.msra.mxu0 %v1048_v35  ;;  %v1062_v41 = vpop.permute.xlu0 %1061  ;;  %v281_v23 = vpop.f32.mrf.mxu1 }
  0x95   : > { %981 = vmatmul.msk.f32.vlgmr.msra.gmra.mxu2 %vm228_vm0, %v200_v36  ;;  %371 = vmatpush.msra.mxu3 %v1049_v38  ;;  %v1063_v43 = vunpack.i.l.bf16 %v1062_v41  ;;  %v1067_v45 = vpop.permute.xlu1 %1066  ;;  %v1064_v46 = vunpack.i.h.bf16 %v1062_v41  ;;  %v252_v22 = vpop.f32.mrf.mxu0 }
  0x96   : > { %768 = vmatpush.msrb.mxu1 %v1043_v33  ;;  %475 = vmatpush.msrb.mxu2 %v1043_v33  ;;  %v1069_v51 = vunpack.i.h.bf16 %v1067_v45  ;;  %v1068_v52 = vunpack.i.l.bf16 %v1067_v45  ;;  %v282_v26 = vadd.f32 %v281_v23, %v252_v22 }
  0x97   : > { %576 = vmatpush.msra.mxu0 %v1049_v38  ;;  %983 = vmatmul.msk.f32.vlgmr.msra.gmra.mxu3 %vm228_vm0, %v202_v39 }
  0x98   : > { %476 = vmatpush.msrb.mxu2 %v1048_v35  ;;  %521 = vmatpush.msrb.mxu3 %v1053_v40 }
  0x99   : > { %738 = vmatpush.msrb.mxu0 %v1053_v40  ;;  %769 = vmatpush.msrb.mxu1 %v1048_v35 }
  0x9a   : > { %477 = vmatpush.msrb.mxu2 %v1049_v38  ;;  %522 = vmatpush.msrb.mxu3 %v1054_v42 }
  0x9b   : > { %739 = vmatpush.msrb.mxu0 %v1054_v42  ;;  %770 = vmatpush.msrb.mxu1 %v1049_v38 }
  0x9c   : > { %523 = vmatpush.msrb.mxu3 %v1058_v44  ;;  %643 = vmatpush.msra.mxu2 %v1063_v43  ;;  %v1077_v53 = vpop.permute.xlu0 %1076  ;;  %v284_v25 = vpop.f32.mrf.mxu1 }
  0x9d   : > { %982 = vmatmul.msk.f32.gmra.mxu2 %vm228_vm0, %v201_v47  ;;  %740 = vmatpush.msrb.mxu0 %v1058_v44  ;;  %v1078_v58 = vunpack.i.l.bf16 %v1077_v53  ;;  %v1082_v59 = vpop.permute.xlu1 %1081  ;;  %v1079_v61 = vunpack.i.h.bf16 %v1077_v53  ;;  %v255_v24 = vpop.f32.mrf.mxu0 }
  0x9e   : > { %524 = vmatpush.msrb.mxu3 %v1059_v48  ;;  %644 = vmatpush.msra.mxu2 %v1064_v46  ;;  %v1083_v63 = vunpack.i.l.bf16 %v1082_v59  ;;  %v1084_v1 = vunpack.i.h.bf16 %v1082_v59  ;;  %v285_v33 = vadd.f32 %v284_v25, %v255_v24 }
  0x9f   : > { %984 = vmatmul.msk.f32.gmra.mxu3 %vm228_vm0, %v203_v50  ;;  %741 = vmatpush.msrb.mxu0 %v1059_v48 }
  0xa0   : > { %645 = vmatpush.msra.mxu2 %v1069_v51  ;;  %686 = vmatpush.msra.mxu3 %v1068_v52 }
  0xa1   : > { %995 = vmatmul.msk.f32.vlgmr.msra.gmra.mxu0 %vm228_vm0, %v214_v2  ;;  %997 = vmatmul.msk.f32.vlgmr.msra.gmra.mxu1 %vm228_vm0, %v212_v3 }
  0xa2   : > { %646 = vmatpush.msra.mxu2 %v1074_v54  ;;  %687 = vmatpush.msra.mxu3 %v1073_v55 }
  0xa4   : > { %688 = vmatpush.msra.mxu3 %v1078_v58  ;;  %v450_v29 = vpop.f32.mrf.mxu1 }
  0xa5   : > { %989 = vmatmul.msk.f32.vlgmr.msrb.gmra.mxu2 %vm228_vm0, %v208_v60  ;;  %v421_v27 = vpop.f32.mrf.mxu0 }
  0xa6   : > { %796 = vmatpush.msrb.mxu2 %v1068_v52  ;;  %689 = vmatpush.msra.mxu3 %v1079_v61  ;;  %v451_v43 = vadd.f32 %v450_v29, %v421_v27 }
  0xa7   : > { %991 = vmatmul.msk.f32.vlgmr.msrb.gmra.mxu3 %vm228_vm0, %v210_v62 }
  0xa8   : > { %797 = vmatpush.msrb.mxu2 %v1073_v55  ;;  %839 = vmatpush.msrb.mxu3 %v1083_v63 }
  0xa9   : > { %996 = vmatmul.msk.f32.gmra.mxu0 %vm228_vm0, %v215_v8  ;;  %998 = vmatmul.msk.f32.gmra.mxu1 %vm228_vm0, %v213_v9 }
  0xaa   : > { %798 = vmatpush.msrb.mxu2 %v1078_v58  ;;  %840 = vmatpush.msrb.mxu3 %v1084_v1 }
  0xac   : > { %799 = vmatpush.msrb.mxu2 %v1079_v61  ;;  %841 = vmatpush.msrb.mxu3 %v1088_v4  ;;  %v453_v41 = vpop.f32.mrf.mxu1 }
  0xad   : > { %990 = vmatmul.msk.f32.gmra.mxu2 %vm228_vm0, %v209_v5  ;;  %v424_v39 = vpop.f32.mrf.mxu0 }
  0xae   : > { %842 = vmatpush.msrb.mxu3 %v1089_v6  ;;  %v454_v53 = vadd.f32 %v453_v41, %v424_v39 }
  0xaf   : > { %992 = vmatmul.msk.f32.gmra.mxu3 %vm228_vm0, %v211_v7 }
  0xb1   : > { %1005 = vmatmul.msk.f32.vlgmr.msrb.gmra.mxu0 %vm228_vm0, %v222_v12  ;;  %1007 = vmatmul.msk.f32.vlgmr.msrb.gmra.mxu1 %vm228_vm0, %v220_v13 }
  0xb5   : > { %999 = vmatmul.msk.f32.vlgmr.msra.gmra.mxu2 %vm228_vm0, %v216_v10 }
  0xb7   : > { %1001 = vmatmul.msk.f32.vlgmr.msra.gmra.mxu3 %vm228_vm0, %v218_v11 }
  0xb9   : > { %1006 = vmatmul.msk.f32.gmra.mxu0 %vm228_vm0, %v223_v16  ;;  %1008 = vmatmul.msk.f32.gmra.mxu1 %vm228_vm0, %v221_v17 }
  0xbd   : > { %1000 = vmatmul.msk.f32.gmra.mxu2 %vm228_vm0, %v217_v14 }
  0xbf   : > { %1002 = vmatmul.msk.f32.gmra.mxu3 %vm228_vm0, %v219_v15 }
  0xc5   : > { %1009 = vmatmul.msk.f32.vlgmr.msrb.gmra.mxu2 %vm228_vm0, %v224_v18 }
  0xc7   : > { %1011 = vmatmul.msk.f32.vlgmr.msrb.gmra.mxu3 %vm228_vm0, %v226_v19 }
  0xcd   : > { %1010 = vmatmul.msk.f32.gmra.mxu2 %vm228_vm0, %v225_v20 }
  0xcf   : > { %1012 = vmatmul.msk.f32.gmra.mxu3 %vm228_vm0, %v227_v21 }
 0x118   : > { %v326_v28 = vpop.f32.mrf.mxu2 }
 0x119   : > { %v332_v30 = vadd.f32 %v326_v28, %v282_v26 }
 0x11a   : > { %v373_v31 = vpop.f32.mrf.mxu3 }
 0x11b   : > { %v379_v32 = vadd.f32 %v373_v31, %v332_v30 }
 0x11d   : > { %396 = vst.msk [vmem:[%s1266_s10] sm:$0xff] %vm381_vm1, %v379_v32  ;;  %v382_v34 = vsel %vm381_vm1, %v379_v32, 0.0  ;;  %v388_v35 = vmul.f32 %v379_v32, %v379_v32 }
 0x11e   : > { %383 = vadd.xlane.f32.xlu0 %v382_v34  ;;  %v578_v51 = vpop.f32.mrf.mxu0  ;;  %v607_v52 = vpop.f32.mrf.mxu1 }
 0x11f   : > { %v390_v36 = vsel %vm381_vm1, %v388_v35, 0.0  ;;  %v608_v61 = vadd.f32 %v607_v52, %v578_v51 }
 0x120   : > { %v329_v37 = vpop.f32.mrf.mxu2  ;;  %391 = vadd.xlane.f32.xlu2 %v390_v36 }
 0x121   : > { %v333_v38 = vadd.f32 %v329_v37, %v285_v33 }
 0x122   : > { %v376_v40 = vpop.f32.mrf.mxu3 }
 0x123   : > { %v380_v42 = vadd.f32 %v376_v40, %v333_v38 }
 0x125   : > { %397 = vst.msk [vmem:[%s1266_s10 + $0x8] sm:$0xff] %vm381_vm1, %v380_v42  ;;  %v385_v44 = vsel %vm381_vm1, %v380_v42, 0.0  ;;  %v389_v45 = vmul.f32 %v380_v42, %v380_v42 }
 0x126   : > { %386 = vadd.xlane.f32.xlu1 %v385_v44  ;;  %v581_v0 = vpop.f32.mrf.mxu0  ;;  %v610_v1 = vpop.f32.mrf.mxu1 }
 0x127   : > { %v393_v46 = vsel %vm381_vm1, %v389_v45, 0.0  ;;  %v611_v7 = vadd.f32 %v610_v1, %v581_v0 }
 0x128   : > { %v479_v47 = vpop.f32.mrf.mxu2  ;;  %394 = vadd.xlane.f32.xlu2 %v393_v46 }
 0x129   : > { %v485_v48 = vadd.f32 %v479_v47, %v451_v43 }
 0x12a   : > { %v526_v49 = vpop.f32.mrf.mxu3 }
 0x12b   : > { %v532_v50 = vadd.f32 %v526_v49, %v485_v48 }
 0x12d   : > { %993 = vst.msk [vmem:[%s1266_s10 + $0x10] sm:$0xff] %vm381_vm1, %v532_v50  ;;  %v534_v54 = vsel %vm381_vm1, %v532_v50, 0.0  ;;  %v540_v55 = vmul.f32 %v532_v50, %v532_v50 }
 0x12e   : > { %535 = vadd.xlane.f32.xlu0 %v534_v54  ;;  %v743_v11 = vpop.f32.mrf.mxu0  ;;  %v772_v13 = vpop.f32.mrf.mxu1 }
 0x12f   : > { %v542_v56 = vsel %vm381_vm1, %v540_v55, 0.0  ;;  %v773_v17 = vadd.f32 %v772_v13, %v743_v11 }
 0x130   : > { %v482_v57 = vpop.f32.mrf.mxu2  ;;  %543 = vadd.xlane.f32.xlu2 %v542_v56 }
 0x131   : > { %v486_v58 = vadd.f32 %v482_v57, %v454_v53 }
 0x132   : > { %v529_v59 = vpop.f32.mrf.mxu3 }
 0x133   : > { %v533_v60 = vadd.f32 %v529_v59, %v486_v58 }
 0x135   : > { %994 = vst.msk [vmem:[%s1266_s10 + $0x18] sm:$0xff] %vm381_vm1, %v533_v60  ;;  %v537_v62 = vsel %vm381_vm1, %v533_v60, 0.0  ;;  %v541_v63 = vmul.f32 %v533_v60, %v533_v60 }
 0x136   : > { %538 = vadd.xlane.f32.xlu1 %v537_v62  ;;  %v746_v23 = vpop.f32.mrf.mxu0  ;;  %v775_v25 = vpop.f32.mrf.mxu1 }
 0x137   : > { %v545_v2 = vsel %vm381_vm1, %v541_v63, 0.0  ;;  %v776_v27 = vadd.f32 %v775_v25, %v746_v23 }
 0x138   : > { %v648_v3 = vpop.f32.mrf.mxu2  ;;  %546 = vadd.xlane.f32.xlu0 %v545_v2 }
 0x139   : > { %v654_v4 = vadd.f32 %v648_v3, %v608_v61 }
 0x13a   : > { %v691_v5 = vpop.f32.mrf.mxu3 }
 0x13b   : > { %v697_v6 = vadd.f32 %v691_v5, %v654_v4 }
 0x13d   : > { %1003 = vst.msk [vmem:[%s1266_s10 + $0x20] sm:$0xff] %vm381_vm1, %v697_v6  ;;  %v699_v8 = vsel %vm381_vm1, %v697_v6, 0.0  ;;  %v705_v9 = vmul.f32 %v697_v6, %v697_v6 }
 0x13e   : > { %700 = vadd.xlane.f32.xlu1 %v699_v8 }
 0x13f   : > { %v707_v10 = vsel %vm381_vm1, %v705_v9, 0.0 }
 0x140   : > { %v651_v12 = vpop.f32.mrf.mxu2  ;;  %708 = vadd.xlane.f32.xlu0 %v707_v10 }
 0x141   : > { %v655_v14 = vadd.f32 %v651_v12, %v611_v7 }
 0x142   : > { %v694_v15 = vpop.f32.mrf.mxu3 }
 0x143   : > { %v698_v16 = vadd.f32 %v694_v15, %v655_v14 }
 0x145   : > { %1004 = vst.msk [vmem:[%s1266_s10 + $0x28] sm:$0xff] %vm381_vm1, %v698_v16  ;;  %v702_v18 = vsel %vm381_vm1, %v698_v16, 0.0  ;;  %v706_v19 = vmul.f32 %v698_v16, %v698_v16 }
 0x146   : > { %703 = vadd.xlane.f32.xlu2 %v702_v18 }
 0x147   : > { %v710_v20 = vsel %vm381_vm1, %v706_v19, 0.0 }
 0x148   : > { %v801_v21 = vpop.f32.mrf.mxu2  ;;  %711 = vadd.xlane.f32.xlu1 %v710_v20 }
 0x149   : > { %v807_v22 = vadd.f32 %v801_v21, %v773_v17 }
 0x14a   : > { %v844_v24 = vpop.f32.mrf.mxu3 }
 0x14b   : > { %v850_v26 = vadd.f32 %v844_v24, %v807_v22 }
 0x14d   : > { %1013 = vst.msk [vmem:[%s1266_s10 + $0x30] sm:$0xff] %vm381_vm1, %v850_v26  ;;  %v852_v28 = vsel %vm381_vm1, %v850_v26, 0.0  ;;  %v858_v29 = vmul.f32 %v850_v26, %v850_v26 }
 0x14e   : > { %853 = vadd.xlane.f32.xlu2 %v852_v28 }
 0x14f   : > { %v860_v30 = vsel %vm381_vm1, %v858_v29, 0.0 }
 0x150   : > { %v804_v31 = vpop.f32.mrf.mxu2  ;;  %861 = vadd.xlane.f32.xlu1 %v860_v30 }
 0x151   : > { %v808_v32 = vadd.f32 %v804_v31, %v776_v27 }
 0x152   : > { %v847_v33 = vpop.f32.mrf.mxu3 }
 0x153   : > { %v851_v34 = vadd.f32 %v847_v33, %v808_v32 }
 0x155   : > { %1014 = vst.msk [vmem:[%s1266_s10 + $0x38] sm:$0xff] %vm381_vm1, %v851_v34  ;;  %v855_v35 = vsel %vm381_vm1, %v851_v34, 0.0  ;;  %v859_v36 = vmul.f32 %v851_v34, %v851_v34 }
 0x156   : > { %856 = vadd.xlane.f32.xlu0 %v855_v35 }
 0x157   : > { %v863_v37 = vsel %vm381_vm1, %v859_v36, 0.0 }
 0x158   : > { %864 = vadd.xlane.f32.xlu2 %v863_v37 }
 0x191   : > { %v384_v40 = vpop.xlane.xlu0 %383 }
 0x193   : > { %v392_v38 = vpop.xlane.xlu2 %391 }
 0x199   : > { %v387_v39 = vpop.xlane.xlu1 %386 }
 0x19b   : > { %v395_v41 = vpop.xlane.xlu2 %394 }
 0x1a1   : > { %v536_v43 = vpop.xlane.xlu0 %535 }
 0x1a2   : > { %v548_v50 = vadd.f32 %v536_v43, %v384_v40 }
 0x1a3   : > { %v544_v44 = vpop.xlane.xlu2 %543 }
 0x1a4   : > { %v550_v51 = vadd.f32 %v544_v44, %v392_v38 }
 0x1a9   : > { %v539_v42 = vpop.xlane.xlu1 %538 }
 0x1aa   : > { %v549_v59 = vadd.f32 %v539_v42, %v387_v39 }
 0x1ab   : > { %v547_v46 = vpop.xlane.xlu0 %546 }
 0x1ac   : > { %v551_v60 = vadd.f32 %v547_v46, %v395_v41 }
 0x1b1   : > { %v701_v45 = vpop.xlane.xlu1 %700 }
 0x1b2   : > { %v713_v53 = vadd.f32 %v701_v45, %v548_v50 }
 0x1b3   : > { %v709_v49 = vpop.xlane.xlu0 %708 }
 0x1b4   : > { %v715_v54 = vadd.f32 %v709_v49, %v550_v51 }
 0x1b9   : > { %v704_v47 = vpop.xlane.xlu2 %703 }
 0x1ba   : > { %v714_v62 = vadd.f32 %v704_v47, %v549_v59 }
 0x1bb   : > { %v712_v48 = vpop.xlane.xlu1 %711 }
 0x1bc   : > { %v716_v63 = vadd.f32 %v712_v48, %v551_v60 }
 0x1c1   : > { %v854_v52 = vpop.xlane.xlu2 %853 }
 0x1c2   : > { %v866_v56 = vadd.f32 %v854_v52, %v713_v53 }
 0x1c3   : > { %v862_v55 = vpop.xlane.xlu1 %861 }
 0x1c4   : > { %v868_v57 = vadd.f32 %v862_v55, %v715_v54 }
 0x1c6   : > { %v874_v58 = vsel %vm873_vm2, %v866_v56, %v868_v57 }
 0x1c7   : > { %877 = vst.msk [vmem:[%s183_s16] sm:$0xff] %vm876_vm3, %v874_v58 }
 0x1c9   : > { %v857_v61 = vpop.xlane.xlu0 %856 }
 0x1ca   : > { %v867_v1 = vadd.f32 %v857_v61, %v714_v62 }
 0x1cb   : > { %v865_v0 = vpop.xlane.xlu2 %864 }
 0x1cc   : > { %v869_v2 = vadd.f32 %v865_v0, %v716_v63 }
 0x1ce   : > { %v875_v3 = vsel %vm873_vm2, %v867_v1, %v869_v2 }
 0x1cf   : > { %878 = vst.msk [vmem:[%s183_s16 + $0x8] sm:$0xff] %vm876_vm3, %v875_v3 }
 0x1d0 PF: > { %s14_s12 = sadd.s32 1, %s1096_s12  }
 0x1d1   : > { %p11_p4 = scmp.ge.s32.totalorder %s14_s12, 4  }
 0x1d3   :  { %13 = sbr.rel (!%p11_p4) target bundleno = 1 (0x1), region = 73 }

// kernel: generator_forward.10
= control target key start
LH: loop header
LB: loop body
LE: loop exit
PB: predicated region body
PF: predicated region fallthrough
CT: control target
= control target key end

     0   :  { %s630_s24 = smov 112   ;;  %s631_s10 = smov 96   ;;  %vm41_vm0 = vcmask 130048   ;;  %vm100_vm1 = vcmask 916480   ;;  %vm348_vm2 = vcmask 785408   ;;  %vm537_vm3 = vcmask 7168   ;;  %s779_s0 = inlined_call_operand.vmem [shape: f32[1,3,16,160], index: 0, kind: input, shape index: {}]   ;;  %s780_s1 = inlined_call_operand.vmem [shape: f32[16,8,16], index: 1, kind: input, shape index: {}]   ;;  %s781_s2 = inlined_call_operand.vmem [shape: f32[1,4,8,128], index: 2, kind: output, shape index: {0}]   ;;  %s782_s3 = inlined_call_operand.vmem [shape: f32[1,8,2], index: 3, kind: output, shape index: {1}]  }
   0x1   :  { %v19_v0 = vld [vmem:[%s779_s0 + $0x30] sm:$0xff]  ;;  %v20_v1 = vld [vmem:[%s779_s0 + $0x38] sm:$0xff]  ;;  %v13_v6 = vld [vmem:[%s779_s0] sm:$0xff]  ;;  %vm539_vm4 = vcmask 15360  }
   0x2   :  { %v15_v2 = vld [vmem:[%s779_s0 + $0x10] sm:$0xff]  ;;  %v580_v3 = vpack.i.bf16 %v20_v1, %v19_v0  ;;  %v16_v4 = vld [vmem:[%s779_s0 + $0x18] sm:$0xff]  ;;  %59 = vmatpush.msra.mxu0 %v19_v0  ;;  %v17_v9 = vld [vmem:[%s779_s0 + $0x20] sm:$0xff] }
   0x3   :  { %82 = vmatpush.msra.mxu1 %v15_v2  ;;  %v570_v5 = vpack.i.bf16 %v16_v4, %v15_v2  ;;  %v23_v7 = vld [vmem:[%s779_s0 + $0x50] sm:$0xff]  ;;  %v24_v8 = vld [vmem:[%s779_s0 + $0x58] sm:$0xff]  ;;  %v18_v10 = vld [vmem:[%s779_s0 + $0x28] sm:$0xff] }
   0x4   :  { %581 = vrot.lane.b32.xlu1 %v580_v3, %s630_s24  ;;  %v590_v11 = vpack.i.bf16 %v24_v8, %v23_v7  ;;  %v14_v12 = vld [vmem:[%s779_s0 + $0x8] sm:$0xff]  ;;  %60 = vmatpush.msra.mxu0 %v17_v9  ;;  %v585_v13 = vpack.i.bf16 %v18_v10, %v17_v9  ;;  %v21_v14 = vld [vmem:[%s779_s0 + $0x40] sm:$0xff]  ;;  %v27_v44 = vld [vmem:[%s780_s1 + $0x10] sm:$0xff] }
   0x5   :  { %83 = vmatpush.msra.mxu1 %v13_v6  ;;  %571 = vrot.lane.b32.xlu0 %v570_v5, %s630_s24  ;;  %v22_v15 = vld [vmem:[%s779_s0 + $0x48] sm:$0xff]  ;;  %v575_v16 = vpack.i.bf16 %v14_v12, %v13_v6  ;;  %v25_v18 = vld [vmem:[%s780_s1] sm:$0xff]  ;;  %v28_v49 = vld [vmem:[%s780_s1 + $0x18] sm:$0xff] }
   0x6   :  { %591 = vrot.lane.b32.xlu2 %v590_v11, %s630_s24  ;;  %192 = vmatpush.msrb.mxu0 %v23_v7  ;;  %v595_v17 = vpack.i.bf16 %v22_v15, %v21_v14  ;;  %v26_v19 = vld [vmem:[%s780_s1 + $0x8] sm:$0xff]  ;;  %v29_v21 = vld [vmem:[%s780_s1 + $0x20] sm:$0xff]  ;;  %v31_v60 = vld [vmem:[%s780_s1 + $0x30] sm:$0xff] }
   0x7   :  { %215 = vmatpush.msrb.mxu1 %v19_v0  ;;  %549 = vmatmul.msk.f32.vlgmr.msra.gmra.mxu0 %vm41_vm0, %v26_v19  ;;  %v30_v20 = vld [vmem:[%s780_s1 + $0x28] sm:$0xff]  ;;  %v33_v57 = vld [vmem:[%s780_s1 + $0x40] sm:$0xff]  ;;  %v32_v63 = vld [vmem:[%s780_s1 + $0x38] sm:$0xff] }
   0x8   :  { %193 = vmatpush.msrb.mxu0 %v21_v14  ;;  %550 = vmatmul.msk.f32.vlgmr.msra.gmra.mxu1 %vm41_vm0, %v25_v18  ;;  %v34_v53 = vld [vmem:[%s780_s1 + $0x48] sm:$0xff]  ;;  %v37_v6 = vld [vmem:[%s780_s1 + $0x60] sm:$0xff]  ;;  %v36_v14 = vld [vmem:[%s780_s1 + $0x58] sm:$0xff] }
   0x9   :  { %216 = vmatpush.msrb.mxu1 %v17_v9  ;;  %v38_v2 = vld [vmem:[%s780_s1 + $0x68] sm:$0xff] }
   0xc   :  { %586 = vrot.lane.b32.xlu1 %v585_v13, %s630_s24 }
   0xd   :  { %576 = vrot.lane.b32.xlu0 %v575_v16, %s630_s24 }
   0xe   :  { %596 = vrot.lane.b32.xlu2 %v595_v17, %s630_s24 }
   0xf   :  { %553 = vmatmul.msk.f32.vlgmr.msrb.gmra.mxu0 %vm41_vm0, %v30_v20 }
  0x10   :  { %554 = vmatmul.msk.f32.vlgmr.msrb.gmra.mxu1 %vm41_vm0, %v29_v21 }
  0x14   :  { %606 = vrot.lane.b32.xlu1 %v575_v16, %s631_s10  ;;  %v39_v16 = vld [vmem:[%s780_s1 + $0x70] sm:$0xff] }
  0x15   :  { %601 = vrot.lane.b32.xlu0 %v570_v5, %s631_s10 }
  0x16   :  { %611 = vrot.lane.b32.xlu2 %v580_v3, %s631_s10 }
  0x1c   :  { %621 = vrot.lane.b32.xlu1 %v590_v11, %s631_s10  ;;  %v35_v11 = vld [vmem:[%s780_s1 + $0x50] sm:$0xff] }
  0x1d   :  { %616 = vrot.lane.b32.xlu0 %v585_v13, %s631_s10 }
  0x1e   :  { %626 = vrot.lane.b32.xlu2 %v595_v17, %s631_s10  ;;  %v40_v17 = vld [vmem:[%s780_s1 + $0x78] sm:$0xff] }
  0x60   :  { %v592_v22 = vpop.permute.xlu2 %591 }
  0x61   :  { %v594_v32 = vunpack.i.h.bf16 %v592_v22  ;;  %v593_v33 = vunpack.i.l.bf16 %v592_v22 }
  0x63   :  { %v258_v45 = vsel %vm100_vm1, %v593_v33, %v594_v32 }
  0x68   :  { %v597_v23 = vpop.permute.xlu2 %596 }
  0x69   :  { %v599_v41 = vunpack.i.h.bf16 %v597_v23  ;;  %v598_v42 = vunpack.i.l.bf16 %v597_v23 }
  0x6b   :  { %v257_v50 = vsel %vm100_vm1, %v598_v42, %v599_v41 }
  0x70   :  { %v612_v38 = vpop.permute.xlu2 %611 }
  0x71   :  { %v614_v47 = vunpack.i.h.bf16 %v612_v38  ;;  %v613_v48 = vunpack.i.l.bf16 %v612_v38 }
  0x73   :  { %v386_v52 = vsel %vm348_vm2, %v613_v48, %v614_v47 }
  0x76   :  { %v582_v24 = vpop.permute.xlu1 %581 }
  0x77   :  { %v584_v25 = vunpack.i.h.bf16 %v582_v24  ;;  %v583_v26 = vunpack.i.l.bf16 %v582_v24  ;;  %v572_v27 = vpop.permute.xlu0 %571 }
  0x78   :  { %v574_v28 = vunpack.i.h.bf16 %v572_v27  ;;  %v573_v29 = vunpack.i.l.bf16 %v572_v27  ;;  %v627_v0 = vpop.permute.xlu2 %626 }
  0x79   :  { %v142_v30 = vsel %vm100_vm1, %v583_v26, %v584_v25  ;;  %v629_v9 = vunpack.i.h.bf16 %v627_v0  ;;  %v628_v10 = vunpack.i.l.bf16 %v627_v0 }
  0x7a   :  { %v102_v31 = vsel %vm100_vm1, %v573_v29, %v574_v28  ;;  %162 = vmatpush.msra.mxu3 %v142_v30  ;;  %311 = vmatpush.msra.mxu0 %v142_v30 }
  0x7b   :  { %122 = vmatpush.msra.mxu2 %v102_v31  ;;  %334 = vmatpush.msra.mxu1 %v102_v31  ;;  %v500_v15 = vsel %vm348_vm2, %v628_v10, %v629_v9 }
  0x7e   :  { %v587_v34 = vpop.permute.xlu1 %586 }
  0x7f   :  { %v589_v35 = vunpack.i.h.bf16 %v587_v34  ;;  %v588_v36 = vunpack.i.l.bf16 %v587_v34  ;;  %v577_v37 = vpop.permute.xlu0 %576 }
  0x80   :  { %v579_v39 = vunpack.i.h.bf16 %v577_v37  ;;  %v578_v40 = vunpack.i.l.bf16 %v577_v37 }
  0x81   :  { %v141_v43 = vsel %vm100_vm1, %v588_v36, %v589_v35 }
  0x82   :  { %v101_v46 = vsel %vm100_vm1, %v578_v40, %v579_v39  ;;  %163 = vmatpush.msra.mxu3 %v141_v43  ;;  %312 = vmatpush.msra.mxu0 %v141_v43 }
  0x83   :  { %123 = vmatpush.msra.mxu2 %v101_v46  ;;  %335 = vmatpush.msra.mxu1 %v101_v46 }
  0x84   :  { %551 = vmatmul.msk.f32.vlgmr.msra.gmra.mxu2 %vm41_vm0, %v27_v44  ;;  %278 = vmatpush.msrb.mxu3 %v258_v45  ;;  %v62_v18 = vpop.f32.mrf.mxu0 }
  0x85   :  { %238 = vmatpush.msrb.mxu2 %v142_v30  ;;  %439 = vmatpush.msrb.mxu0 %v258_v45  ;;  %v85_v19 = vpop.f32.mrf.mxu1 }
  0x86   :  { %462 = vmatpush.msrb.mxu1 %v142_v30  ;;  %552 = vmatmul.msk.f32.vlgmr.msra.gmra.mxu3 %vm41_vm0, %v28_v49  ;;  %v607_v51 = vpop.permute.xlu1 %606  ;;  %v86_v20 = vadd.f32 %v85_v19, %v62_v18 }
  0x87   :  { %239 = vmatpush.msrb.mxu2 %v141_v43  ;;  %279 = vmatpush.msrb.mxu3 %v257_v50  ;;  %v602_v54 = vpop.permute.xlu0 %601  ;;  %v609_v55 = vunpack.i.h.bf16 %v607_v51  ;;  %v608_v56 = vunpack.i.l.bf16 %v607_v51 }
  0x88   :  { %463 = vmatpush.msrb.mxu1 %v141_v43  ;;  %440 = vmatpush.msrb.mxu0 %v257_v50  ;;  %v604_v58 = vunpack.i.h.bf16 %v602_v54  ;;  %v603_v59 = vunpack.i.l.bf16 %v602_v54 }
  0x89   :  { %406 = vmatpush.msra.mxu3 %v386_v52  ;;  %558 = vmatmul.msk.f32.vlgmr.msra.gmra.mxu0 %vm41_vm0, %v34_v53  ;;  %v349_v62 = vsel %vm348_vm2, %v608_v56, %v609_v55 }
  0x8a   :  { %v350_v61 = vsel %vm348_vm2, %v603_v59, %v604_v58  ;;  %559 = vmatmul.msk.f32.vlgmr.msra.gmra.mxu1 %vm41_vm0, %v33_v57 }
  0x8b   :  { %370 = vmatpush.msra.mxu2 %v350_v61 }
  0x8c   :  { %555 = vmatmul.msk.f32.vlgmr.msrb.gmra.mxu2 %vm41_vm0, %v31_v60  ;;  %v195_v21 = vpop.f32.mrf.mxu0 }
  0x8d   :  { %371 = vmatpush.msra.mxu2 %v349_v62  ;;  %v218_v22 = vpop.f32.mrf.mxu1 }
  0x8e   :  { %556 = vmatmul.msk.f32.vlgmr.msrb.gmra.mxu3 %vm41_vm0, %v32_v63  ;;  %v622_v1 = vpop.permute.xlu1 %621  ;;  %v219_v27 = vadd.f32 %v218_v22, %v195_v21 }
  0x8f   :  { %485 = vmatpush.msrb.mxu2 %v386_v52  ;;  %v617_v3 = vpop.permute.xlu0 %616  ;;  %v624_v4 = vunpack.i.h.bf16 %v622_v1  ;;  %v623_v5 = vunpack.i.l.bf16 %v622_v1 }
  0x90   :  { %v619_v7 = vunpack.i.h.bf16 %v617_v3  ;;  %v618_v8 = vunpack.i.l.bf16 %v617_v3 }
  0x91   :  { %v501_v12 = vsel %vm348_vm2, %v623_v5, %v624_v4  ;;  %563 = vmatmul.msk.f32.vlgmr.msrb.gmra.mxu0 %vm41_vm0, %v38_v2 }
  0x92   :  { %v385_v13 = vsel %vm348_vm2, %v618_v8, %v619_v7  ;;  %564 = vmatmul.msk.f32.vlgmr.msrb.gmra.mxu1 %vm41_vm0, %v37_v6 }
  0x93   :  { %407 = vmatpush.msra.mxu3 %v385_v13  ;;  %486 = vmatpush.msrb.mxu2 %v385_v13 }
  0x94   :  { %560 = vmatmul.msk.f32.vlgmr.msra.gmra.mxu2 %vm41_vm0, %v35_v11 }
  0x95   :  { %521 = vmatpush.msrb.mxu3 %v501_v12 }
  0x96   :  { %561 = vmatmul.msk.f32.vlgmr.msra.gmra.mxu3 %vm41_vm0, %v36_v14 }
  0x97   :  { %522 = vmatpush.msrb.mxu3 %v500_v15 }
  0x9c   :  { %565 = vmatmul.msk.f32.vlgmr.msrb.gmra.mxu2 %vm41_vm0, %v39_v16 }
  0x9e   :  { %566 = vmatmul.msk.f32.vlgmr.msrb.gmra.mxu3 %vm41_vm0, %v40_v17 }
 0x106   :  { %v314_v29 = vpop.f32.mrf.mxu0 }
 0x107   :  { %v125_v23 = vpop.f32.mrf.mxu2  ;;  %v337_v31 = vpop.f32.mrf.mxu1 }
 0x108   :  { %v128_v24 = vadd.f32 %v125_v23, %v86_v20  ;;  %v338_v35 = vadd.f32 %v337_v31, %v314_v29 }
 0x109   :  { %v165_v25 = vpop.f32.mrf.mxu3 }
 0x10a   :  { %v168_v26 = vadd.f32 %v165_v25, %v128_v24 }
 0x10c   :  { %174 = vst [vmem:[%s781_s2] sm:$0xff] %v168_v26  ;;  %169 = vadd.xlane.f32.xlu0 %v168_v26  ;;  %v171_v28 = vmul.f32 %v168_v26, %v168_v26 }
 0x10e   :  { %172 = vadd.xlane.f32.xlu1 %v171_v28  ;;  %v442_v38 = vpop.f32.mrf.mxu0 }
 0x10f   :  { %v241_v30 = vpop.f32.mrf.mxu2  ;;  %v465_v40 = vpop.f32.mrf.mxu1 }
 0x110   :  { %v244_v32 = vadd.f32 %v241_v30, %v219_v27  ;;  %v466_v43 = vadd.f32 %v465_v40, %v442_v38 }
 0x111   :  { %v281_v33 = vpop.f32.mrf.mxu3 }
 0x112   :  { %v284_v34 = vadd.f32 %v281_v33, %v244_v32 }
 0x114   :  { %557 = vst [vmem:[%s781_s2 + $0x8] sm:$0xff] %v284_v34  ;;  %285 = vadd.xlane.f32.xlu2 %v284_v34  ;;  %v287_v42 = vmul.f32 %v284_v34, %v284_v34 }
 0x117   :  { %v373_v36 = vpop.f32.mrf.mxu2 }
 0x118   :  { %v376_v37 = vadd.f32 %v373_v36, %v338_v35 }
 0x119   :  { %v409_v39 = vpop.f32.mrf.mxu3 }
 0x11a   :  { %v412_v41 = vadd.f32 %v409_v39, %v376_v37 }
 0x11c   :  { %562 = vst [vmem:[%s781_s2 + $0x10] sm:$0xff] %v412_v41  ;;  %288 = vadd.xlane.f32.xlu2 %v287_v42  ;;  %413 = vadd.xlane.f32.xlu0 %v412_v41  ;;  %v415_v44 = vmul.f32 %v412_v41, %v412_v41 }
 0x11e   :  { %416 = vadd.xlane.f32.xlu1 %v415_v44 }
 0x11f   :  { %v488_v45 = vpop.f32.mrf.mxu2 }
 0x120   :  { %v491_v46 = vadd.f32 %v488_v45, %v466_v43 }
 0x121   :  { %v524_v47 = vpop.f32.mrf.mxu3 }
 0x122   :  { %v527_v48 = vadd.f32 %v524_v47, %v491_v46 }
 0x124   :  { %567 = vst [vmem:[%s781_s2 + $0x18] sm:$0xff] %v527_v48  ;;  %528 = vadd.xlane.f32.xlu2 %v527_v48  ;;  %v530_v49 = vmul.f32 %v527_v48, %v527_v48 }
 0x126   :  { %531 = vadd.xlane.f32.xlu0 %v530_v49 }
 0x17f   :  { %v170_v51 = vpop.xlane.xlu0 %169 }
 0x181   :  { %v173_v52 = vpop.xlane.xlu1 %172 }
 0x187   :  { %v286_v50 = vpop.xlane.xlu2 %285 }
 0x188   :  { %v290_v57 = vadd.f32 %v286_v50, %v170_v51 }
 0x18f   :  { %v289_v53 = vpop.xlane.xlu2 %288  ;;  %v414_v54 = vpop.xlane.xlu0 %413 }
 0x190   :  { %v291_v55 = vadd.f32 %v289_v53, %v173_v52  ;;  %v418_v59 = vadd.f32 %v414_v54, %v290_v57 }
 0x191   :  { %v417_v56 = vpop.xlane.xlu1 %416 }
 0x192   :  { %v419_v60 = vadd.f32 %v417_v56, %v291_v55 }
 0x197   :  { %v529_v58 = vpop.xlane.xlu2 %528 }
 0x198   :  { %v533_v62 = vadd.f32 %v529_v58, %v418_v59 }
 0x199   :  { %v532_v61 = vpop.xlane.xlu0 %531 }
 0x19a   :  { %v534_v63 = vadd.f32 %v532_v61, %v419_v60 }
 0x19c   :  { %v538_v0 = vsel %vm537_vm3, %v533_v62, %v534_v63 }
 0x19d   :  { %540 = vst.msk [vmem:[%s782_s3] sm:$0xff] %vm539_vm4, %v538_v0 }

// kernel: generator_forward.11
= control target key start
LH: loop header
LB: loop body
LE: loop exit
PB: predicated region body
PF: predicated region fallthrough
CT: control target
= control target key end

     0   :  { %s1174_s9 = smov 0   ;;  %s1309_s0 = inlined_call_operand.vmem [shape: f32[2,3,8,320], index: 0, kind: input, shape index: {}]   ;;  %s1310_s1 = inlined_call_operand.vmem [shape: f32[16,3,8], index: 1, kind: input, shape index: {}]   ;;  %s1311_s2 = inlined_call_operand.vmem [shape: f32[2,4,3,256], index: 2, kind: output, shape index: {}]  }
   0x1 LB: > { %s1036_s10 = sadd.s32 4294967295, %s1155_s9   ;;  %p1040_p0 = scmp.ge.s32.totalorder %s1155_s9, 1  ;;  %s1155_s9 = sphi %s1174_s9, %s12_s9  }
   0x2   : > { %p112_p1 = scmp.lt.s32.totalorder %s1155_s9, 3 }
   0x4   : > { %p113_p2 = pnand %p1040_p0, %p112_p1 }
   0x5   : > { %p134_p3 = scmp.lt.s32.totalorder (!%p113_p2), %s1036_s10, 1  ;;  %s1157_s17 = smov (!%p113_p2), 96  }
   0x6   : > { %116 = sbr.rel (%p113_p2) target bundleno = 339 (0x153), region = 28  ;;  %s1158_s18 = smov (!%p113_p2), 64  }
   0xb   : > { %s1313_s10 = smov (!%p134_p3, %s1036_s10), 1  ;;  %v153_v6 = vld [vmem:[%s1310_s1] sm:$0x7]  ;;  %vm169_vm0 = vcmask 64512   ;;  %v154_v14 = vld [vmem:[%s1310_s1 + $0x4] sm:$0x7] }
   0xc   : > { %s1082_s11 = smul.u32 72, %s1313_s10  ;;  %vm265_vm1 = vcmask 785408   ;;  %v156_v19 = vld [vmem:[%s1310_s1 + $0xc] sm:$0x7]  ;;  %v155_v33 = vld [vmem:[%s1310_s1 + $0x8] sm:$0x7] }
   0xd   : > { %v157_v35 = vld [vmem:[%s1310_s1 + $0x10] sm:$0x7]  ;;  %v158_v40 = vld [vmem:[%s1310_s1 + $0x14] sm:$0x7]  ;;  %vm672_vm2 = vcmask 523264   ;;  %s1081_s23 = sshll.u32 %s1313_s10, 5 }
   0xe   : > { %s138_s14 = scalar_lea.vmem %s1309_s0, %s1082_s11  ;;  %v160_v41 = vld [vmem:[%s1310_s1 + $0x1c] sm:$0x7]  ;;  %v159_v49 = vld [vmem:[%s1310_s1 + $0x18] sm:$0x7]  ;;  %v161_v51 = vld [vmem:[%s1310_s1 + $0x20] sm:$0x7]  ;;  %s1296_s26 = scalar_lea.vmem %s1311_s2, %s1081_s23 }
   0xf   : > { %v148_v0 = vld [vmem:[%s138_s14 + $0x20] sm:$0xff]  ;;  %v149_v1 = vld [vmem:[%s138_s14 + $0x28] sm:$0xff]  ;;  %v146_v4 = vld [vmem:[%s138_s14 + $0x10] sm:$0xff]  ;;  %vm378_vm3 = vcmask 1043456  }
  0x10   : > { %v144_v2 = vld [vmem:[%s138_s14] sm:$0xff]  ;;  %v1093_v3 = vpack.i.bf16 %v149_v1, %v148_v0  ;;  %v145_v5 = vld [vmem:[%s138_s14 + $0x8] sm:$0xff]  ;;  %208 = vmatpush.msra.mxu1 %v148_v0  ;;  %v150_v8 = vld [vmem:[%s138_s14 + $0x30] sm:$0xff] }
  0x11   : > { %231 = vmatpush.msra.mxu2 %v144_v2  ;;  %v1103_v7 = vpack.i.bf16 %v144_v2, %v146_v4  ;;  %251 = vmatpush.msra.mxu3 %v145_v5  ;;  %v147_v9 = vld [vmem:[%s138_s14 + $0x18] sm:$0xff]  ;;  %v152_v11 = vld [vmem:[%s138_s14 + $0x40] sm:$0xff]  ;;  %v164_v58 = vld [vmem:[%s1310_s1 + $0x2c] sm:$0x7] }
  0x12   : > { %1094 = vrot.lane.b32.xlu0 %v1093_v3, %s1157_s17  ;;  %516 = vrot.lane.b32.xlu2 %v150_v8, %s1157_s17  ;;  %v151_v10 = vld [vmem:[%s138_s14 + $0x38] sm:$0xff]  ;;  %v1098_v12 = vpack.i.bf16 %v145_v5, %v147_v9  ;;  %v162_v55 = vld [vmem:[%s1310_s1 + $0x24] sm:$0x7] }
  0x13   : > { %1104 = vrot.lane.b32.xlu1 %v1103_v7, %s1157_s17  ;;  %1047 = vmatmul.msk.f32.vlgmr.msra.gmra.mxu3 %vm169_vm0, %v153_v6  ;;  %v1108_v13 = vpack.i.bf16 %v152_v11, %v151_v10  ;;  %v163_v60 = vld [vmem:[%s1310_s1 + $0x28] sm:$0x7]  ;;  %v165_v62 = vld [vmem:[%s1310_s1 + $0x30] sm:$0x7]  ;;  %v168_v1 = vld [vmem:[%s1310_s1 + $0x3c] sm:$0x7] }
  0x14   : > { %188 = vmatpush.msra.mxu0 %v147_v9  ;;  %1046 = vmatmul.msk.f32.vlgmr.msra.gmra.mxu2 %vm169_vm0, %v153_v6  ;;  %v167_v2 = vld [vmem:[%s1310_s1 + $0x38] sm:$0x7] }
  0x15   : > { %1044 = vmatmul.msk.f32.vlgmr.msra.gmra.mxu0 %vm169_vm0, %v154_v14  ;;  %1045 = vmatmul.msk.f32.vlgmr.msra.gmra.mxu1 %vm169_vm0, %v154_v14 }
  0x1a   : > { %1099 = vrot.lane.b32.xlu0 %v1098_v12, %s1157_s17  ;;  %1114 = vrot.lane.b32.xlu2 %v1093_v3, %s1158_s18 }
  0x1b   : > { %1109 = vrot.lane.b32.xlu1 %v1108_v13, %s1157_s17 }
  0x22   : > { %1119 = vrot.lane.b32.xlu0 %v1098_v12, %s1158_s18  ;;  %1129 = vrot.lane.b32.xlu2 %v1108_v13, %s1158_s18 }
  0x23   : > { %1124 = vrot.lane.b32.xlu1 %v1103_v7, %s1158_s18 }
  0x2a   : > { %917 = vrot.lane.b32.xlu0 %v150_v8, %s1158_s18 }
  0x6c   : > { %v517_v21 = vpop.permute.xlu2 %516 }
  0x74   : > { %v1115_v36 = vpop.permute.xlu2 %1114 }
  0x75   : > { %v1117_v38 = vunpack.i.h.bf16 %v1115_v36  ;;  %v1116_v39 = vunpack.i.l.bf16 %v1115_v36 }
  0x77   : > { %v729_v44 = vsel %vm672_vm2, %v1116_v39, %v1117_v38 }
  0x7c   : > { %v1130_v54 = vpop.permute.xlu2 %1129 }
  0x7d   : > { %v1132_v56 = vunpack.i.h.bf16 %v1130_v54  ;;  %v1131_v57 = vunpack.i.l.bf16 %v1130_v54 }
  0x7f   : > { %v924_v59 = vsel %vm672_vm2, %v1131_v57, %v1132_v56 }
  0x84   : > { %v1095_v15 = vpop.permute.xlu0 %1094 }
  0x85   : > { %v1097_v16 = vunpack.i.h.bf16 %v1095_v15  ;;  %v1096_v17 = vunpack.i.l.bf16 %v1095_v15  ;;  %v1105_v18 = vpop.permute.xlu1 %1104 }
  0x86   : > { %v1107_v22 = vunpack.i.h.bf16 %v1105_v18  ;;  %v1106_v23 = vunpack.i.l.bf16 %v1105_v18 }
  0x87   : > { %v1202_v20 = vsel %vm265_vm1, %v1096_v17, %v1097_v16 }
  0x88   : > { %366 = vmatpush.msrb.mxu3 %v1202_v20 }
  0x89   : > { %1051 = vmatmul.msk.f32.vlgmr.msrb.gmra.mxu3 %vm169_vm0, %v156_v19 }
  0x8a   : > { %463 = vmatpush.msra.mxu3 %v148_v0  ;;  %v166_v0 = vld [vmem:[%s1310_s1 + $0x34] sm:$0x7] }
  0x8c   : > { %v1100_v24 = vpop.permute.xlu0 %1099 }
  0x8d   : > { %v1102_v25 = vunpack.i.h.bf16 %v1100_v24  ;;  %v1101_v26 = vunpack.i.l.bf16 %v1100_v24  ;;  %v1110_v27 = vpop.permute.xlu1 %1109 }
  0x8e   : > { %v1112_v28 = vunpack.i.h.bf16 %v1110_v27  ;;  %v1111_v29 = vunpack.i.l.bf16 %v1110_v27 }
  0x8f   : > { %v266_v30 = vsel %vm265_vm1, %v1107_v22, %v1102_v25  ;;  %v267_v31 = vsel %vm265_vm1, %v1102_v25, %v1106_v23  ;;  %v1209_v32 = vsel %vm265_vm1, %v1101_v26, %v1096_v17 }
  0x90   : > { %288 = vmatpush.msrb.mxu0 %v266_v30  ;;  %308 = vmatpush.msrb.mxu1 %v267_v31  ;;  %v523_v34 = vsel %vm265_vm1, %v1111_v29, %v1112_v28  ;;  %v522_v37 = vsel %vm265_vm1, %v517_v21, %v1111_v29 }
  0x91   : > { %346 = vmatpush.msrb.mxu2 %v1209_v32  ;;  %564 = vmatpush.msrb.mxu3 %v523_v34 }
  0x92   : > { %1048 = vmatmul.msk.f32.vlgmr.msrb.gmra.mxu0 %vm169_vm0, %v155_v33  ;;  %1049 = vmatmul.msk.f32.vlgmr.msrb.gmra.mxu1 %vm169_vm0, %v155_v33  ;;  %v210_v4 = vpop.f32.mrf.mxu1  ;;  %v190_v5 = vpop.f32.mrf.mxu0 }
  0x93   : > { %1050 = vmatmul.msk.f32.vlgmr.msrb.gmra.mxu2 %vm169_vm0, %v156_v19  ;;  %400 = vmatpush.msra.mxu0 %v150_v8 }
  0x94   : > { %420 = vmatpush.msra.mxu1 %v151_v10  ;;  %1055 = vmatmul.msk.f32.vlgmr.msra.gmra.mxu3 %vm169_vm0, %v157_v35  ;;  %v1120_v42 = vpop.permute.xlu0 %1119 }
  0x95   : > { %661 = vmatpush.msra.mxu3 %v267_v31  ;;  %486 = vmatpush.msrb.mxu0 %v1209_v32  ;;  %v1125_v43 = vpop.permute.xlu1 %1124  ;;  %v1122_v45 = vunpack.i.h.bf16 %v1120_v42  ;;  %v1121_v48 = vunpack.i.l.bf16 %v1120_v42 }
  0x96   : > { %506 = vmatpush.msrb.mxu1 %v1202_v20  ;;  %443 = vmatpush.msra.mxu2 %v147_v9  ;;  %v1127_v46 = vunpack.i.h.bf16 %v1125_v43  ;;  %v1126_v47 = vunpack.i.l.bf16 %v1125_v43  ;;  %v253_v3 = vpop.f32.mrf.mxu3 }
  0x97   : > { %v728_v53 = vsel %vm672_vm2, %v1121_v48, %v1116_v39  ;;  %v254_v6 = vadd.f32 %v253_v3, %v210_v4  ;;  %v233_v7 = vpop.f32.mrf.mxu2 }
  0x98   : > { %544 = vmatpush.msrb.mxu2 %v522_v37  ;;  %v673_v50 = vsel %vm672_vm2, %v1127_v46, %v1122_v45  ;;  %v674_v52 = vsel %vm672_vm2, %v1122_v45, %v1126_v47  ;;  %v234_v13 = vadd.f32 %v233_v7, %v190_v5 }
  0x9a   : > { %1052 = vmatmul.msk.f32.vlgmr.msra.gmra.mxu0 %vm169_vm0, %v158_v40  ;;  %1053 = vmatmul.msk.f32.vlgmr.msra.gmra.mxu1 %vm169_vm0, %v158_v40 }
  0x9b   : > { %1054 = vmatmul.msk.f32.vlgmr.msra.gmra.mxu2 %vm169_vm0, %v157_v35  ;;  %598 = vmatpush.msra.mxu0 %v1209_v32 }
  0x9c   : > { %1059 = vmatmul.msk.f32.vlgmr.msrb.gmra.mxu3 %vm169_vm0, %v160_v41  ;;  %618 = vmatpush.msra.mxu1 %v1202_v20  ;;  %v918_v61 = vpop.permute.xlu0 %917 }
  0x9d   : > { %641 = vmatpush.msra.mxu2 %v266_v30  ;;  %770 = vmatpush.msrb.mxu3 %v729_v44  ;;  %v923_v63 = vsel %vm672_vm2, %v918_v61, %v1131_v57 }
  0xa2   : > { %1056 = vmatmul.msk.f32.vlgmr.msrb.gmra.mxu0 %vm169_vm0, %v159_v49  ;;  %1057 = vmatmul.msk.f32.vlgmr.msrb.gmra.mxu1 %vm169_vm0, %v159_v49 }
  0xa3   : > { %1058 = vmatmul.msk.f32.vlgmr.msrb.gmra.mxu2 %vm169_vm0, %v160_v41  ;;  %695 = vmatpush.msrb.mxu0 %v673_v50 }
  0xa4   : > { %1064 = vmatmul.msk.f32.vlgmr.msra.gmra.mxu3 %vm169_vm0, %v161_v51  ;;  %715 = vmatpush.msrb.mxu1 %v674_v52 }
  0xa5   : > { %867 = vmatpush.msra.mxu3 %v1202_v20  ;;  %750 = vmatpush.msrb.mxu2 %v728_v53 }
  0xaa   : > { %1061 = vmatmul.msk.f32.vlgmr.msra.gmra.mxu0 %vm169_vm0, %v162_v55  ;;  %1062 = vmatmul.msk.f32.vlgmr.msra.gmra.mxu1 %vm169_vm0, %v162_v55 }
  0xab   : > { %1063 = vmatmul.msk.f32.vlgmr.msra.gmra.mxu2 %vm169_vm0, %v161_v51  ;;  %804 = vmatpush.msra.mxu0 %v522_v37 }
  0xac   : > { %824 = vmatpush.msra.mxu1 %v523_v34  ;;  %847 = vmatpush.msra.mxu2 %v1209_v32 }
  0xad   : > { %1068 = vmatmul.msk.f32.vlgmr.msrb.gmra.mxu3 %vm169_vm0, %v164_v58 }
  0xae   : > { %965 = vmatpush.msrb.mxu3 %v924_v59 }
  0xb2   : > { %1065 = vmatmul.msk.f32.vlgmr.msrb.gmra.mxu0 %vm169_vm0, %v163_v60  ;;  %1066 = vmatmul.msk.f32.vlgmr.msrb.gmra.mxu1 %vm169_vm0, %v163_v60 }
  0xb3   : > { %890 = vmatpush.msrb.mxu0 %v728_v53  ;;  %910 = vmatpush.msrb.mxu1 %v729_v44 }
  0xb4   : > { %1067 = vmatmul.msk.f32.vlgmr.msrb.gmra.mxu2 %vm169_vm0, %v164_v58 }
  0xb5   : > { %1073 = vmatmul.msk.f32.vlgmr.msra.gmra.mxu3 %vm169_vm0, %v165_v62  ;;  %945 = vmatpush.msrb.mxu2 %v923_v63 }
  0xba   : > { %1071 = vmatmul.msk.f32.vlgmr.msra.gmra.mxu1 %vm169_vm0, %v166_v0  ;;  %1070 = vmatmul.msk.f32.vlgmr.msra.gmra.mxu0 %vm169_vm0, %v166_v0 }
  0xbc   : > { %1072 = vmatmul.msk.f32.vlgmr.msra.gmra.mxu2 %vm169_vm0, %v165_v62 }
  0xbd   : > { %1077 = vmatmul.msk.f32.vlgmr.msrb.gmra.mxu3 %vm169_vm0, %v168_v1 }
  0xc2   : > { %1075 = vmatmul.msk.f32.vlgmr.msrb.gmra.mxu1 %vm169_vm0, %v167_v2  ;;  %1074 = vmatmul.msk.f32.vlgmr.msrb.gmra.mxu0 %vm169_vm0, %v167_v2 }
  0xc4   : > { %1076 = vmatmul.msk.f32.vlgmr.msrb.gmra.mxu2 %vm169_vm0, %v168_v1 }
 0x10c   : > { %v368_v8 = vpop.f32.mrf.mxu3 }
 0x10f   : > { %v310_v9 = vpop.f32.mrf.mxu1  ;;  %v290_v10 = vpop.f32.mrf.mxu0 }
 0x110   : > { %v314_v11 = vadd.f32 %v310_v9, %v254_v6  ;;  %v313_v14 = vadd.f32 %v290_v10, %v234_v13 }
 0x112   : > { %v372_v12 = vadd.f32 %v368_v8, %v314_v11 }
 0x114   : > { %1133 = vtanh.f32 %v372_v12 }
 0x116   : > { %v348_v15 = vpop.f32.mrf.mxu2 }
 0x117   : > { %v371_v16 = vadd.f32 %v348_v15, %v313_v14  ;;  %v422_v17 = vpop.f32.mrf.mxu1  ;;  %v402_v18 = vpop.f32.mrf.mxu0 }
 0x118   : > { %v465_v19 = vpop.f32.mrf.mxu3 }
 0x119   : > { %1135 = vtanh.f32 %v371_v16  ;;  %v466_v22 = vadd.f32 %v465_v19, %v422_v17 }
 0x11a   : > { %v1134_v20 = vpop.eup %1133 }
 0x11b   : > { %v377_v21 = vrot.slane %v1134_v20, 4 }
 0x11e   : > { %v445_v23 = vpop.f32.mrf.mxu2 }
 0x11f   : > { %v1136_v24 = vpop.eup %1135  ;;  %v508_v25 = vpop.f32.mrf.mxu1  ;;  %v446_v30 = vadd.f32 %v445_v23, %v402_v18 }
 0x120   : > { %v488_v26 = vpop.f32.mrf.mxu0  ;;  %v379_v27 = vsel %vm378_vm3, %v1136_v24, %v377_v21  ;;  %v512_v28 = vadd.f32 %v508_v25, %v466_v22  ;;  %v566_v29 = vpop.f32.mrf.mxu3 }
 0x121   : > { %381 = vst [vmem:[%s1296_s26] sm:$0x77] %v379_v27  ;;  %v511_v32 = vadd.f32 %v488_v26, %v446_v30 }
 0x122   : > { %v570_v31 = vadd.f32 %v566_v29, %v512_v28 }
 0x124   : > { %1137 = vtanh.f32 %v570_v31 }
 0x126   : > { %v546_v33 = vpop.f32.mrf.mxu2 }
 0x127   : > { %v569_v34 = vadd.f32 %v546_v33, %v511_v32  ;;  %v620_v35 = vpop.f32.mrf.mxu1 }
 0x128   : > { %v600_v36 = vpop.f32.mrf.mxu0  ;;  %v663_v37 = vpop.f32.mrf.mxu3 }
 0x129   : > { %1139 = vtanh.f32 %v569_v34  ;;  %v664_v40 = vadd.f32 %v663_v37, %v620_v35 }
 0x12a   : > { %v1138_v38 = vpop.eup %1137 }
 0x12b   : > { %v575_v39 = vrot.slane %v1138_v38, 4 }
 0x12e   : > { %v643_v41 = vpop.f32.mrf.mxu2 }
 0x12f   : > { %v1140_v42 = vpop.eup %1139  ;;  %v717_v43 = vpop.f32.mrf.mxu1  ;;  %v644_v48 = vadd.f32 %v643_v41, %v600_v36 }
 0x130   : > { %v697_v44 = vpop.f32.mrf.mxu0  ;;  %v576_v45 = vsel %vm378_vm3, %v1140_v42, %v575_v39  ;;  %v721_v46 = vadd.f32 %v717_v43, %v664_v40  ;;  %v772_v47 = vpop.f32.mrf.mxu3 }
 0x131   : > { %1060 = vst [vmem:[%s1296_s26 + $0x8] sm:$0x77] %v576_v45  ;;  %v720_v50 = vadd.f32 %v697_v44, %v644_v48 }
 0x132   : > { %v776_v49 = vadd.f32 %v772_v47, %v721_v46 }
 0x134   : > { %1141 = vtanh.f32 %v776_v49 }
 0x137   : > { %v752_v51 = vpop.f32.mrf.mxu2  ;;  %v826_v52 = vpop.f32.mrf.mxu1 }
 0x138   : > { %v775_v53 = vadd.f32 %v752_v51, %v720_v50  ;;  %v869_v54 = vpop.f32.mrf.mxu3  ;;  %v806_v55 = vpop.f32.mrf.mxu0 }
 0x139   : > { %v870_v57 = vadd.f32 %v869_v54, %v826_v52 }
 0x13a   : > { %1143 = vtanh.f32 %v775_v53  ;;  %v1142_v56 = vpop.eup %1141 }
 0x13b   : > { %v781_v58 = vrot.slane %v1142_v56, 4 }
 0x13f   : > { %v849_v59 = vpop.f32.mrf.mxu2  ;;  %v912_v60 = vpop.f32.mrf.mxu1 }
 0x140   : > { %v1144_v61 = vpop.eup %1143  ;;  %v916_v62 = vadd.f32 %v912_v60, %v870_v57  ;;  %v967_v63 = vpop.f32.mrf.mxu3  ;;  %v850_v1 = vadd.f32 %v849_v59, %v806_v55 }
 0x141   : > { %v782_v0 = vsel %vm378_vm3, %v1144_v61, %v781_v58  ;;  %v892_v3 = vpop.f32.mrf.mxu0 }
 0x142   : > { %1069 = vst [vmem:[%s1296_s26 + $0x10] sm:$0x77] %v782_v0  ;;  %v971_v2 = vadd.f32 %v967_v63, %v916_v62  ;;  %v915_v4 = vadd.f32 %v892_v3, %v850_v1 }
 0x144   : > { %1145 = vtanh.f32 %v971_v2 }
 0x147   : > { %v947_v5 = vpop.f32.mrf.mxu2 }
 0x148   : > { %v970_v6 = vadd.f32 %v947_v5, %v915_v4 }
 0x14a   : > { %1147 = vtanh.f32 %v970_v6  ;;  %v1146_v7 = vpop.eup %1145 }
 0x14b   : > { %v976_v8 = vrot.slane %v1146_v7, 4 }
 0x150   : > { %v1148_v9 = vpop.eup %1147 }
 0x151   : > { %v977_v10 = vsel %vm378_vm3, %v1148_v9, %v976_v8 }
 0x152   : > { %1078 = vst [vmem:[%s1296_s26 + $0x18] sm:$0x77] %v977_v10 }
 0x153 PF: > { %s12_s9 = sadd.s32 1, %s1155_s9  }
 0x154   : > { %p9_p4 = scmp.ge.s32.totalorder %s12_s9, 4  }
 0x156   :  { %11 = sbr.rel (!%p9_p4) target bundleno = 1 (0x1), region = 61 }

</bundles_post_ra>
